<compile_context>
chip_gen: v7x
topology: tpu7x:2x2x1
jax: 0.10.0
libtpu: 0.0.40
codegen_flags: <defaults>
</compile_context>

<pallas_src>
import functools

import jax
import jax.numpy as jnp
from jax import lax
from jax.experimental import pallas as pl
from jax.experimental.pallas import tpu as pltpu

LANE = 128


def _pad_to_lane(n):
    return ((n + LANE - 1) // LANE) * LANE


# ----------------------------------------------------------------------------
# Stage 1: backbone (1x1 conv) + RPN + ROI feature projection, fused.
# ----------------------------------------------------------------------------
def _stage1_kernel(x_ref, anc_ref, wbb_ref, bbb_ref, wh_ref, bh_ref, out_ref):
    x = x_ref[...]                                                    # (TP, Cin)
    feat = jnp.maximum(
        jnp.dot(x, wbb_ref[...], preferred_element_type=jnp.float32) + bbb_ref[...],
        0.0)                                                          # (TP, Cf)
    # one MXU launch for the concatenated (zero-padded) RPN(5) + ROI(Fd) heads
    hr = jnp.dot(feat, wh_ref[...], preferred_element_type=jnp.float32) + bh_ref[...]

    # Widen the (TP, 4) anchors onto lanes 0..3 of the 128-wide slab with a tiny
    # select matmul (K=4) -- no lane concatenation / pad op needed.
    wpad = hr.shape[1]
    sel = (lax.broadcasted_iota(jnp.int32, (4, wpad), 0) ==
           lax.broadcasted_iota(jnp.int32, (4, wpad), 1)).astype(jnp.float32)
    anc_wide = jnp.dot(anc_ref[...], sel, preferred_element_type=jnp.float32)

    # Per-column select: cols 0:4 boxes(+anchors), col 4 sigmoid score, rest relu.
    # Sigmoid is evaluated on the single score column only (EUP work = TP, not
    # TP*128) and lane-broadcast before the select.  Padding columns have zero
    # weights/bias so the relu branch keeps them zero.
    col = lax.broadcasted_iota(jnp.int32, hr.shape, 1)
    score_b = jnp.broadcast_to(jax.nn.sigmoid(hr[:, 4:5]), hr.shape)
    out_ref[...] = jnp.where(col < 4, hr + anc_wide,
                             jnp.where(col == 4, score_b, jnp.maximum(hr, 0.0)))


def backbone_rpn_roi(x, anchors, w_bb, b_bb, w_heads, b_heads):
    B, P, Cin = x.shape
    Cf = w_bb.shape[1]
    Wpad = w_heads.shape[1]
    # Row tile within an image; batch is a separate "parallel" grid axis so the
    # grid always has >= B steps (keeps v7x's second TensorCore busy).
    TP = P if P <= 1024 else 512
    assert P % TP == 0 and TP % 8 == 0, "P must tile into multiples of 8 rows"
    grid_spec = pltpu.PrefetchScalarGridSpec(
        num_scalar_prefetch=0,
        grid=(B, P // TP),
        in_specs=[
            pl.BlockSpec((None, TP, Cin), lambda b, p: (b, p, 0)),
            pl.BlockSpec((TP, 4), lambda b, p: (p, 0)),      # reused across batch
            pl.BlockSpec((Cin, Cf), lambda b, p: (0, 0)),
            pl.BlockSpec((1, Cf), lambda b, p: (0, 0)),
            pl.BlockSpec((Cf, Wpad), lambda b, p: (0, 0)),
            pl.BlockSpec((1, Wpad), lambda b, p: (0, 0)),
        ],
        out_specs=pl.BlockSpec((None, TP, Wpad), lambda b, p: (b, p, 0)),
    )
    return pl.pallas_call(
        _stage1_kernel,
        out_shape=jax.ShapeDtypeStruct((B, P, Wpad), jnp.float32),
        grid_spec=grid_spec,
        compiler_params=pltpu.CompilerParams(
            dimension_semantics=("parallel", "parallel")),
    )(x, anchors, w_bb, b_bb, w_heads, b_heads)


# ----------------------------------------------------------------------------
# Stage 2: DifferentiableNMS + roi_head.predict, fused.  num_regions arrives via
# scalar prefetch (SMEM); columns/rows >= num_regions are masked so the valid
# region rows match the dynamic-R reference exactly.
# ----------------------------------------------------------------------------
def _dnms_predict_kernel(nreg_ref, slab_ref, cfeat_ref, cspat_ref, wbig_ref, bbig_ref,
                         out_ref, *, feat_dim, alpha, beta, gamma, temperature,
                         max_iter, eps, threshold):
    nreg = nreg_ref[0]
    slab = slab_ref[...]              # (P, 128): [x1 y1 x2 y2 | score | feats | 0pad]
    cfeat = cfeat_ref[...]            # (R, Fd)
    cspat = cspat_ref[...]            # (R, 2)
    P = slab.shape[0]
    R = cfeat.shape[0]

    boxes = slab[:, 0:4]
    scores = slab[:, 4:5]
    feats = slab[:, 5:5 + feat_dim]

    col_valid = (lax.broadcasted_iota(jnp.int32, (1, R), 1) < nreg).astype(jnp.float32)
    row_valid = (lax.broadcasted_iota(jnp.int32, (R, 1), 0) < nreg).astype(jnp.float32)

    # cosine feature similarity: rsqrt normalization (EUP) + one contraction
    fn = feats * lax.rsqrt(jnp.maximum(jnp.sum(feats * feats, axis=1, keepdims=True), 1e-24))
    cn = cfeat * lax.rsqrt(jnp.maximum(jnp.sum(cfeat * cfeat, axis=1, keepdims=True), 1e-24))
    feat_sim = lax.dot_general(fn, cn, (((1,), (1,)), ((), ())),
                               preferred_element_type=jnp.float32)    # (P, R)

    # spatial cost via squared-distance expansion (no (P, R, 2) intermediate)
    centers = (boxes[:, 0:2] + boxes[:, 2:4]) * 0.5                   # (P, 2)
    p2 = jnp.sum(centers * centers, axis=1, keepdims=True)            # (P, 1)
    c2 = lax.dot_general(jnp.ones((1, 2), jnp.float32), cspat * cspat,
                         (((1,), (1,)), ((), ())),
                         preferred_element_type=jnp.float32)          # (1, R)
    pc = lax.dot_general(centers, cspat, (((1,), (1,)), ((), ())),
                         preferred_element_type=jnp.float32)          # (P, R)
    spd = jnp.sqrt(jnp.maximum(p2 + c2 - 2.0 * pc, 0.0))
    max_dist = jnp.max(spd * col_valid, axis=(0, 1), keepdims=True)   # valid cols only
    inv_max = pl.reciprocal(jnp.maximum(max_dist, eps), approx=True)

    # Fused cost -> Sinkhorn kernel; only `sim` (plus spd/feat_sim transiently)
    # stays live as a (P, R) f32 buffer -> small VMEM peak (matters on v7x 64MiB).
    cost = (alpha * (1.0 - scores) + beta * (1.0 - feat_sim)
            + gamma * (spd * inv_max))
    sim = jnp.exp(cost * (-1.0 / temperature)) * col_valid            # invalid cols -> 0

    # Sinkhorn normalization: row/col sums as MXU contractions (col sum contracts
    # sim's axis 0 directly -> no XLU transpose, no second (P, R) buffer); the
    # divides in the serial 10-iteration chain go to the EUP via approx reciprocal.
    row_scaling = jnp.ones((P, 1), jnp.float32)
    col_scaling = jnp.ones((R, 1), jnp.float32)
    for _ in range(max_iter):
        row_sum = jnp.dot(sim, col_scaling, preferred_element_type=jnp.float32) + eps
        row_scaling = pl.reciprocal(row_sum, approx=True)
        col_sum = lax.dot_general(sim, row_scaling, (((0,), (0,)), ((), ())),
                                  preferred_element_type=jnp.float32) + eps
        col_scaling = pl.reciprocal(col_sum, approx=True)

    # aggregate [boxes|score|feats] with one matmul; the soft assignment is never
    # materialized: agg = col ⊙ (sim^T @ (row ⊙ slab)) via a dim-0 contraction.
    agg = lax.dot_general(sim, slab * row_scaling, (((0,), (0,)), ((), ())),
                          preferred_element_type=jnp.float32) * col_scaling   # (R, 128)

    # confidence filter + predict heads.  Zeroing the matmul *input* (not the
    # bias) matches the reference: roi_head.predict is applied to the zeroed
    # filtered features, so its bias is still added for filtered-out rows.
    keep = (agg[:, 4:5] > threshold).astype(jnp.float32)              # (R, 1)
    out = jnp.dot(agg * keep, wbig_ref[...],
                  preferred_element_type=jnp.float32) + bbig_ref[...]
    out_ref[...] = out * row_valid                                    # zero padded regions


def dnms_predict(nreg, slab, cfeat, cspat, w_big, b_big, *, alpha=1.0, beta=1.0,
                 gamma=1.0, temperature=0.1, max_iter=10, eps=1e-10, threshold=0.05):
    B, P, Ws = slab.shape
    R, Fd = cfeat.shape[1], cfeat.shape[2]
    Wo = w_big.shape[1]
    kernel = functools.partial(
        _dnms_predict_kernel, feat_dim=Fd, alpha=alpha, beta=beta, gamma=gamma,
        temperature=temperature, max_iter=max_iter, eps=eps, threshold=threshold)
    # TODO(synk): for large B, tile 2-4 images per grid step to amortize the
    # ~0.35us per-step pipeline overhead; kept per-image here so grid=(B,) still
    # shards across both v7x TensorCores at small B.
    grid_spec = pltpu.PrefetchScalarGridSpec(
        num_scalar_prefetch=1,                 # num_regions -> SMEM, no recompiles
        grid=(B,),
        in_specs=[
            pl.BlockSpec((None, P, Ws), lambda b, n: (b, 0, 0)),
            pl.BlockSpec((None, R, Fd), lambda b, n: (b, 0, 0)),
            pl.BlockSpec((None, R, 2), lambda b, n: (b, 0, 0)),
            pl.BlockSpec((Ws, Wo), lambda b, n: (0, 0)),
            pl.BlockSpec((1, Wo), lambda b, n: (0, 0)),
        ],
        out_specs=pl.BlockSpec((None, R, Wo), lambda b, n: (b, 0, 0)),
    )
    return pl.pallas_call(
        kernel,
        out_shape=jax.ShapeDtypeStruct((B, R, Wo), jnp.float32),
        grid_spec=grid_spec,
        compiler_params=pltpu.CompilerParams(dimension_semantics=("parallel",)),
    )(nreg, slab, cfeat, cspat, w_big, b_big)


# ----------------------------------------------------------------------------
# Full model: backbone -> rpn -> roi features -> DNMS -> predict
# ----------------------------------------------------------------------------
def detection_model_with_dnms(images, params, *, alpha=1.0, beta=1.0, gamma=1.0,
                              temperature=0.1, max_iter=10, eps=1e-10, threshold=0.05,
                              region_cap=128):
    B, C, H, W = images.shape
    P = H * W
    Cf = params["w_bb"].shape[1]
    Fd = params["w_roi"].shape[1]
    NC = params["w_cls"].shape[1]
    Ws_pad = _pad_to_lane(5 + Fd)       # lane-dense stage-1 slab width
    Wo_pad = _pad_to_lane(NC + 4)       # lane-dense stage-2 output width

    # NCHW -> channels-last (B, P, C); 1x1 conv == per-row linear.
    x = jnp.transpose(images.reshape(B, C, P), (0, 2, 1)).astype(jnp.float32)

    # RPN(5) + ROI(Fd) heads concatenated, zero-padded to the lane-dense width.
    w_heads = jnp.zeros((Cf, Ws_pad), jnp.float32)
    w_heads = w_heads.at[:, 0:5].set(params["w_rpn"]).at[:, 5:5 + Fd].set(params["w_roi"])
    b_heads = jnp.zeros((1, Ws_pad), jnp.float32)
    b_heads = b_heads.at[:, 0:5].set(params["b_rpn"]).at[:, 5:5 + Fd].set(params["b_roi"])

    slab = backbone_rpn_roi(x, params["anchors"], params["w_bb"], params["b_bb"],
                            w_heads, b_heads)                         # (B, P, Ws_pad)

    scores = slab[..., 4]                                             # (B, P)
    boxes = slab[..., 0:4]
    feats = slab[..., 5:5 + Fd]

    # data-dependent num_regions (torch `.item()` path) kept ON DEVICE: static
    # region cap + in-kernel masking -> no host sync, no per-k recompilation.
    R = min(P, region_cap)
    counts = jnp.sum((scores > 0.5).astype(jnp.float32), axis=1)
    nreg = jnp.clip(jnp.floor(jnp.mean(counts)).astype(jnp.int32), 1, R).reshape(1)
    # TODO(synk): if the data-dependent num_regions exceeds region_cap the result
    # is clamped (diverges from the reference); size region_cap accordingly.

    # descending top-R; rows < num_regions are exactly the reference centroids.
    _, topk_idx = lax.top_k(scores, R)
    cfeat = jnp.take_along_axis(feats, topk_idx[:, :, None], axis=1)        # (B, R, Fd)
    centers = (boxes[..., 0:2] + boxes[..., 2:4]) * 0.5
    cspat = jnp.take_along_axis(centers, topk_idx[:, :, None], axis=1)      # (B, R, 2)

    # predict heads fused with the box passthrough (zero-padded to 128 lanes):
    # [fboxes | fscore | ffeats | 0] @ w_big + b_big == [cls_scores | fboxes + box_deltas | 0]
    w_big = jnp.zeros((Ws_pad, Wo_pad), jnp.float32)
    w_big = w_big.at[0:4, NC:NC + 4].set(jnp.eye(4, dtype=jnp.float32))
    w_big = w_big.at[5:5 + Fd, 0:NC].set(params["w_cls"])
    w_big = w_big.at[5:5 + Fd, NC:NC + 4].set(params["w_box"])
    b_big = jnp.zeros((1, Wo_pad), jnp.float32)
    b_big = b_big.at[:, 0:NC].set(params["b_cls"]).at[:, NC:NC + 4].set(params["b_box"])

    out = dnms_predict(nreg, slab, cfeat, cspat, w_big, b_big,
                       alpha=alpha, beta=beta, gamma=gamma, temperature=temperature,
                       max_iter=max_iter, eps=eps, threshold=threshold)     # (B, R, Wo_pad)

    class_scores = out[..., 0:NC]
    out_boxes = out[..., NC:NC + 4]
    # TODO(synk): the reference returns exactly num_regions rows (dynamic shape);
    # here rows >= num_regions are zero-padded and num_regions is returned alongside.
    return class_scores, out_boxes, nreg[0]


# ----------------------------------------------------------------------------
# Deterministic parameter construction (stand-ins for backbone / rpn / roi_head)
# ----------------------------------------------------------------------------
def make_params(key, c_in=4, c_feat=16, feat_dim=32, num_classes=5, H=8, W=8, stride=4.0):
    ks = jax.random.split(key, 10)

    def init(k, shape, scale=0.1):
        return scale * jax.random.normal(k, shape, dtype=jnp.float32)

    params = {
        "w_bb": init(ks[0], (c_in, c_feat)),
        "b_bb": init(ks[1], (1, c_feat)),
        "w_rpn": init(ks[2], (c_feat, 5)),
        "b_rpn": init(ks[3], (1, 5)),
        "w_roi": init(ks[4], (c_feat, feat_dim)),
        "b_roi": init(ks[5], (1, feat_dim)),
        "w_cls": init(ks[6], (feat_dim, num_classes)),
        "b_cls": init(ks[7], (1, num_classes)),
        "w_box": init(ks[8], (feat_dim, 4)),
        "b_box": init(ks[9], (1, 4)),
    }
    ys, xs = jnp.meshgrid(jnp.arange(H, dtype=jnp.float32),
                          jnp.arange(W, dtype=jnp.float32), indexing="ij")
    cx = (xs.reshape(-1) + 0.5) * stride
    cy = (ys.reshape(-1) + 0.5) * stride
    half = stride / 2.0
    params["anchors"] = jnp.stack([cx - half, cy - half, cx + half, cy + half], axis=1)
    return params


if __name__ == "__main__":
    key = jax.random.PRNGKey(0)
    pkey, xkey = jax.random.split(key)

    B, C_in, H, W = 2, 4, 8, 8          # small, NCHW like the PyTorch module
    params = make_params(pkey, c_in=C_in, H=H, W=W)
    images = jax.random.normal(xkey, (B, C_in, H, W), dtype=jnp.float32)

    fwd = jax.jit(detection_model_with_dnms)
    class_scores, out_boxes, num_regions = fwd(images, params)
    jax.block_until_ready((class_scores, out_boxes, num_regions))
    print("KERNEL_OK")
</pallas_src>

<mosaic_0001>
module attributes {stable_mosaic.version = 11 : i64} {
  func.func @_stage1_kernel(%arg0: i32, %arg1: i32, %arg2: memref<1x64x4xf32, #tpu.memory_space<vmem>>, %arg3: memref<64x4xf32, #tpu.memory_space<vmem>>, %arg4: memref<4x16xf32, #tpu.memory_space<vmem>>, %arg5: memref<1x16xf32, #tpu.memory_space<vmem>>, %arg6: memref<16x128xf32, #tpu.memory_space<vmem>>, %arg7: memref<1x128xf32, #tpu.memory_space<vmem>>, %arg8: memref<1x64x128xf32, #tpu.memory_space<vmem>>) attributes {dimension_semantics = [#tpu.dimension_semantics<parallel>, #tpu.dimension_semantics<parallel>], iteration_bounds = array<i64: 2, 1>, scalar_prefetch = 0 : i64, scratch_operands = 0 : i64, tpu.core_type = #tpu.core_type<tc>, window_params = [{transform_indices = @transform_0, window_bounds = array<i64: 1, 64, 4>}, {transform_indices = @transform_1, window_bounds = array<i64: 64, 4>}, {pipeline_mode = #tpu.pipeline_mode<synchronous>, transform_indices = @transform_2, window_bounds = array<i64: 4, 16>}, {pipeline_mode = #tpu.pipeline_mode<synchronous>, transform_indices = @transform_3, window_bounds = array<i64: 1, 16>}, {pipeline_mode = #tpu.pipeline_mode<synchronous>, transform_indices = @transform_4, window_bounds = array<i64: 16, 128>}, {pipeline_mode = #tpu.pipeline_mode<synchronous>, transform_indices = @transform_5, window_bounds = array<i64: 1, 128>}, {transform_indices = @transform_6, window_bounds = array<i64: 1, 64, 128>}]} {
    %c0 = arith.constant 0 : index
    %c0_0 = arith.constant 0 : index
    %c0_1 = arith.constant 0 : index
    %0 = vector.load %arg2[%c0, %c0_0, %c0_1] : memref<1x64x4xf32, #tpu.memory_space<vmem>>, vector<1x64x4xf32>
    %1 = vector.shape_cast %0 : vector<1x64x4xf32> to vector<64x4xf32>
    %c0_2 = arith.constant 0 : index
    %c0_3 = arith.constant 0 : index
    %2 = vector.load %arg4[%c0_2, %c0_3] : memref<4x16xf32, #tpu.memory_space<vmem>>, vector<4x16xf32>
    %cst = arith.constant dense<0.000000e+00> : vector<64x16xf32>
    %3 = tpu.matmul %1, %2, %cst {dimension_numbers = #tpu.dot_dimension_numbers<[1], [0], [0], [1], [0, 0, 1, 1], [], []>} : vector<64x4xf32>, vector<4x16xf32>, vector<64x16xf32> -> vector<64x16xf32>
    %c0_4 = arith.constant 0 : index
    %c0_5 = arith.constant 0 : index
    %4 = vector.load %arg5[%c0_4, %c0_5] : memref<1x16xf32, #tpu.memory_space<vmem>>, vector<1x16xf32>
    %5 = vector.broadcast %4 : vector<1x16xf32> to vector<64x16xf32>
    %6 = arith.addf %3, %5 : vector<64x16xf32>
    %cst_6 = arith.constant 0.000000e+00 : f32
    %7 = vector.broadcast %cst_6 : f32 to vector<64x16xf32>
    %8 = arith.maximumf %6, %7 : vector<64x16xf32>
    %c0_7 = arith.constant 0 : index
    %c0_8 = arith.constant 0 : index
    %9 = vector.load %arg6[%c0_7, %c0_8] : memref<16x128xf32, #tpu.memory_space<vmem>>, vector<16x128xf32>
    %cst_9 = arith.constant dense<0.000000e+00> : vector<64x128xf32>
    %10 = tpu.matmul %8, %9, %cst_9 {dimension_numbers = #tpu.dot_dimension_numbers<[1], [0], [0], [1], [0, 0, 1, 1], [], []>} : vector<64x16xf32>, vector<16x128xf32>, vector<64x128xf32> -> vector<64x128xf32>
    %c0_10 = arith.constant 0 : index
    %c0_11 = arith.constant 0 : index
    %11 = vector.load %arg7[%c0_10, %c0_11] : memref<1x128xf32, #tpu.memory_space<vmem>>, vector<1x128xf32>
    %12 = vector.broadcast %11 : vector<1x128xf32> to vector<64x128xf32>
    %13 = arith.addf %10, %12 : vector<64x128xf32>
    %14 = tpu.iota {dimensions = array<i32: 0>} : vector<4x128xi32>
    %15 = tpu.iota {dimensions = array<i32: 1>} : vector<4x128xi32>
    %16 = arith.cmpi eq, %14, %15 : vector<4x128xi32>
    %17 = arith.extui %16 : vector<4x128xi1> to vector<4x128xi32>
    %18 = arith.sitofp %17 : vector<4x128xi32> to vector<4x128xf32>
    %c0_12 = arith.constant 0 : index
    %c0_13 = arith.constant 0 : index
    %19 = vector.load %arg3[%c0_12, %c0_13] : memref<64x4xf32, #tpu.memory_space<vmem>>, vector<64x4xf32>
    %cst_14 = arith.constant dense<0.000000e+00> : vector<64x128xf32>
    %20 = tpu.matmul %19, %18, %cst_14 {dimension_numbers = #tpu.dot_dimension_numbers<[1], [0], [0], [1], [0, 0, 1, 1], [], []>} : vector<64x4xf32>, vector<4x128xf32>, vector<64x128xf32> -> vector<64x128xf32>
    %21 = tpu.iota {dimensions = array<i32: 1>} : vector<64x128xi32>
    %22 = vector.extract_strided_slice %13 {offsets = [0, 4], sizes = [64, 1], strides = [1, 1]} : vector<64x128xf32> to vector<64x1xf32>
    %23 = arith.negf %22 : vector<64x1xf32>
    %24 = math.exp %23 : vector<64x1xf32>
    %cst_15 = arith.constant 1.000000e+00 : f32
    %25 = vector.broadcast %cst_15 : f32 to vector<64x1xf32>
    %26 = arith.addf %25, %24 : vector<64x1xf32>
    %27 = arith.divf %25, %26 : vector<64x1xf32>
    %28 = vector.shape_cast %27 : vector<64x1xf32> to vector<64x1xf32>
    %29 = vector.broadcast %28 : vector<64x1xf32> to vector<64x128xf32>
    %c4_i32 = arith.constant 4 : i32
    %30 = vector.broadcast %c4_i32 : i32 to vector<64x128xi32>
    %31 = arith.cmpi slt, %21, %30 : vector<64x128xi32>
    %32 = arith.addf %13, %20 : vector<64x128xf32>
    %c4_i32_16 = arith.constant 4 : i32
    %33 = vector.broadcast %c4_i32_16 : i32 to vector<64x128xi32>
    %34 = arith.cmpi eq, %21, %33 : vector<64x128xi32>
    %cst_17 = arith.constant 0.000000e+00 : f32
    %35 = vector.broadcast %cst_17 : f32 to vector<64x128xf32>
    %36 = arith.maximumf %13, %35 : vector<64x128xf32>
    %37 = arith.select %34, %29, %36 : vector<64x128xi1>, vector<64x128xf32>
    %38 = arith.select %31, %32, %37 : vector<64x128xi1>, vector<64x128xf32>
    %c0_18 = arith.constant 0 : index
    %c0_19 = arith.constant 0 : index
    %c0_20 = arith.constant 0 : index
    %39 = vector.load %arg8[%c0_18, %c0_19, %c0_20] : memref<1x64x128xf32, #tpu.memory_space<vmem>>, vector<1x64x128xf32>
    %40 = vector.shape_cast %39 : vector<1x64x128xf32> to vector<64x128xf32>
    %41 = vector.shape_cast %38 : vector<64x128xf32> to vector<1x64x128xf32>
    tpu.vector_store %arg8[%c0_18, %c0_19, %c0_20], %41 {strides = array<i32>} : memref<1x64x128xf32, #tpu.memory_space<vmem>>, vector<1x64x128xf32>,
    return
  }
  func.func @transform_0(%arg0: i32, %arg1: i32) -> (i32, i32, i32) {
    %c0_i32 = arith.constant 0 : i32
    %c0_i32_0 = arith.constant 0 : i32
    return %arg0, %arg1, %c0_i32 : i32, i32, i32
  }
  func.func @transform_1(%arg0: i32, %arg1: i32) -> (i32, i32) {
    %c0_i32 = arith.constant 0 : i32
    %c0_i32_0 = arith.constant 0 : i32
    return %arg1, %c0_i32 : i32, i32
  }
  func.func @transform_2(%arg0: i32, %arg1: i32) -> (i32, i32) {
    %c0_i32 = arith.constant 0 : i32
    %c0_i32_0 = arith.constant 0 : i32
    %c0_i32_1 = arith.constant 0 : i32
    return %c0_i32, %c0_i32_0 : i32, i32
  }
  func.func @transform_3(%arg0: i32, %arg1: i32) -> (i32, i32) {
    %c0_i32 = arith.constant 0 : i32
    %c0_i32_0 = arith.constant 0 : i32
    %c0_i32_1 = arith.constant 0 : i32
    return %c0_i32, %c0_i32_0 : i32, i32
  }
  func.func @transform_4(%arg0: i32, %arg1: i32) -> (i32, i32) {
    %c0_i32 = arith.constant 0 : i32
    %c0_i32_0 = arith.constant 0 : i32
    %c0_i32_1 = arith.constant 0 : i32
    return %c0_i32, %c0_i32_0 : i32, i32
  }
  func.func @transform_5(%arg0: i32, %arg1: i32) -> (i32, i32) {
    %c0_i32 = arith.constant 0 : i32
    %c0_i32_0 = arith.constant 0 : i32
    %c0_i32_1 = arith.constant 0 : i32
    return %c0_i32, %c0_i32_0 : i32, i32
  }
  func.func @transform_6(%arg0: i32, %arg1: i32) -> (i32, i32, i32) {
    %c0_i32 = arith.constant 0 : i32
    %c0_i32_0 = arith.constant 0 : i32
    return %arg0, %arg1, %c0_i32 : i32, i32, i32
  }
}

module attributes {stable_mosaic.version = 11 : i64} {
  func.func @_dnms_predict_kernel(%arg0: i32, %arg1: memref<1xi32, #tpu.memory_space<smem>>, %arg2: memref<1x64x128xf32, #tpu.memory_space<vmem>>, %arg3: memref<1x64x32xf32, #tpu.memory_space<vmem>>, %arg4: memref<1x64x2xf32, #tpu.memory_space<vmem>>, %arg5: memref<128x128xf32, #tpu.memory_space<vmem>>, %arg6: memref<1x128xf32, #tpu.memory_space<vmem>>, %arg7: memref<1x64x128xf32, #tpu.memory_space<vmem>>) attributes {dimension_semantics = [#tpu.dimension_semantics<parallel>], iteration_bounds = array<i64: 2>, scalar_prefetch = 1 : i64, scratch_operands = 0 : i64, tpu.core_type = #tpu.core_type<tc>, window_params = [{transform_indices = @transform_0, window_bounds = array<i64: 1, 64, 128>}, {transform_indices = @transform_1, window_bounds = array<i64: 1, 64, 32>}, {transform_indices = @transform_2, window_bounds = array<i64: 1, 64, 2>}, {pipeline_mode = #tpu.pipeline_mode<synchronous>, transform_indices = @transform_3, window_bounds = array<i64: 128, 128>}, {pipeline_mode = #tpu.pipeline_mode<synchronous>, transform_indices = @transform_4, window_bounds = array<i64: 1, 128>}, {transform_indices = @transform_5, window_bounds = array<i64: 1, 64, 128>}]} {
    %c0 = arith.constant 0 : index
    %0 = memref.load %arg1[%c0] : memref<1xi32, #tpu.memory_space<smem>>
    %c0_0 = arith.constant 0 : index
    %c0_1 = arith.constant 0 : index
    %c0_2 = arith.constant 0 : index
    %1 = vector.load %arg2[%c0_0, %c0_1, %c0_2] : memref<1x64x128xf32, #tpu.memory_space<vmem>>, vector<1x64x128xf32>
    %2 = vector.shape_cast %1 : vector<1x64x128xf32> to vector<64x128xf32>
    %c0_3 = arith.constant 0 : index
    %c0_4 = arith.constant 0 : index
    %c0_5 = arith.constant 0 : index
    %3 = vector.load %arg3[%c0_3, %c0_4, %c0_5] : memref<1x64x32xf32, #tpu.memory_space<vmem>>, vector<1x64x32xf32>
    %4 = vector.shape_cast %3 : vector<1x64x32xf32> to vector<64x32xf32>
    %c0_6 = arith.constant 0 : index
    %c0_7 = arith.constant 0 : index
    %c0_8 = arith.constant 0 : index
    %5 = vector.load %arg4[%c0_6, %c0_7, %c0_8] : memref<1x64x2xf32, #tpu.memory_space<vmem>>, vector<1x64x2xf32>
    %6 = vector.shape_cast %5 : vector<1x64x2xf32> to vector<64x2xf32>
    %7 = vector.extract_strided_slice %2 {offsets = [0, 0], sizes = [64, 4], strides = [1, 1]} : vector<64x128xf32> to vector<64x4xf32>
    %8 = vector.extract_strided_slice %2 {offsets = [0, 4], sizes = [64, 1], strides = [1, 1]} : vector<64x128xf32> to vector<64x1xf32>
    %9 = vector.extract_strided_slice %2 {offsets = [0, 5], sizes = [64, 32], strides = [1, 1]} : vector<64x128xf32> to vector<64x32xf32>
    %10 = tpu.iota {dimensions = array<i32: 1>} : vector<1x64xi32>
    %11 = vector.broadcast %0 : i32 to vector<1x64xi32>
    %12 = arith.cmpi slt, %10, %11 : vector<1x64xi32>
    %13 = arith.extui %12 : vector<1x64xi1> to vector<1x64xi32>
    %14 = arith.sitofp %13 : vector<1x64xi32> to vector<1x64xf32>
    %15 = tpu.iota {dimensions = array<i32: 0>} : vector<64x1xi32>
    %16 = vector.broadcast %0 : i32 to vector<64x1xi32>
    %17 = arith.cmpi slt, %15, %16 : vector<64x1xi32>
    %18 = arith.extui %17 : vector<64x1xi1> to vector<64x1xi32>
    %19 = arith.sitofp %18 : vector<64x1xi32> to vector<64x1xf32>
    %20 = arith.mulf %9, %9 : vector<64x32xf32>
    %cst = arith.constant dense<0.000000e+00> : vector<64xf32>
    %21 = vector.multi_reduction <add>, %20, %cst [1] : vector<64x32xf32> to vector<64xf32>
    %22 = vector.shape_cast %21 : vector<64xf32> to vector<64x1xf32>
    %cst_9 = arith.constant 1.000000e-24 : f32
    %23 = vector.broadcast %cst_9 : f32 to vector<64x1xf32>
    %24 = arith.maximumf %22, %23 : vector<64x1xf32>
    %25 = math.rsqrt %24 : vector<64x1xf32>
    %26 = vector.broadcast %25 : vector<64x1xf32> to vector<64x32xf32>
    %27 = arith.mulf %9, %26 : vector<64x32xf32>
    %28 = arith.mulf %4, %4 : vector<64x32xf32>
    %cst_10 = arith.constant dense<0.000000e+00> : vector<64xf32>
    %29 = vector.multi_reduction <add>, %28, %cst_10 [1] : vector<64x32xf32> to vector<64xf32>
    %30 = vector.shape_cast %29 : vector<64xf32> to vector<64x1xf32>
    %cst_11 = arith.constant 1.000000e-24 : f32
    %31 = vector.broadcast %cst_11 : f32 to vector<64x1xf32>
    %32 = arith.maximumf %30, %31 : vector<64x1xf32>
    %33 = math.rsqrt %32 : vector<64x1xf32>
    %34 = vector.broadcast %33 : vector<64x1xf32> to vector<64x32xf32>
    %35 = arith.mulf %4, %34 : vector<64x32xf32>
    %cst_12 = arith.constant dense<0.000000e+00> : vector<64x64xf32>
    %36 = tpu.matmul %27, %35, %cst_12 {dimension_numbers = #tpu.dot_dimension_numbers<[1], [1], [0], [0], [0, 0, 1, 0], [], []>} : vector<64x32xf32>, vector<64x32xf32>, vector<64x64xf32> -> vector<64x64xf32>
    %37 = vector.extract_strided_slice %7 {offsets = [0, 0], sizes = [64, 2], strides = [1, 1]} : vector<64x4xf32> to vector<64x2xf32>
    %38 = vector.extract_strided_slice %7 {offsets = [0, 2], sizes = [64, 2], strides = [1, 1]} : vector<64x4xf32> to vector<64x2xf32>
    %39 = arith.addf %37, %38 : vector<64x2xf32>
    %cst_13 = arith.constant 5.000000e-01 : f32
    %40 = vector.broadcast %cst_13 : f32 to vector<64x2xf32>
    %41 = arith.mulf %39, %40 : vector<64x2xf32>
    %42 = arith.mulf %41, %41 : vector<64x2xf32>
    %cst_14 = arith.constant dense<0.000000e+00> : vector<64xf32>
    %43 = vector.multi_reduction <add>, %42, %cst_14 [1] : vector<64x2xf32> to vector<64xf32>
    %44 = vector.shape_cast %43 : vector<64xf32> to vector<64x1xf32>
    %cst_15 = arith.constant 1.000000e+00 : f32
    %45 = vector.broadcast %cst_15 : f32 to vector<1x2xf32>
    %46 = arith.mulf %6, %6 : vector<64x2xf32>
    %cst_16 = arith.constant dense<0.000000e+00> : vector<1x64xf32>
    %47 = tpu.matmul %45, %46, %cst_16 {dimension_numbers = #tpu.dot_dimension_numbers<[1], [1], [0], [0], [0, 0, 1, 0], [], []>} : vector<1x2xf32>, vector<64x2xf32>, vector<1x64xf32> -> vector<1x64xf32>
    %cst_17 = arith.constant dense<0.000000e+00> : vector<64x64xf32>
    %48 = tpu.matmul %41, %6, %cst_17 {dimension_numbers = #tpu.dot_dimension_numbers<[1], [1], [0], [0], [0, 0, 1, 0], [], []>} : vector<64x2xf32>, vector<64x2xf32>, vector<64x64xf32> -> vector<64x64xf32>
    %49 = vector.broadcast %44 : vector<64x1xf32> to vector<64x64xf32>
    %50 = vector.broadcast %47 : vector<1x64xf32> to vector<64x64xf32>
    %51 = arith.addf %49, %50 : vector<64x64xf32>
    %cst_18 = arith.constant 2.000000e+00 : f32
    %52 = vector.broadcast %cst_18 : f32 to vector<64x64xf32>
    %53 = arith.mulf %52, %48 : vector<64x64xf32>
    %54 = arith.subf %51, %53 : vector<64x64xf32>
    %cst_19 = arith.constant 0.000000e+00 : f32
    %55 = vector.broadcast %cst_19 : f32 to vector<64x64xf32>
    %56 = arith.maximumf %54, %55 : vector<64x64xf32>
    %57 = math.sqrt %56 : vector<64x64xf32>
    %58 = vector.broadcast %14 : vector<1x64xf32> to vector<64x64xf32>
    %59 = arith.mulf %57, %58 : vector<64x64xf32>
    %60 = vector.shape_cast %59 : vector<64x64xf32> to vector<1x64x64xf32>
    %cst_20 = arith.constant dense<0xFF800000> : vector<1xf32>
    %61 = vector.multi_reduction <maximumf>, %60, %cst_20 [1, 2] : vector<1x64x64xf32> to vector<1xf32>
    %62 = vector.shape_cast %61 : vector<1xf32> to vector<1x1x1xf32>
    %63 = vector.extract %62[0, 0, 0] : f32 from vector<1x1x1xf32>
    %64 = vector.broadcast %63 : f32 to vector<1x1xf32>
    %cst_21 = arith.constant 1.000000e-10 : f32
    %65 = vector.broadcast %cst_21 : f32 to vector<1x1xf32>
    %66 = arith.maximumf %64, %65 : vector<1x1xf32>
    %67 = tpu.reciprocal %66 {approx = true} : vector<1x1xf32> -> vector<1x1xf32>
    %cst_22 = arith.constant 1.000000e+00 : f32
    %68 = vector.broadcast %cst_22 : f32 to vector<64x1xf32>
    %69 = arith.subf %68, %8 : vector<64x1xf32>
    %cst_23 = arith.constant 1.000000e+00 : f32
    %70 = vector.broadcast %cst_23 : f32 to vector<64x1xf32>
    %71 = arith.mulf %70, %69 : vector<64x1xf32>
    %cst_24 = arith.constant 1.000000e+00 : f32
    %72 = vector.broadcast %cst_24 : f32 to vector<64x64xf32>
    %73 = arith.subf %72, %36 : vector<64x64xf32>
    %cst_25 = arith.constant 1.000000e+00 : f32
    %74 = vector.broadcast %cst_25 : f32 to vector<64x64xf32>
    %75 = arith.mulf %74, %73 : vector<64x64xf32>
    %76 = vector.broadcast %71 : vector<64x1xf32> to vector<64x64xf32>
    %77 = arith.addf %76, %75 : vector<64x64xf32>
    %78 = vector.broadcast %67 : vector<1x1xf32> to vector<64x64xf32>
    %79 = arith.mulf %57, %78 : vector<64x64xf32>
    %cst_26 = arith.constant 1.000000e+00 : f32
    %80 = vector.broadcast %cst_26 : f32 to vector<64x64xf32>
    %81 = arith.mulf %80, %79 : vector<64x64xf32>
    %82 = arith.addf %77, %81 : vector<64x64xf32>
    %cst_27 = arith.constant -1.000000e+01 : f32
    %83 = vector.broadcast %cst_27 : f32 to vector<64x64xf32>
    %84 = arith.mulf %82, %83 : vector<64x64xf32>
    %85 = math.exp %84 : vector<64x64xf32>
    %86 = vector.broadcast %14 : vector<1x64xf32> to vector<64x64xf32>
    %87 = arith.mulf %85, %86 : vector<64x64xf32>
    %cst_28 = arith.constant 1.000000e+00 : f32
    %88 = vector.broadcast %cst_28 : f32 to vector<64x1xf32>
    %cst_29 = arith.constant dense<0.000000e+00> : vector<64x1xf32>
    %89 = tpu.matmul %87, %88, %cst_29 {dimension_numbers = #tpu.dot_dimension_numbers<[1], [0], [0], [1], [0, 0, 1, 1], [], []>} : vector<64x64xf32>, vector<64x1xf32>, vector<64x1xf32> -> vector<64x1xf32>
    %cst_30 = arith.constant 1.000000e-10 : f32
    %90 = vector.broadcast %cst_30 : f32 to vector<64x1xf32>
    %91 = arith.addf %89, %90 : vector<64x1xf32>
    %92 = tpu.reciprocal %91 {approx = true} : vector<64x1xf32> -> vector<64x1xf32>
    %cst_31 = arith.constant dense<0.000000e+00> : vector<64x1xf32>
    %93 = tpu.matmul %87, %92, %cst_31 {dimension_numbers = #tpu.dot_dimension_numbers<[0], [0], [1], [1], [0, 1, 1, 1], [], []>} : vector<64x64xf32>, vector<64x1xf32>, vector<64x1xf32> -> vector<64x1xf32>
    %cst_32 = arith.constant 1.000000e-10 : f32
    %94 = vector.broadcast %cst_32 : f32 to vector<64x1xf32>
    %95 = arith.addf %93, %94 : vector<64x1xf32>
    %96 = tpu.reciprocal %95 {approx = true} : vector<64x1xf32> -> vector<64x1xf32>
    %cst_33 = arith.constant dense<0.000000e+00> : vector<64x1xf32>
    %97 = tpu.matmul %87, %96, %cst_33 {dimension_numbers = #tpu.dot_dimension_numbers<[1], [0], [0], [1], [0, 0, 1, 1], [], []>} : vector<64x64xf32>, vector<64x1xf32>, vector<64x1xf32> -> vector<64x1xf32>
    %cst_34 = arith.constant 1.000000e-10 : f32
    %98 = vector.broadcast %cst_34 : f32 to vector<64x1xf32>
    %99 = arith.addf %97, %98 : vector<64x1xf32>
    %100 = tpu.reciprocal %99 {approx = true} : vector<64x1xf32> -> vector<64x1xf32>
    %cst_35 = arith.constant dense<0.000000e+00> : vector<64x1xf32>
    %101 = tpu.matmul %87, %100, %cst_35 {dimension_numbers = #tpu.dot_dimension_numbers<[0], [0], [1], [1], [0, 1, 1, 1], [], []>} : vector<64x64xf32>, vector<64x1xf32>, vector<64x1xf32> -> vector<64x1xf32>
    %cst_36 = arith.constant 1.000000e-10 : f32
    %102 = vector.broadcast %cst_36 : f32 to vector<64x1xf32>
    %103 = arith.addf %101, %102 : vector<64x1xf32>
    %104 = tpu.reciprocal %103 {approx = true} : vector<64x1xf32> -> vector<64x1xf32>
    %cst_37 = arith.constant dense<0.000000e+00> : vector<64x1xf32>
    %105 = tpu.matmul %87, %104, %cst_37 {dimension_numbers = #tpu.dot_dimension_numbers<[1], [0], [0], [1], [0, 0, 1, 1], [], []>} : vector<64x64xf32>, vector<64x1xf32>, vector<64x1xf32> -> vector<64x1xf32>
    %cst_38 = arith.constant 1.000000e-10 : f32
    %106 = vector.broadcast %cst_38 : f32 to vector<64x1xf32>
    %107 = arith.addf %105, %106 : vector<64x1xf32>
    %108 = tpu.reciprocal %107 {approx = true} : vector<64x1xf32> -> vector<64x1xf32>
    %cst_39 = arith.constant dense<0.000000e+00> : vector<64x1xf32>
    %109 = tpu.matmul %87, %108, %cst_39 {dimension_numbers = #tpu.dot_dimension_numbers<[0], [0], [1], [1], [0, 1, 1, 1], [], []>} : vector<64x64xf32>, vector<64x1xf32>, vector<64x1xf32> -> vector<64x1xf32>
    %cst_40 = arith.constant 1.000000e-10 : f32
    %110 = vector.broadcast %cst_40 : f32 to vector<64x1xf32>
    %111 = arith.addf %109, %110 : vector<64x1xf32>
    %112 = tpu.reciprocal %111 {approx = true} : vector<64x1xf32> -> vector<64x1xf32>
    %cst_41 = arith.constant dense<0.000000e+00> : vector<64x1xf32>
    %113 = tpu.matmul %87, %112, %cst_41 {dimension_numbers = #tpu.dot_dimension_numbers<[1], [0], [0], [1], [0, 0, 1, 1], [], []>} : vector<64x64xf32>, vector<64x1xf32>, vector<64x1xf32> -> vector<64x1xf32>
    %cst_42 = arith.constant 1.000000e-10 : f32
    %114 = vector.broadcast %cst_42 : f32 to vector<64x1xf32>
    %115 = arith.addf %113, %114 : vector<64x1xf32>
    %116 = tpu.reciprocal %115 {approx = true} : vector<64x1xf32> -> vector<64x1xf32>
    %cst_43 = arith.constant dense<0.000000e+00> : vector<64x1xf32>
    %117 = tpu.matmul %87, %116, %cst_43 {dimension_numbers = #tpu.dot_dimension_numbers<[0], [0], [1], [1], [0, 1, 1, 1], [], []>} : vector<64x64xf32>, vector<64x1xf32>, vector<64x1xf32> -> vector<64x1xf32>
    %cst_44 = arith.constant 1.000000e-10 : f32
    %118 = vector.broadcast %cst_44 : f32 to vector<64x1xf32>
    %119 = arith.addf %117, %118 : vector<64x1xf32>
    %120 = tpu.reciprocal %119 {approx = true} : vector<64x1xf32> -> vector<64x1xf32>
    %cst_45 = arith.constant dense<0.000000e+00> : vector<64x1xf32>
    %121 = tpu.matmul %87, %120, %cst_45 {dimension_numbers = #tpu.dot_dimension_numbers<[1], [0], [0], [1], [0, 0, 1, 1], [], []>} : vector<64x64xf32>, vector<64x1xf32>, vector<64x1xf32> -> vector<64x1xf32>
    %cst_46 = arith.constant 1.000000e-10 : f32
    %122 = vector.broadcast %cst_46 : f32 to vector<64x1xf32>
    %123 = arith.addf %121, %122 : vector<64x1xf32>
    %124 = tpu.reciprocal %123 {approx = true} : vector<64x1xf32> -> vector<64x1xf32>
    %cst_47 = arith.constant dense<0.000000e+00> : vector<64x1xf32>
    %125 = tpu.matmul %87, %124, %cst_47 {dimension_numbers = #tpu.dot_dimension_numbers<[0], [0], [1], [1], [0, 1, 1, 1], [], []>} : vector<64x64xf32>, vector<64x1xf32>, vector<64x1xf32> -> vector<64x1xf32>
    %cst_48 = arith.constant 1.000000e-10 : f32
    %126 = vector.broadcast %cst_48 : f32 to vector<64x1xf32>
    %127 = arith.addf %125, %126 : vector<64x1xf32>
    %128 = tpu.reciprocal %127 {approx = true} : vector<64x1xf32> -> vector<64x1xf32>
    %cst_49 = arith.constant dense<0.000000e+00> : vector<64x1xf32>
    %129 = tpu.matmul %87, %128, %cst_49 {dimension_numbers = #tpu.dot_dimension_numbers<[1], [0], [0], [1], [0, 0, 1, 1], [], []>} : vector<64x64xf32>, vector<64x1xf32>, vector<64x1xf32> -> vector<64x1xf32>
    %cst_50 = arith.constant 1.000000e-10 : f32
    %130 = vector.broadcast %cst_50 : f32 to vector<64x1xf32>
    %131 = arith.addf %129, %130 : vector<64x1xf32>
    %132 = tpu.reciprocal %131 {approx = true} : vector<64x1xf32> -> vector<64x1xf32>
    %cst_51 = arith.constant dense<0.000000e+00> : vector<64x1xf32>
    %133 = tpu.matmul %87, %132, %cst_51 {dimension_numbers = #tpu.dot_dimension_numbers<[0], [0], [1], [1], [0, 1, 1, 1], [], []>} : vector<64x64xf32>, vector<64x1xf32>, vector<64x1xf32> -> vector<64x1xf32>
    %cst_52 = arith.constant 1.000000e-10 : f32
    %134 = vector.broadcast %cst_52 : f32 to vector<64x1xf32>
    %135 = arith.addf %133, %134 : vector<64x1xf32>
    %136 = tpu.reciprocal %135 {approx = true} : vector<64x1xf32> -> vector<64x1xf32>
    %cst_53 = arith.constant dense<0.000000e+00> : vector<64x1xf32>
    %137 = tpu.matmul %87, %136, %cst_53 {dimension_numbers = #tpu.dot_dimension_numbers<[1], [0], [0], [1], [0, 0, 1, 1], [], []>} : vector<64x64xf32>, vector<64x1xf32>, vector<64x1xf32> -> vector<64x1xf32>
    %cst_54 = arith.constant 1.000000e-10 : f32
    %138 = vector.broadcast %cst_54 : f32 to vector<64x1xf32>
    %139 = arith.addf %137, %138 : vector<64x1xf32>
    %140 = tpu.reciprocal %139 {approx = true} : vector<64x1xf32> -> vector<64x1xf32>
    %cst_55 = arith.constant dense<0.000000e+00> : vector<64x1xf32>
    %141 = tpu.matmul %87, %140, %cst_55 {dimension_numbers = #tpu.dot_dimension_numbers<[0], [0], [1], [1], [0, 1, 1, 1], [], []>} : vector<64x64xf32>, vector<64x1xf32>, vector<64x1xf32> -> vector<64x1xf32>
    %cst_56 = arith.constant 1.000000e-10 : f32
    %142 = vector.broadcast %cst_56 : f32 to vector<64x1xf32>
    %143 = arith.addf %141, %142 : vector<64x1xf32>
    %144 = tpu.reciprocal %143 {approx = true} : vector<64x1xf32> -> vector<64x1xf32>
    %cst_57 = arith.constant dense<0.000000e+00> : vector<64x1xf32>
    %145 = tpu.matmul %87, %144, %cst_57 {dimension_numbers = #tpu.dot_dimension_numbers<[1], [0], [0], [1], [0, 0, 1, 1], [], []>} : vector<64x64xf32>, vector<64x1xf32>, vector<64x1xf32> -> vector<64x1xf32>
    %cst_58 = arith.constant 1.000000e-10 : f32
    %146 = vector.broadcast %cst_58 : f32 to vector<64x1xf32>
    %147 = arith.addf %145, %146 : vector<64x1xf32>
    %148 = tpu.reciprocal %147 {approx = true} : vector<64x1xf32> -> vector<64x1xf32>
    %cst_59 = arith.constant dense<0.000000e+00> : vector<64x1xf32>
    %149 = tpu.matmul %87, %148, %cst_59 {dimension_numbers = #tpu.dot_dimension_numbers<[0], [0], [1], [1], [0, 1, 1, 1], [], []>} : vector<64x64xf32>, vector<64x1xf32>, vector<64x1xf32> -> vector<64x1xf32>
    %cst_60 = arith.constant 1.000000e-10 : f32
    %150 = vector.broadcast %cst_60 : f32 to vector<64x1xf32>
    %151 = arith.addf %149, %150 : vector<64x1xf32>
    %152 = tpu.reciprocal %151 {approx = true} : vector<64x1xf32> -> vector<64x1xf32>
    %cst_61 = arith.constant dense<0.000000e+00> : vector<64x1xf32>
    %153 = tpu.matmul %87, %152, %cst_61 {dimension_numbers = #tpu.dot_dimension_numbers<[1], [0], [0], [1], [0, 0, 1, 1], [], []>} : vector<64x64xf32>, vector<64x1xf32>, vector<64x1xf32> -> vector<64x1xf32>
    %cst_62 = arith.constant 1.000000e-10 : f32
    %154 = vector.broadcast %cst_62 : f32 to vector<64x1xf32>
    %155 = arith.addf %153, %154 : vector<64x1xf32>
    %156 = tpu.reciprocal %155 {approx = true} : vector<64x1xf32> -> vector<64x1xf32>
    %cst_63 = arith.constant dense<0.000000e+00> : vector<64x1xf32>
    %157 = tpu.matmul %87, %156, %cst_63 {dimension_numbers = #tpu.dot_dimension_numbers<[0], [0], [1], [1], [0, 1, 1, 1], [], []>} : vector<64x64xf32>, vector<64x1xf32>, vector<64x1xf32> -> vector<64x1xf32>
    %cst_64 = arith.constant 1.000000e-10 : f32
    %158 = vector.broadcast %cst_64 : f32 to vector<64x1xf32>
    %159 = arith.addf %157, %158 : vector<64x1xf32>
    %160 = tpu.reciprocal %159 {approx = true} : vector<64x1xf32> -> vector<64x1xf32>
    %cst_65 = arith.constant dense<0.000000e+00> : vector<64x1xf32>
    %161 = tpu.matmul %87, %160, %cst_65 {dimension_numbers = #tpu.dot_dimension_numbers<[1], [0], [0], [1], [0, 0, 1, 1], [], []>} : vector<64x64xf32>, vector<64x1xf32>, vector<64x1xf32> -> vector<64x1xf32>
    %cst_66 = arith.constant 1.000000e-10 : f32
    %162 = vector.broadcast %cst_66 : f32 to vector<64x1xf32>
    %163 = arith.addf %161, %162 : vector<64x1xf32>
    %164 = tpu.reciprocal %163 {approx = true} : vector<64x1xf32> -> vector<64x1xf32>
    %cst_67 = arith.constant dense<0.000000e+00> : vector<64x1xf32>
    %165 = tpu.matmul %87, %164, %cst_67 {dimension_numbers = #tpu.dot_dimension_numbers<[0], [0], [1], [1], [0, 1, 1, 1], [], []>} : vector<64x64xf32>, vector<64x1xf32>, vector<64x1xf32> -> vector<64x1xf32>
    %cst_68 = arith.constant 1.000000e-10 : f32
    %166 = vector.broadcast %cst_68 : f32 to vector<64x1xf32>
    %167 = arith.addf %165, %166 : vector<64x1xf32>
    %168 = tpu.reciprocal %167 {approx = true} : vector<64x1xf32> -> vector<64x1xf32>
    %169 = vector.broadcast %164 : vector<64x1xf32> to vector<64x128xf32>
    %170 = arith.mulf %2, %169 : vector<64x128xf32>
    %cst_69 = arith.constant dense<0.000000e+00> : vector<64x128xf32>
    %171 = tpu.matmul %87, %170, %cst_69 {dimension_numbers = #tpu.dot_dimension_numbers<[0], [0], [1], [1], [0, 1, 1, 1], [], []>} : vector<64x64xf32>, vector<64x128xf32>, vector<64x128xf32> -> vector<64x128xf32>
    %172 = vector.broadcast %168 : vector<64x1xf32> to vector<64x128xf32>
    %173 = arith.mulf %171, %172 : vector<64x128xf32>
    %174 = vector.extract_strided_slice %173 {offsets = [0, 4], sizes = [64, 1], strides = [1, 1]} : vector<64x128xf32> to vector<64x1xf32>
    %cst_70 = arith.constant 5.000000e-02 : f32
    %175 = vector.broadcast %cst_70 : f32 to vector<64x1xf32>
    %176 = arith.cmpf ogt, %174, %175 : vector<64x1xf32>
    %177 = arith.extui %176 : vector<64x1xi1> to vector<64x1xi32>
    %178 = arith.sitofp %177 : vector<64x1xi32> to vector<64x1xf32>
    %179 = vector.broadcast %178 : vector<64x1xf32> to vector<64x128xf32>
    %180 = arith.mulf %173, %179 : vector<64x128xf32>
    %c0_71 = arith.constant 0 : index
    %c0_72 = arith.constant 0 : index
    %181 = vector.load %arg5[%c0_71, %c0_72] : memref<128x128xf32, #tpu.memory_space<vmem>>, vector<128x128xf32>
    %cst_73 = arith.constant dense<0.000000e+00> : vector<64x128xf32>
    %182 = tpu.matmul %180, %181, %cst_73 {dimension_numbers = #tpu.dot_dimension_numbers<[1], [0], [0], [1], [0, 0, 1, 1], [], []>} : vector<64x128xf32>, vector<128x128xf32>, vector<64x128xf32> -> vector<64x128xf32>
    %c0_74 = arith.constant 0 : index
    %c0_75 = arith.constant 0 : index
    %183 = vector.load %arg6[%c0_74, %c0_75] : memref<1x128xf32, #tpu.memory_space<vmem>>, vector<1x128xf32>
    %184 = vector.broadcast %183 : vector<1x128xf32> to vector<64x128xf32>
    %185 = arith.addf %182, %184 : vector<64x128xf32>
    %186 = vector.broadcast %19 : vector<64x1xf32> to vector<64x128xf32>
    %187 = arith.mulf %185, %186 : vector<64x128xf32>
    %c0_76 = arith.constant 0 : index
    %c0_77 = arith.constant 0 : index
    %c0_78 = arith.constant 0 : index
    %188 = vector.load %arg7[%c0_76, %c0_77, %c0_78] : memref<1x64x128xf32, #tpu.memory_space<vmem>>, vector<1x64x128xf32>
    %189 = vector.shape_cast %188 : vector<1x64x128xf32> to vector<64x128xf32>
    %190 = vector.shape_cast %187 : vector<64x128xf32> to vector<1x64x128xf32>
    tpu.vector_store %arg7[%c0_76, %c0_77, %c0_78], %190 {strides = array<i32>} : memref<1x64x128xf32, #tpu.memory_space<vmem>>, vector<1x64x128xf32>,
    return
  }
  func.func @transform_0(%arg0: i32, %arg1: memref<1xi32, #tpu.memory_space<smem>>) -> (i32, i32, i32) {
    %c0_i32 = arith.constant 0 : i32
    %c0_i32_0 = arith.constant 0 : i32
    %c0_i32_1 = arith.constant 0 : i32
    return %arg0, %c0_i32, %c0_i32_0 : i32, i32, i32
  }
  func.func @transform_1(%arg0: i32, %arg1: memref<1xi32, #tpu.memory_space<smem>>) -> (i32, i32, i32) {
    %c0_i32 = arith.constant 0 : i32
    %c0_i32_0 = arith.constant 0 : i32
    %c0_i32_1 = arith.constant 0 : i32
    return %arg0, %c0_i32, %c0_i32_0 : i32, i32, i32
  }
  func.func @transform_2(%arg0: i32, %arg1: memref<1xi32, #tpu.memory_space<smem>>) -> (i32, i32, i32) {
    %c0_i32 = arith.constant 0 : i32
    %c0_i32_0 = arith.constant 0 : i32
    %c0_i32_1 = arith.constant 0 : i32
    return %arg0, %c0_i32, %c0_i32_0 : i32, i32, i32
  }
  func.func @transform_3(%arg0: i32, %arg1: memref<1xi32, #tpu.memory_space<smem>>) -> (i32, i32) {
    %c0_i32 = arith.constant 0 : i32
    %c0_i32_0 = arith.constant 0 : i32
    %c0_i32_1 = arith.constant 0 : i32
    return %c0_i32, %c0_i32_0 : i32, i32
  }
  func.func @transform_4(%arg0: i32, %arg1: memref<1xi32, #tpu.memory_space<smem>>) -> (i32, i32) {
    %c0_i32 = arith.constant 0 : i32
    %c0_i32_0 = arith.constant 0 : i32
    %c0_i32_1 = arith.constant 0 : i32
    return %c0_i32, %c0_i32_0 : i32, i32
  }
  func.func @transform_5(%arg0: i32, %arg1: memref<1xi32, #tpu.memory_space<smem>>) -> (i32, i32, i32) {
    %c0_i32 = arith.constant 0 : i32
    %c0_i32_0 = arith.constant 0 : i32
    %c0_i32_1 = arith.constant 0 : i32
    return %arg0, %c0_i32, %c0_i32_0 : i32, i32, i32
  }
}

</mosaic_0001>

<bundles_post_ra>
// kernel: detection_model_with_dnms.2
= control target key start
LH: loop header
LB: loop body
LE: loop exit
PB: predicated region body
PF: predicated region fallthrough
CT: control target
= control target key end

     0   :  { %s1239_s21 = smov 0   ;;  %s1241_s22 = smov 0   ;;  %s1459_s0 = inlined_call_operand.vmem [shape: f32[2,64,4], index: 0, kind: input, shape index: {}]   ;;  %s1460_s1 = inlined_call_operand.vmem [shape: f32[64,4], index: 1, kind: input, shape index: {}]   ;;  %s1461_s2 = inlined_call_operand.vmem [shape: f32[4,16], index: 2, kind: input, shape index: {}]   ;;  %s1462_s3 = inlined_call_operand.vmem [shape: f32[1,16], index: 3, kind: input, shape index: {}]   ;;  %s1463_s4 = inlined_call_operand.vmem [shape: f32[16,128], index: 4, kind: input, shape index: {}]   ;;  %s1464_s5 = inlined_call_operand.vmem [shape: f32[1,128], index: 5, kind: input, shape index: {}]   ;;  %s1465_s6 = inlined_call_operand.vmem [shape: f32[2,64,128], index: 6, kind: output, shape index: {}]  }
   0x1   :  { %s1243_s23 = smov 0  }
   0x2 LB: > { %s28_s24 = sadd.s32 1, %s1196_s22  ;;  %p994_p0 = scmp.ge.s32.totalorder %s1200_s23, 1  ;;  %s1200_s23 = sphi %s1243_s23, %s16_s23   ;;  %s1196_s22 = sphi %s1241_s22, %s1467_s22   ;;  %s1192_s21 = sphi %s1239_s21, %s1466_s21  }
   0x3   : > { %p30_p1 = scmp.ge.s32.totalorder %s28_s24, 2  ;;  %p244_p2 = scmp.lt.s32.totalorder %s1200_s23, 3 }
   0x5   : > { %s1469_s24 = smov (%p30_p1, %s28_s24), 0  ;;  %p245_p3 = pnand %p994_p0, %p244_p2 }
   0x6   : > { %v321_v0 = vld [vmem:[%s1461_s2] sm:$0xf] (!%p245_p3)  ;;  %vm354_vm0 = vcmask (!%p245_p3), 1043456   ;;  %p288_p4 = scmp.lt.s32.totalorder (!%p245_p3), %s1192_s21, 1  ;;  %v472_v2 = vld [vmem:[%s1463_s4 + $0x8] sm:$0xff] (!%p245_p3)  ;;  %vm329_vm1 = vcmask (!%p245_p3), 31744   ;;  %v610_v12 = vlaneseq (!%p245_p3) }
   0x7   : > { %248 = sbr.rel (%p245_p3) target bundleno = 624 (0x270), region = 44  ;;  %v471_v1 = vld [vmem:[%s1463_s4] sm:$0xff] (!%p245_p3)  ;;  %1068 = vmatprep.subr.msk.mxu0 (!%p245_p3), %vm354_vm0, %v321_v0  ;;  %1116 = vmatprep.subr.msk.mxu1 (!%p245_p3), %vm354_vm0, %v321_v0  ;;  %v1202_v15 = vmov (!%p245_p3), 0.0   ;;  %v618_v18 = vld [vmem:[%s1460_s1 + $0x8] sm:$0xff] (!%p245_p3)  ;;  %v619_v19 = vld [vmem:[%s1460_s1 + $0x10] sm:$0xff] (!%p245_p3)  ;;  %vm480_vm3 = vcmask (!%p245_p3), 130048  }
   0x8   : > { %1069 = vmatpush3.msk.msra.mxu0 (!%p245_p3), %vm354_vm0, %v321_v0  ;;  %1117 = vmatpush3.msk.msra.mxu1 (!%p245_p3), %vm354_vm0, %v321_v0  ;;  %v1112_v3 = vpack.c.bf16 (!%p245_p3), %v472_v2, %v471_v1  ;;  %v611_v13 = vshrl.u32 (!%p245_p3), %v610_v12, 7  ;;  %v1286_v14 = vand.u32 (!%p245_p3), 127, %v610_v12  ;;  %v617_v17 = vld [vmem:[%s1460_s1] sm:$0xff] (!%p245_p3)  ;;  %v620_v20 = vld [vmem:[%s1460_s1 + $0x18] sm:$0xff] (!%p245_p3)  ;;  %v622_v22 = vld [vmem:[%s1460_s1 + $0x28] sm:$0xff] (!%p245_p3)  ;;  %v1203_v58 = vmov (!%p245_p3), 4  }
   0x9   : > { %v621_v21 = vld [vmem:[%s1460_s1 + $0x20] sm:$0xff] (!%p245_p3)  ;;  %v623_v23 = vld [vmem:[%s1460_s1 + $0x30] sm:$0xff] (!%p245_p3)  ;;  %v624_v24 = vld [vmem:[%s1460_s1 + $0x38] sm:$0xff] (!%p245_p3)  ;;  %1144 = vset.pattern.permute.xlu0 (!%p245_p3), %v1203_v58  ;;  %1145 = vset.pattern.permute.xlu1 (!%p245_p3), %v1203_v58 }
   0xa   : > { %1113 = vmatprep.subr.bf16.mxu1 (!%p245_p3), %v1112_v3  ;;  %vm614_vm2 = vcmp.eq.s32.totalorder (!%p245_p3), %v611_v13, %v1286_v14  ;;  %v999_v25 = vld [vmem:[%s1462_s3] ss:$0 sm:$0xff] (!%p245_p3)  ;;  %vm854_vm4 = vcmp.eq.s32.totalorder (!%p245_p3), %v1286_v14, 4  ;;  %vm845_vm5 = vcmp.lt.s32.totalorder (!%p245_p3), %v1286_v14, 4 }
   0xb   : > { %v1018_v16 = vsel (!%p245_p3), %vm614_vm2, 1.0, %v1202_v15  ;;  %v1009_v59 = vld [vmem:[%s1464_s5] ss:$0 sm:$0xff] (!%p245_p3) }
   0xc   : > { %1098 = vmatprep.subr.msk.mxu0 (!%p245_p3), %vm354_vm0, %v1018_v16 }
   0xe   : > { %s1471_s21 = smov (!%p288_p4, %s1192_s21), 1 }
   0xf   : > { %s1038_s7 = sshll.u32 %s1471_s21, 6 }
  0x10   : > { %s295_s10 = scalar_lea.vmem %s1459_s0, %s1038_s7  ;;  %s1393_s14 = scalar_lea.vmem %s1465_s6, %s1038_s7 }
  0x11   : > { %v313_v4 = vld [vmem:[%s295_s10] sm:$0xff]  ;;  %v314_v5 = vld [vmem:[%s295_s10 + $0x8] sm:$0xff]  ;;  %v315_v6 = vld [vmem:[%s295_s10 + $0x10] sm:$0xff] }
  0x12   : > { %1070 = vmatprep.mubr.msk.f32.mxu0 %vm329_vm1, %v313_v4  ;;  %v317_v7 = vld [vmem:[%s295_s10 + $0x20] sm:$0xff]  ;;  %v318_v8 = vld [vmem:[%s295_s10 + $0x28] sm:$0xff]  ;;  %v319_v9 = vld [vmem:[%s295_s10 + $0x30] sm:$0xff] }
  0x13   : > { %1071 = vmatmul.mubr.msk.f32.vlgmr.msra.gmra.mrb[0].mxu0 %vm329_vm1, %v314_v5  ;;  %1076 = vmatprep.mubr.msk.f32.mxu1 %vm329_vm1, %v317_v7  ;;  %v316_v10 = vld [vmem:[%s295_s10 + $0x18] sm:$0xff] }
  0x14   : > { %1073 = vmatprep.mubr.msk.f32.mxu0 %vm329_vm1, %v315_v6  ;;  %1077 = vmatmul.mubr.msk.f32.vlgmr.msra.gmra.mrb[0].mxu1 %vm329_vm1, %v318_v8  ;;  %v320_v11 = vld [vmem:[%s295_s10 + $0x38] sm:$0xff] }
  0x15   : > { %1079 = vmatprep.mubr.msk.f32.mxu1 %vm329_vm1, %v319_v9  ;;  %1115 = vmatpush3.bf16.msra.mxu1 %v1112_v3 }
  0x16   : > { %1099 = vmatpush3.msk.msra.mxu0 %vm354_vm0, %v1018_v16 }
  0x17   : > { %1074 = vmatmul.mubr.msk.f32.gmra.mrb[2].mxu0 %vm329_vm1, %v316_v10 }
  0x18   : > { %1080 = vmatmul.mubr.msk.f32.gmra.mrb[2].mxu1 %vm329_vm1, %v320_v11  ;;  %1100 = vmatprep.mubr.msk.f32.mxu0 %vm329_vm1, %v617_v17 }
  0x1b   : > { %1101 = vmatmul.mubr.msk.f32.vlgmr.msra.gmra.mrb[4].mxu0 %vm329_vm1, %v618_v18 }
  0x1c   : > { %1103 = vmatprep.mubr.msk.f32.mxu0 %vm329_vm1, %v619_v19 }
  0x1f   : > { %1104 = vmatmul.mubr.msk.f32.gmra.mrb[6].mxu0 %vm329_vm1, %v620_v20 }
  0x20   : > { %1106 = vmatprep.mubr.msk.f32.mxu0 %vm329_vm1, %v621_v21 }
  0x23   : > { %1107 = vmatmul.mubr.msk.f32.gmra.mrb[8].mxu0 %vm329_vm1, %v622_v22 }
  0x24   : > { %1109 = vmatprep.mubr.msk.f32.mxu0 %vm329_vm1, %v623_v23 }
  0x27   : > { %1110 = vmatmul.mubr.msk.f32.gmra.mrb[10].mxu0 %vm329_vm1, %v624_v24 }
  0xe6   : > { %v1072_v26 = vpop.f32.mrb[0].mxu0 }
  0xe7   : > { %v430_v27 = vadd.f32 %v1072_v26, %v999_v25  ;;  %v424_v28 = vpop.f32.mrb[1].mxu0  ;;  %v1078_v29 = vpop.f32.mrb[0].mxu1 }
  0xe8   : > { %v425_v30 = vadd.f32 %v999_v25, %v424_v28  ;;  %v444_v31 = vpop.f32.mrb[1].mxu1  ;;  %v450_v41 = vadd.f32 %v1078_v29, %v999_v25 }
  0xe9   : > { %v445_v34 = vadd.f32 %v999_v25, %v444_v31  ;;  %v464_v35 = vmax.f32 %v430_v27, 0.0 }
  0xea   : > { %v463_v32 = vmax.f32 %v425_v30, 0.0  ;;  %v1075_v33 = vpop.f32.mrb[2].mxu0  ;;  %v468_v46 = vmax.f32 %v450_v41, 0.0 }
  0xeb   : > { %v440_v36 = vadd.f32 %v1075_v33, %v999_v25  ;;  %v434_v37 = vpop.f32.mrb[3].mxu0  ;;  %v1081_v38 = vpop.f32.mrb[2].mxu1  ;;  %v467_v43 = vmax.f32 %v445_v34, 0.0 }
  0xec   : > { %v435_v39 = vadd.f32 %v999_v25, %v434_v37  ;;  %1086 = vmatprep.mubr.msk.f32.mxu1 %vm480_vm3, %v463_v32  ;;  %v454_v40 = vpop.f32.mrb[3].mxu1  ;;  %v460_v47 = vadd.f32 %v1081_v38, %v999_v25 }
  0xed   : > { %1087 = vmatmul.mubr.msk.f32.vlgmr.msra.gmra.mrb[4].mxu1 %vm480_vm3, %v464_v35  ;;  %v455_v44 = vadd.f32 %v999_v25, %v454_v40  ;;  %v466_v45 = vmax.f32 %v440_v36, 0.0 }
  0xee   : > { %v465_v42 = vmax.f32 %v435_v39, 0.0  ;;  %v470_v49 = vmax.f32 %v460_v47, 0.0  ;;  %v1102_v50 = vpop.f32.mrb[4].mxu0 }
  0xef   : > { %v469_v48 = vmax.f32 %v455_v44, 0.0  ;;  %v718_v51 = vpop.f32.mrb[5].mxu0 }
  0xf0   : > { %1089 = vmatprep.mubr.msk.f32.mxu1 %vm480_vm3, %v465_v42 }
  0xf1   : > { %1090 = vmatmul.mubr.msk.f32.gmra.mrb[6].mxu1 %vm480_vm3, %v466_v45 }
  0xf2   : > { %1092 = vmatprep.mubr.msk.f32.mxu1 %vm480_vm3, %v467_v43  ;;  %v1105_v52 = vpop.f32.mrb[6].mxu0 }
  0xf3   : > { %v728_v53 = vpop.f32.mrb[7].mxu0 }
  0xf5   : > { %1093 = vmatmul.mubr.msk.f32.gmra.mrb[8].mxu1 %vm480_vm3, %v468_v46 }
  0xf6   : > { %1095 = vmatprep.mubr.msk.f32.mxu1 %vm480_vm3, %v469_v48  ;;  %v1108_v54 = vpop.f32.mrb[8].mxu0 }
  0xf7   : > { %v738_v55 = vpop.f32.mrb[9].mxu0 }
  0xf9   : > { %1096 = vmatmul.mubr.msk.f32.gmra.mrb[10].mxu1 %vm480_vm3, %v470_v49 }
  0xfa   : > { %v1111_v56 = vpop.f32.mrb[10].mxu0 }
  0xfb   : > { %v748_v57 = vpop.f32.mrb[11].mxu0 }
 0x1c0   : > { %v1088_v60 = vpop.f32.mrb[4].mxu1 }
 0x1c1   : > { %v1337_v61 = vadd.f32 %v1088_v60, %v1009_v59  ;;  %v571_v62 = vpop.f32.mrb[5].mxu1 }
 0x1c2   : > { %v1339_v63 = vadd.f32 %v1009_v59, %v571_v62 }
 0x1c3   : > { %v1029_v0 = vmul.f32 -1.442695, %v1337_v61  ;;  %v1343_v1 = vadd.f32 %v1102_v50, %v1337_v61 }
 0x1c4   : > { %v1028_v2 = vmul.f32 -1.442695, %v1339_v63  ;;  %v1347_v3 = vadd.f32 %v718_v51, %v1339_v63  ;;  %v1091_v4 = vpop.f32.mrb[6].mxu1 }
 0x1c5   : > { %1146 = vpow2.f32 %v1029_v0  ;;  %v1349_v5 = vadd.f32 %v1091_v4, %v1009_v59  ;;  %v581_v6 = vpop.f32.mrb[7].mxu1 }
 0x1c6   : > { %1148 = vpow2.f32 %v1028_v2  ;;  %v1351_v7 = vadd.f32 %v1009_v59, %v581_v6 }
 0x1c7   : > { %v1031_v8 = vmul.f32 -1.442695, %v1349_v5  ;;  %v1355_v9 = vadd.f32 %v1105_v52, %v1349_v5  ;;  %v858_v58 = vmax.f32 %v1349_v5, 0.0 }
 0x1c8   : > { %v1030_v10 = vmul.f32 -1.442695, %v1351_v7  ;;  %v1359_v11 = vadd.f32 %v728_v53, %v1351_v7  ;;  %v1094_v12 = vpop.f32.mrb[8].mxu1  ;;  %v856_v53 = vmax.f32 %v1337_v61, 0.0 }
 0x1c9   : > { %1150 = vpow2.f32 %v1031_v8  ;;  %v1361_v13 = vadd.f32 %v1094_v12, %v1009_v59  ;;  %v591_v15 = vpop.f32.mrb[9].mxu1 }
 0x1ca   : > { %1152 = vpow2.f32 %v1030_v10  ;;  %v1363_v16 = vadd.f32 %v1009_v59, %v591_v15 }
 0x1cb   : > { %v1033_v17 = vmul.f32 -1.442695, %v1361_v13  ;;  %v1367_v18 = vadd.f32 %v1108_v54, %v1361_v13 }
 0x1cc   : > { %v1032_v19 = vmul.f32 -1.442695, %v1363_v16  ;;  %v1371_v20 = vadd.f32 %v738_v55, %v1363_v16  ;;  %v1097_v21 = vpop.f32.mrb[10].mxu1  ;;  %v859_v2 = vmax.f32 %v1363_v16, 0.0 }
 0x1cd   : > { %1154 = vpow2.f32 %v1033_v17  ;;  %v1373_v22 = vadd.f32 %v1097_v21, %v1009_v59  ;;  %v601_v23 = vpop.f32.mrb[11].mxu1 }
 0x1ce   : > { %1156 = vpow2.f32 %v1032_v19  ;;  %v1375_v24 = vadd.f32 %v1009_v59, %v601_v23 }
 0x1cf   : > { %v1147_v25 = vpop.eup %1146  ;;  %v1035_v26 = vmul.f32 -1.442695, %v1373_v22  ;;  %v1379_v27 = vadd.f32 %v1111_v56, %v1373_v22  ;;  %v862_v16 = vmax.f32 %v1373_v22, 0.0 }
 0x1d0   : > { %v1149_v28 = vpop.eup %1148  ;;  %v782_v29 = vadd.f32 1.0, %v1147_v25  ;;  %v1034_v30 = vmul.f32 -1.442695, %v1375_v24  ;;  %v1383_v31 = vadd.f32 %v748_v57, %v1375_v24  ;;  %v855_v57 = vmax.f32 %v1339_v63, 0.0 }
 0x1d1   : > { %v781_v32 = vadd.f32 1.0, %v1149_v28  ;;  %1158 = vpow2.f32 %v1035_v26  ;;  %v861_v15 = vmax.f32 %v1375_v24, 0.0 }
 0x1d2   : > { %1160 = vrcp.f32 %v782_v29 }
 0x1d3   : > { %v1151_v33 = vpop.eup %1150  ;;  %1162 = vpow2.f32 %v1034_v30 }
 0x1d4   : > { %v1153_v34 = vpop.eup %1152  ;;  %v784_v35 = vadd.f32 1.0, %v1151_v33  ;;  %1164 = vrcp.f32 %v781_v32 }
 0x1d5   : > { %v783_v36 = vadd.f32 1.0, %v1153_v34 }
 0x1d6   : > { %1166 = vrcp.f32 %v784_v35 }
 0x1d7   : > { %v1155_v37 = vpop.eup %1154  ;;  %1168 = vrcp.f32 %v783_v36 }
 0x1d8   : > { %v1157_v38 = vpop.eup %1156  ;;  %v786_v40 = vadd.f32 1.0, %v1155_v37 }
 0x1d9   : > { %v785_v39 = vadd.f32 1.0, %v1157_v38 }
 0x1db   : > { %v1159_v41 = vpop.eup %1158  ;;  %1170 = vrcp.f32 %v785_v39 }
 0x1dc   : > { %v1161_v42 = vpop.eup %1160  ;;  %1172 = vrcp.f32 %v786_v40  ;;  %v788_v44 = vadd.f32 1.0, %v1159_v41 }
 0x1dd   : > { %812 = vperm.xlu0 %1144, %v1161_v42   ;;  %v1163_v43 = vpop.eup %1162 }
 0x1de   : > { %v1165_v45 = vpop.eup %1164  ;;  %v787_v46 = vadd.f32 1.0, %v1163_v43 }
 0x1e0   : > { %v1167_v47 = vpop.eup %1166  ;;  %1174 = vrcp.f32 %v787_v46 }
 0x1e1   : > { %822 = vperm.xlu1 %1145, %v1167_v47   ;;  %807 = vperm.xlu0 %1144, %v1165_v45   ;;  %1176 = vrcp.f32 %v788_v44  ;;  %v1169_v48 = vpop.eup %1168 }
 0x1e5   : > { %v1171_v49 = vpop.eup %1170  ;;  %817 = vperm.xlu1 %1145, %v1169_v48  }
 0x1e6   : > { %827 = vperm.xlu0 %1144, %v1171_v49   ;;  %v1173_v50 = vpop.eup %1172 }
 0x1e9   : > { %832 = vperm.xlu1 %1145, %v1173_v50  }
 0x1ea   : > { %v1175_v51 = vpop.eup %1174 }
 0x1eb   : > { %v1177_v52 = vpop.eup %1176  ;;  %837 = vperm.xlu0 %1144, %v1175_v51  }
 0x1ed   : > { %842 = vperm.xlu1 %1145, %v1177_v52  }
 0x25c   : > { %v813_v54 = vpop.permute.xlu0 %812 }
 0x25d   : > { %v864_v55 = vsel %vm854_vm4, %v813_v54, %v856_v53 }
 0x25e   : > { %v872_v56 = vsel %vm845_vm5, %v1343_v1, %v864_v55  ;;  %v857_v1 = vmax.f32 %v1351_v7, 0.0 }
 0x25f   : > { %880 = vst [vmem:[%s1393_s14 + $0x8] sm:$0xff] %v872_v56 }
 0x260   : > { %v823_v59 = vpop.permute.xlu1 %822  ;;  %v808_v60 = vpop.permute.xlu0 %807 }
 0x261   : > { %v866_v61 = vsel %vm854_vm4, %v823_v59, %v858_v58  ;;  %v863_v62 = vsel %vm854_vm4, %v808_v60, %v855_v57 }
 0x262   : > { %v874_v0 = vsel %vm845_vm5, %v1355_v9, %v866_v61  ;;  %v871_v63 = vsel %vm845_vm5, %v1347_v3, %v863_v62  ;;  %v860_v3 = vmax.f32 %v1361_v13, 0.0 }
 0x263   : > { %882 = vst [vmem:[%s1393_s14 + $0x18] sm:$0xff] %v874_v0  ;;  %879 = vst [vmem:[%s1393_s14] sm:$0xff] %v871_v63 }
 0x264   : > { %v818_v4 = vpop.permute.xlu1 %817 }
 0x265   : > { %v865_v5 = vsel %vm854_vm4, %v818_v4, %v857_v1  ;;  %v828_v6 = vpop.permute.xlu0 %827 }
 0x266   : > { %v873_v8 = vsel %vm845_vm5, %v1359_v11, %v865_v5  ;;  %v867_v9 = vsel %vm854_vm4, %v828_v6, %v859_v2 }
 0x267   : > { %881 = vst [vmem:[%s1393_s14 + $0x10] sm:$0xff] %v873_v8  ;;  %v875_v7 = vsel %vm845_vm5, %v1371_v20, %v867_v9 }
 0x268   : > { %883 = vst [vmem:[%s1393_s14 + $0x20] sm:$0xff] %v875_v7  ;;  %v833_v10 = vpop.permute.xlu1 %832 }
 0x269   : > { %v868_v12 = vsel %vm854_vm4, %v833_v10, %v860_v3 }
 0x26a   : > { %v876_v11 = vsel %vm845_vm5, %v1367_v18, %v868_v12  ;;  %v838_v13 = vpop.permute.xlu0 %837 }
 0x26b   : > { %884 = vst [vmem:[%s1393_s14 + $0x28] sm:$0xff] %v876_v11  ;;  %v869_v17 = vsel %vm854_vm4, %v838_v13, %v861_v15 }
 0x26c   : > { %v843_v19 = vpop.permute.xlu1 %842  ;;  %v877_v20 = vsel %vm845_vm5, %v1383_v31, %v869_v17 }
 0x26d   : > { %v870_v21 = vsel %vm854_vm4, %v843_v19, %v862_v16  ;;  %885 = vst [vmem:[%s1393_s14 + $0x30] sm:$0xff] %v877_v20 }
 0x26e   : > { %v878_v18 = vsel %vm845_vm5, %v1379_v27, %v870_v21 }
 0x26f   : > { %886 = vst [vmem:[%s1393_s14 + $0x38] sm:$0xff] %v878_v18 }
 0x270 PF: > { %s16_s23 = sadd.s32 1, %s1200_s23   ;;  %s1466_s21 = smov %s1196_s22 }
 0x271   : > { %p13_p5 = scmp.ge.s32.totalorder %s16_s23, 4   ;;  %s1467_s22 = smov %s1469_s24 }
 0x273   :  { %15 = sbr.rel (!%p13_p5) target bundleno = 2 (0x2), region = 77 }

// kernel: detection_model_with_dnms.3
= control target key start
LH: loop header
LB: loop body
LE: loop exit
PB: predicated region body
PF: predicated region fallthrough
CT: control target
= control target key end

     0   :  { %s6330_s23 = smov 0   ;;  %s7294_s0 = inlined_call_operand.<no memory space> [shape: s32[1], index: 0, kind: input, shape index: {}]   ;;  %s7295_s1 = inlined_call_operand.vmem [shape: f32[2,64,128], index: 1, kind: input, shape index: {}]   ;;  %s7296_s2 = inlined_call_operand.vmem [shape: f32[2,64,32], index: 2, kind: input, shape index: {}]   ;;  %s7297_s3 = inlined_call_operand.vmem [shape: f32[2,64,2], index: 3, kind: input, shape index: {}]   ;;  %s7298_s4 = inlined_call_operand.vmem [shape: f32[128,128], index: 4, kind: input, shape index: {}]   ;;  %s7299_s5 = inlined_call_operand.vmem [shape: f32[1,128], index: 5, kind: input, shape index: {}]   ;;  %s7300_s6 = inlined_call_operand.vmem [shape: f32[2,64,128], index: 6, kind: output, shape index: {}]  }
   0x1   :  { %11 = sst [smem:[#allocation3]] %s7294_s0 }
   0x2 LB: > { %s4060_s24 = sadd.s32 4294967295, %s6281_s23   ;;  %p4064_p0 = scmp.ge.s32.totalorder %s6281_s23, 1  ;;  %s6281_s23 = sphi %s6330_s23, %s17_s23  }
   0x3   : > { %p209_p1 = scmp.lt.s32.totalorder %s6281_s23, 3 }
   0x5   : > { %p210_p2 = pnand %p4064_p0, %p209_p1 }
   0x6   : > { %p247_p3 = scmp.lt.s32.totalorder (!%p210_p2), %s4060_s24, 1  ;;  %s6283_s28 = smov (!%p210_p2), 123   ;;  %vm371_vm0 = vcmask (!%p210_p2), 261120   ;;  %vm701_vm1 = vcmask (!%p210_p2), 15360   ;;  %v6284_v56 = vmov (!%p210_p2), 0.0|0.0   ;;  %vm6285_vm3 = vmmov (!%p210_p2), 0  }
   0x7   : > { %213 = sbr.rel (%p210_p2) target bundleno = 6314 (0x18aa), region = 40  ;;  %5438 = vmatprep.subr.bf16.mxu1 (!%p210_p2), %v6284_v56  ;;  %vm6470_vm2 = vmpackc.low (!%p210_p2), %vm701_vm1, %vm701_vm1  ;;  %s6288_s11 = smov (!%p210_p2), 126  }
   0x8   : > { %vm6519_vm4 = vmpackc.low (!%p210_p2), %vm371_vm0, %vm371_vm0  ;;  %s267_s12 = sld [smem:[#allocation3]] (!%p210_p2) }
   0xe   : > { %s7306_s24 = smov (!%p247_p3, %s4060_s24), 1 }
   0xf   : > { %s6338_s25 = sshll.u32 %s7306_s24, 6 }
  0x10   : > { %s6344_s27 = scalar_lea.vmem %s7295_s1, %s6338_s25  ;;  %s6398_s7 = scalar_lea.vmem %s7296_s2, %s6338_s25 }
  0x11   : > { %v6347_v0 = vld [vmem:[%s6344_s27] sm:$0xff]  ;;  %v6350_v1 = vld [vmem:[%s6344_s27 + $0x8] sm:$0xff]  ;;  %v6353_v2 = vld [vmem:[%s6344_s27 + $0x10] sm:$0xff]  ;;  %s261_s10 = scalar_lea.vmem %s7297_s3, %s6338_s25 }
  0x12   : > { %v331_v3 = vmul.f32 %v6347_v0, %v6347_v0  ;;  %v333_v4 = vmul.f32 %v6353_v2, %v6353_v2  ;;  %v6360_v5 = vld [vmem:[%s6344_s27 + $0x18] sm:$0xff]  ;;  %v332_v6 = vmul.f32 %v6350_v1, %v6350_v1  ;;  %v6369_v8 = vld [vmem:[%s6344_s27 + $0x20] sm:$0xff]  ;;  %v6372_v9 = vld [vmem:[%s6344_s27 + $0x28] sm:$0xff] }
  0x13   : > { %v334_v7 = vmul.f32 %v6360_v5, %v6360_v5  ;;  %v335_v10 = vmul.f32 %v6369_v8, %v6369_v8  ;;  %v336_v11 = vmul.f32 %v6372_v9, %v6372_v9  ;;  %v6381_v12 = vld [vmem:[%s6344_s27 + $0x30] sm:$0xff]  ;;  %v6384_v13 = vld [vmem:[%s6344_s27 + $0x38] sm:$0xff]  ;;  %v6401_v16 = vld [vmem:[%s6398_s7 + $0x8] sm:$0xff] }
  0x14   : > { %347 = vrot.lane.b32.xlu0 %v331_v3, %s6283_s28  ;;  %351 = vrot.lane.b32.xlu1 %v333_v4, %s6283_s28  ;;  %v337_v14 = vmul.f32 %v6381_v12, %v6381_v12  ;;  %v338_v15 = vmul.f32 %v6384_v13, %v6384_v13  ;;  %v421_v17 = vmul.f32 %v6401_v16, %v6401_v16  ;;  %v6406_v20 = vld [vmem:[%s6398_s7] sm:$0xff]  ;;  %v6418_v34 = vld [vmem:[%s6398_s7 + $0x10] sm:$0xff] }
  0x15   : > { %v420_v23 = vmul.f32 %v6406_v20, %v6406_v20  ;;  %v422_v37 = vmul.f32 %v6418_v34, %v6418_v34  ;;  %v6425_v39 = vld [vmem:[%s6398_s7 + $0x18] sm:$0xff]  ;;  %v6428_v40 = vld [vmem:[%s6398_s7 + $0x20] sm:$0xff]  ;;  %v6437_v45 = vld [vmem:[%s6398_s7 + $0x28] sm:$0xff] }
  0x16   : > { %v431_v22 = vsel %vm371_vm0, %v421_v17, 0.0  ;;  %v423_v42 = vmul.f32 %v6425_v39, %v6425_v39  ;;  %v424_v44 = vmul.f32 %v6428_v40, %v6428_v40  ;;  %v6440_v46 = vld [vmem:[%s6398_s7 + $0x30] sm:$0xff]  ;;  %v425_v48 = vmul.f32 %v6437_v45, %v6437_v45  ;;  %v6449_v51 = vld [vmem:[%s6398_s7 + $0x38] sm:$0xff]  ;;  %v6460_v57 = vld [vmem:[%s261_s10] sm:$0xff] }
  0x17   : > { %v428_v28 = vsel %vm371_vm0, %v420_v23, 0.0  ;;  %v434_v43 = vsel %vm371_vm0, %v422_v37, 0.0  ;;  %v426_v50 = vmul.f32 %v6440_v46, %v6440_v46  ;;  %v427_v53 = vmul.f32 %v6449_v51, %v6449_v51  ;;  %v6462_v58 = vld [vmem:[%s261_s10 + $0x8] sm:$0xff]  ;;  %v6474_v63 = vld [vmem:[%s261_s10 + $0x10] sm:$0xff]  ;;  %v6476_v3 = vld [vmem:[%s261_s10 + $0x18] sm:$0xff] }
  0x18   : > { %349 = vrot.lane.b32.xlu0 %v332_v6, %s6283_s28  ;;  %353 = vrot.lane.b32.xlu1 %v334_v7, %s6283_s28  ;;  %v437_v47 = vsel %vm371_vm0, %v423_v42, 0.0  ;;  %v440_v49 = vsel %vm371_vm0, %v424_v44, 0.0  ;;  %v443_v52 = vsel %vm371_vm0, %v425_v48, 0.0  ;;  %v726_v59 = vmul.f32 %v6460_v57, %v6460_v57 }
  0x19   : > { %v446_v54 = vsel %vm371_vm0, %v426_v50, 0.0  ;;  %v449_v55 = vsel %vm371_vm0, %v427_v53, 0.0  ;;  %v727_v60 = vmul.f32 %v6462_v58, %v6462_v58  ;;  %v728_v4 = vmul.f32 %v6474_v63, %v6474_v63 }
  0x1a   : > { %v729_v6 = vmul.f32 %v6476_v3, %v6476_v3 }
  0x1b   : > { %v5439_v62 = vpack.c.bf16 %v727_v60, %v726_v59 }
  0x1c   : > { %355 = vrot.lane.b32.xlu0 %v335_v10, %s6283_s28  ;;  %357 = vrot.lane.b32.xlu1 %v336_v11, %s6283_s28  ;;  %v5443_v7 = vpack.c.bf16 %v729_v6, %v728_v4  ;;  %v6286_v10 = vmov 0.0   ;;  %v6485_v11 = vld [vmem:[%s261_s10 + $0x20] sm:$0xff] }
  0x1d   : > { %5441 = vmatpush3.bf16.xpose.msk.msra.mxu1 %vm6470_vm2, %v5439_v62  ;;  %4751 = vmatprep.mubr.msk.f32.mxu1 %vm6285_vm3, %v6286_v10 }
  0x1e   : > { %5442 = vmatprep.subr.bf16.mxu1 %v6284_v56 }
  0x20   : > { %359 = vrot.lane.b32.xlu0 %v337_v14, %s6283_s28  ;;  %361 = vrot.lane.b32.xlu1 %v338_v15, %s6283_s28  ;;  %v6487_v14 = vld [vmem:[%s261_s10 + $0x28] sm:$0xff]  ;;  %v730_v15 = vmul.f32 %v6485_v11, %v6485_v11 }
  0x21   : > { %v731_v17 = vmul.f32 %v6487_v14, %v6487_v14 }
  0x25   : > { %5445 = vmatpush3.bf16.xpose.msk.msra.mxu1 %vm6470_vm2, %v5443_v7 }
  0x26   : > { %5446 = vmatprep.subr.bf16.mxu1 %v6284_v56 }
  0x86   : > { %v348_v18 = vpop.permute.xlu0 %347  ;;  %v352_v19 = vpop.permute.xlu1 %351 }
  0x87   : > { %v372_v21 = vsel %vm371_vm0, %v348_v18, 0.0  ;;  %v378_v27 = vsel %vm371_vm0, %v352_v19, 0.0  ;;  %v5447_v18 = vpack.c.bf16 %v731_v17, %v730_v15  ;;  %v6495_v19 = vld [vmem:[%s261_s10 + $0x30] sm:$0xff] }
  0x88   : > { %373 = vadd.xlane.f32.xlu0 %v372_v21  ;;  %v6497_v21 = vld [vmem:[%s261_s10 + $0x38] sm:$0xff] }
  0x89   : > { %5449 = vmatpush3.bf16.xpose.msk.msra.mxu1 %vm6470_vm2, %v5447_v18  ;;  %v733_v23 = vmul.f32 %v6497_v21, %v6497_v21 }
  0x8a   : > { %v350_v24 = vpop.permute.xlu0 %349  ;;  %v354_v25 = vpop.permute.xlu1 %353  ;;  %5450 = vmatprep.subr.bf16.mxu1 %v6284_v56 }
  0x8b   : > { %v375_v26 = vsel %vm371_vm0, %v350_v24, 0.0  ;;  %v381_v31 = vsel %vm371_vm0, %v354_v25, 0.0  ;;  %v6287_v25 = vmov 1.0  }
  0x8c   : > { %432 = vadd.xlane.f32.xlu0 %v431_v22  ;;  %376 = vadd.xlane.f32.xlu1 %v375_v26  ;;  %v732_v22 = vmul.f32 %v6495_v19, %v6495_v19 }
  0x8e   : > { %v356_v29 = vpop.permute.xlu0 %355  ;;  %v358_v30 = vpop.permute.xlu1 %357  ;;  %v5451_v24 = vpack.c.bf16 %v733_v23, %v732_v22 }
  0x8f   : > { %v384_v32 = vsel %vm371_vm0, %v356_v29, 0.0  ;;  %v387_v35 = vsel %vm371_vm0, %v358_v30, 0.0 }
  0x90   : > { %379 = vadd.xlane.f32.xlu0 %v378_v27  ;;  %429 = vadd.xlane.f32.xlu1 %v428_v28 }
  0x91   : > { %5453 = vmatpush3.bf16.xpose.msk.msra.mxu1 %vm6470_vm2, %v5451_v24 }
  0x92   : > { %v360_v33 = vpop.permute.xlu0 %359  ;;  %v362_v38 = vpop.permute.xlu1 %361 }
  0x93   : > { %v390_v36 = vsel %vm371_vm0, %v360_v33, 0.0  ;;  %v393_v41 = vsel %vm371_vm0, %v362_v38, 0.0 }
  0x94   : > { %382 = vadd.xlane.f32.xlu0 %v381_v31  ;;  %385 = vadd.xlane.f32.xlu1 %v384_v32 }
  0x98   : > { %388 = vadd.xlane.f32.xlu0 %v387_v35  ;;  %391 = vadd.xlane.f32.xlu1 %v390_v36 }
  0x99   : > { %4752 = vmatmul.mubr.msk.f32.vlgmr.msra.gmra.mrb[0].mxu1 %vm701_vm1, %v6287_v25 }
  0x9c   : > { %394 = vadd.xlane.f32.xlu0 %v393_v41  ;;  %435 = vadd.xlane.f32.xlu1 %v434_v43 }
  0xa0   : > { %438 = vadd.xlane.f32.xlu0 %v437_v47  ;;  %441 = vadd.xlane.f32.xlu1 %v440_v49 }
  0xa4   : > { %444 = vadd.xlane.f32.xlu0 %v443_v52  ;;  %447 = vadd.xlane.f32.xlu1 %v446_v54 }
  0xa8   : > { %450 = vadd.xlane.f32.xlu0 %v449_v55 }
 0x115   : > { %v374_v26 = vpop.xlane.xlu0 %373 }
 0x116   : > { %v396_v27 = vmax.f32 %v374_v26, 1e-24 }
 0x118   : > { %5881 = vrsqrt.f32 %v396_v27 }
 0x119   : > { %v377_v28 = vpop.xlane.xlu1 %376  ;;  %v433_v29 = vpop.xlane.xlu0 %432 }
 0x11a   : > { %v397_v30 = vmax.f32 %v377_v28, 1e-24  ;;  %v453_v31 = vmax.f32 %v433_v29, 1e-24 }
 0x11c   : > { %5883 = vrsqrt.f32 %v397_v30 }
 0x11d   : > { %5885 = vrsqrt.f32 %v453_v31  ;;  %v430_v32 = vpop.xlane.xlu1 %429  ;;  %v380_v33 = vpop.xlane.xlu0 %379 }
 0x11e   : > { %v452_v35 = vmax.f32 %v430_v32, 1e-24  ;;  %v398_v36 = vmax.f32 %v380_v33, 1e-24 }
 0x120   : > { %5887 = vrsqrt.f32 %v452_v35 }
 0x121   : > { %5889 = vrsqrt.f32 %v398_v36  ;;  %v386_v37 = vpop.xlane.xlu1 %385  ;;  %v383_v38 = vpop.xlane.xlu0 %382 }
 0x122   : > { %v5882_v41 = vpop.eup %5881  ;;  %v400_v42 = vmax.f32 %v386_v37, 1e-24  ;;  %v399_v43 = vmax.f32 %v383_v38, 1e-24 }
 0x123   : > { %v412_v44 = vmul.f32 %v5882_v41, %v6347_v0 }
 0x124   : > { %5891 = vrsqrt.f32 %v400_v42 }
 0x125   : > { %5893 = vrsqrt.f32 %v399_v43  ;;  %v392_v47 = vpop.xlane.xlu1 %391  ;;  %484 = vrot.lane.b32.xlu1 %v412_v44, %s6283_s28  ;;  %v389_v48 = vpop.xlane.xlu0 %388 }
 0x126   : > { %v5884_v49 = vpop.eup %5883  ;;  %v402_v50 = vmax.f32 %v392_v47, 1e-24  ;;  %v401_v52 = vmax.f32 %v389_v48, 1e-24 }
 0x127   : > { %v5886_v53 = vpop.eup %5885  ;;  %v413_v54 = vmul.f32 %v5884_v49, %v6350_v1 }
 0x128   : > { %5895 = vrsqrt.f32 %v402_v50  ;;  %v469_v56 = vmul.f32 %v5886_v53, %v6401_v16 }
 0x129   : > { %5897 = vrsqrt.f32 %v401_v52  ;;  %486 = vrot.lane.b32.xlu0 %v413_v54, %s6283_s28  ;;  %653 = vrot.lane.b32.xlu1 %v6347_v0, %s6288_s11  ;;  %v395_v55 = vpop.xlane.xlu0 %394  ;;  %v436_v59 = vpop.xlane.xlu1 %435 }
 0x12a   : > { %v5888_v60 = vpop.eup %5887  ;;  %v403_v62 = vmax.f32 %v395_v55, 1e-24  ;;  %v454_v4 = vmax.f32 %v436_v59, 1e-24 }
 0x12b   : > { %v5890_v6 = vpop.eup %5889  ;;  %v468_v7 = vmul.f32 %v5888_v60, %v6406_v20  ;;  %v5460_v60 = vpack.c.bf16 %v6476_v3, %v6474_v63  ;;  %v5466_v3 = vpack.c.bf16 %v6487_v14, %v6485_v11  ;;  %v5472_v11 = vpack.c.bf16 %v6497_v21, %v6495_v19 }
 0x12c   : > { %5899 = vrsqrt.f32 %v403_v62  ;;  %v414_v15 = vmul.f32 %v5890_v6, %v6353_v2 }
 0x12d   : > { %v5414_v18 = vpack.c.bf16 %v469_v56, %v468_v7  ;;  %5901 = vrsqrt.f32 %v454_v4  ;;  %v439_v22 = vpop.xlane.xlu0 %438  ;;  %v442_v16 = vpop.xlane.xlu1 %441 }
 0x12e   : > { %v5892_v23 = vpop.eup %5891  ;;  %488 = vrot.lane.b32.xlu1 %v414_v15, %s6283_s28  ;;  %v455_v24 = vmax.f32 %v439_v22, 1e-24  ;;  %v456_v25 = vmax.f32 %v442_v16, 1e-24 }
 0x12f   : > { %v5894_v26 = vpop.eup %5893  ;;  %v416_v20 = vmul.f32 %v5892_v23, %v6369_v8  ;;  %5416 = vmatprep.subr.msk.bf16.mxu0 %vm6519_vm4, %v5414_v18 }
 0x130   : > { %v415_v27 = vmul.f32 %v5894_v26, %v6360_v5  ;;  %5419 = vmatpush3.bf16.xpose.msk.msra.mxu0 %vm6519_vm4, %v5414_v18  ;;  %5903 = vrsqrt.f32 %v455_v24 }
 0x131   : > { %492 = vrot.lane.b32.xlu0 %v416_v20, %s6283_s28  ;;  %5905 = vrsqrt.f32 %v456_v25  ;;  %v445_v28 = vpop.xlane.xlu0 %444  ;;  %v448_v29 = vpop.xlane.xlu1 %447 }
 0x132   : > { %v5896_v30 = vpop.eup %5895  ;;  %490 = vrot.lane.b32.xlu1 %v415_v27, %s6283_s28  ;;  %v457_v31 = vmax.f32 %v445_v28, 1e-24  ;;  %v458_v32 = vmax.f32 %v448_v29, 1e-24 }
 0x133   : > { %v5898_v33 = vpop.eup %5897  ;;  %v418_v35 = vmul.f32 %v5896_v30, %v6381_v12 }
 0x134   : > { %v417_v36 = vmul.f32 %v5898_v33, %v6372_v9  ;;  %5907 = vrsqrt.f32 %v457_v31 }
 0x135   : > { %496 = vrot.lane.b32.xlu0 %v418_v35, %s6283_s28  ;;  %5909 = vrsqrt.f32 %v458_v32  ;;  %v451_v37 = vpop.xlane.xlu0 %450 }
 0x136   : > { %v5900_v38 = vpop.eup %5899  ;;  %494 = vrot.lane.b32.xlu1 %v417_v36, %s6283_s28  ;;  %v459_v41 = vmax.f32 %v451_v37, 1e-24 }
 0x137   : > { %v5902_v42 = vpop.eup %5901  ;;  %v419_v43 = vmul.f32 %v5900_v38, %v6384_v13 }
 0x138   : > { %5911 = vrsqrt.f32 %v459_v41  ;;  %v470_v44 = vmul.f32 %v5902_v42, %v6418_v34 }
 0x139   : > { %498 = vrot.lane.b32.xlu0 %v419_v43, %s6283_s28  ;;  %s7265_s28 = scalar_lea.vmem %s7300_s6, %s6338_s25 }
 0x13a   : > { %v5904_v47 = vpop.eup %5903  ;;  %655 = vrot.lane.b32.xlu1 %v6350_v1, %s6288_s11 }
 0x13b   : > { %v5906_v48 = vpop.eup %5905  ;;  %v471_v49 = vmul.f32 %v5904_v47, %v6425_v39 }
 0x13c   : > { %v472_v52 = vmul.f32 %v5906_v48, %v6428_v40 }
 0x13d   : > { %657 = vrot.lane.b32.xlu0 %v6353_v2, %s6288_s11  ;;  %v5420_v50 = vpack.c.bf16 %v471_v49, %v470_v44 }
 0x13e   : > { %v5908_v53 = vpop.eup %5907  ;;  %659 = vrot.lane.b32.xlu1 %v6360_v5, %s6288_s11 }
 0x13f   : > { %v5910_v54 = vpop.eup %5909  ;;  %5422 = vmatprep.subr.msk.bf16.mxu0 %vm6519_vm4, %v5420_v50  ;;  %v473_v34 = vmul.f32 %v5908_v53, %v6437_v45 }
 0x140   : > { %5425 = vmatpush3.bf16.xpose.msk.msra.mxu0 %vm6519_vm4, %v5420_v50  ;;  %v474_v55 = vmul.f32 %v5910_v54, %v6440_v46  ;;  %v6289_v46 = vmov 4  }
 0x141   : > { %661 = vrot.lane.b32.xlu0 %v6369_v8, %s6288_s11  ;;  %v5426_v39 = vpack.c.bf16 %v473_v34, %v472_v52  ;;  %5858 = vset.pattern.permute.xlu1 %v6289_v46 }
 0x142   : > { %v5912_v40 = vpop.eup %5911  ;;  %663 = vrot.lane.b32.xlu1 %v6372_v9, %s6288_s11  ;;  %5857 = vset.pattern.permute.xlu0 %v6289_v46 }
 0x143   : > { %5428 = vmatprep.subr.msk.bf16.mxu0 %vm6519_vm4, %v5426_v39  ;;  %v475_v56 = vmul.f32 %v5912_v40, %v6449_v51  ;;  %v5454_v51 = vpack.c.bf16 %v6462_v58, %v6460_v57 }
 0x145   : > { %665 = vrot.lane.b32.xlu0 %v6381_v12, %s6288_s11  ;;  %v5432_v45 = vpack.c.bf16 %v475_v56, %v474_v55 }
 0x146   : > { %667 = vrot.lane.b32.xlu1 %v6384_v13, %s6288_s11 }
 0x148   : > { %5431 = vmatpush3.bf16.xpose.msk.msra.mxu0 %vm6519_vm4, %v5426_v39 }
 0x149   : > { %5434 = vmatprep.subr.msk.bf16.mxu0 %vm6519_vm4, %v5432_v45 }
 0x150   : > { %5437 = vmatpush3.bf16.xpose.msk.msra.mxu0 %vm6519_vm4, %v5432_v45 }
 0x151   : > { %5456 = vmatprep.subr.msk.bf16.mxu0 %vm6470_vm2, %v5454_v51 }
 0x16c   : > { %v827_v37 = vpop.f32.mrb[0].mxu1 }
 0x16d   : > { %v4753_v42 = vpop.f32.mrb[1].mxu1 }
 0x197   : > { %v485_v59 = vpop.permute.xlu1 %484 }
 0x198   : > { %4723 = vmatprep.mubr.msk.f32.mxu0 %vm371_vm0, %v485_v59 }
 0x19b   : > { %v654_v62 = vpop.permute.xlu1 %653  ;;  %v487_v4 = vpop.permute.xlu0 %486 }
 0x19c   : > { %v677_v6 = vadd.f32 %v654_v62, %v6347_v0  ;;  %4724 = vmatmul.mubr.msk.f32.vlgmr.msra.gmra.mrb[0].mxu0 %vm371_vm0, %v487_v4 }
 0x19d   : > { %5459 = vmatpush3.bf16.xpose.msk.msra.mxu0 %vm6470_vm2, %v5454_v51  ;;  %v1112_v51 = vsub.f32 1.0, %v6347_v0 }
 0x19e   : > { %v685_v57 = vmul.f32 0.5, %v677_v6  ;;  %5462 = vmatprep.subr.msk.bf16.mxu0 %vm6470_vm2, %v5460_v60 }
 0x1a0   : > { %v489_v58 = vpop.permute.xlu1 %488  ;;  %v693_v7 = vmul.f32 %v685_v57, %v685_v57 }
 0x1a1   : > { %4726 = vmatprep.mubr.msk.f32.mxu0 %vm371_vm0, %v489_v58 }
 0x1a2   : > { %v702_v15 = vsel %vm701_vm1, %v693_v7, 0.0 }
 0x1a3   : > { %v493_v63 = vpop.permute.xlu0 %492  ;;  %703 = vadd.xlane.f32.xlu0 %v702_v15  ;;  %v292_v15 = vlaneseq }
 0x1a4   : > { %v491_v17 = vpop.permute.xlu1 %490 }
 0x1a5   : > { %4727 = vmatmul.mubr.msk.f32.gmra.mrb[2].mxu0 %vm371_vm0, %v491_v17  ;;  %v6645_v0 = vshrl.u32 %v292_v15, 7 }
 0x1a6   : > { %5465 = vmatpush3.bf16.xpose.msk.msra.mxu0 %vm6470_vm2, %v5460_v60  ;;  %4729 = vmatprep.mubr.msk.f32.mxu0 %vm371_vm0, %v493_v63 }
 0x1a7   : > { %v497_v18 = vpop.permute.xlu0 %496  ;;  %5468 = vmatprep.subr.msk.bf16.mxu0 %vm6470_vm2, %v5466_v3  ;;  %v986_v17 = vsub.s32 0, %v6645_v0 }
 0x1a8   : > { %v495_v22 = vpop.permute.xlu1 %494 }
 0x1a9   : > { %4730 = vmatmul.mubr.msk.f32.gmra.mrb[4].mxu0 %vm371_vm0, %v495_v22 }
 0x1aa   : > { %4732 = vmatprep.mubr.msk.f32.mxu0 %vm371_vm0, %v497_v18  ;;  %v987_v18 = vrot.slane %v827_v37, %v986_v17 }
 0x1ab   : > { %v499_v16 = vpop.permute.xlu0 %498 }
 0x1ac   : > { %v656_v14 = vpop.permute.xlu1 %655 }
 0x1ad   : > { %4733 = vmatmul.mubr.msk.f32.gmra.mrb[6].mxu0 %vm371_vm0, %v499_v16  ;;  %v678_v23 = vadd.f32 %v656_v14, %v6350_v1 }
 0x1ae   : > { %5471 = vmatpush3.bf16.xpose.msk.msra.mxu0 %vm6470_vm2, %v5466_v3  ;;  %4770 = vmatprep.mubr.msk.f32.mxu0 %vm701_vm1, %v685_v57 }
 0x1af   : > { %5474 = vmatprep.subr.msk.bf16.mxu0 %vm6470_vm2, %v5472_v11  ;;  %v686_v24 = vmul.f32 0.5, %v678_v23  ;;  %v658_v25 = vpop.permute.xlu0 %657 }
 0x1b0   : > { %v679_v26 = vadd.f32 %v658_v25, %v6353_v2  ;;  %v660_v20 = vpop.permute.xlu1 %659 }
 0x1b1   : > { %v680_v19 = vadd.f32 %v660_v20, %v6360_v5  ;;  %v694_v21 = vmul.f32 %v686_v24, %v686_v24 }
 0x1b2   : > { %v687_v27 = vmul.f32 0.5, %v679_v26 }
 0x1b3   : > { %v688_v28 = vmul.f32 0.5, %v680_v19  ;;  %v662_v29 = vpop.permute.xlu0 %661  ;;  %v705_v30 = vsel %vm701_vm1, %v694_v21, 0.0 }
 0x1b4   : > { %v681_v31 = vadd.f32 %v662_v29, %v6369_v8  ;;  %706 = vadd.xlane.f32.xlu1 %v705_v30  ;;  %v664_v32 = vpop.permute.xlu1 %663  ;;  %v695_v33 = vmul.f32 %v687_v27, %v687_v27 }
 0x1b5   : > { %v682_v35 = vadd.f32 %v664_v32, %v6372_v9  ;;  %v696_v36 = vmul.f32 %v688_v28, %v688_v28 }
 0x1b6   : > { %5477 = vmatpush3.bf16.xpose.msk.msra.mxu0 %vm6470_vm2, %v5472_v11  ;;  %v689_v38 = vmul.f32 0.5, %v681_v31  ;;  %v708_v41 = vsel %vm701_vm1, %v695_v33, 0.0 }
 0x1b7   : > { %v690_v43 = vmul.f32 0.5, %v682_v35  ;;  %709 = vadd.xlane.f32.xlu0 %v708_v41  ;;  %v666_v44 = vpop.permute.xlu0 %665  ;;  %v711_v49 = vsel %vm701_vm1, %v696_v36, 0.0 }
 0x1b8   : > { %v683_v47 = vadd.f32 %v666_v44, %v6381_v12  ;;  %v668_v48 = vpop.permute.xlu1 %667  ;;  %v697_v50 = vmul.f32 %v689_v38, %v689_v38 }
 0x1b9   : > { %v684_v52 = vadd.f32 %v668_v48, %v6384_v13  ;;  %v698_v53 = vmul.f32 %v690_v43, %v690_v43 }
 0x1ba   : > { %v691_v54 = vmul.f32 0.5, %v683_v47  ;;  %v714_v61 = vsel %vm701_vm1, %v697_v50, 0.0 }
 0x1bb   : > { %v692_v34 = vmul.f32 0.5, %v684_v52  ;;  %712 = vadd.xlane.f32.xlu0 %v711_v49  ;;  %715 = vadd.xlane.f32.xlu1 %v714_v61  ;;  %v717_v39 = vsel %vm701_vm1, %v698_v53, 0.0  ;;  %v293_v61 = vand.u32 127, %v292_v15 }
 0x1bc   : > { %v699_v55 = vmul.f32 %v691_v54, %v691_v54 }
 0x1bd   : > { %4771 = vmatmul.mubr.msk.f32.vlgmr.msra.gmra.mrb[8].mxu0 %vm701_vm1, %v686_v24  ;;  %v700_v40 = vmul.f32 %v692_v34, %v692_v34 }
 0x1be   : > { %4773 = vmatprep.mubr.msk.f32.mxu0 %vm701_vm1, %v687_v27  ;;  %v720_v56 = vsel %vm701_vm1, %v699_v55, 0.0  ;;  %v6660_v55 = vstv %s267_s12 }
 0x1bf   : > { %718 = vadd.xlane.f32.xlu0 %v717_v39  ;;  %721 = vadd.xlane.f32.xlu1 %v720_v56  ;;  %v723_v45 = vsel %vm701_vm1, %v700_v40, 0.0  ;;  %vm295_vm5 = vcmp.lt.s32.totalorder %v293_v61, %v6660_v55 }
 0x1c1   : > { %4774 = vmatmul.mubr.msk.f32.gmra.mrb[10].mxu0 %vm701_vm1, %v688_v28 }
 0x1c2   : > { %4776 = vmatprep.mubr.msk.f32.mxu0 %vm701_vm1, %v689_v38 }
 0x1c3   : > { %724 = vadd.xlane.f32.xlu0 %v723_v45 }
 0x1c5   : > { %4777 = vmatmul.mubr.msk.f32.gmra.mrb[12].mxu0 %vm701_vm1, %v690_v43 }
 0x1c6   : > { %4779 = vmatprep.mubr.msk.f32.mxu0 %vm701_vm1, %v691_v54 }
 0x1c9   : > { %4780 = vmatmul.mubr.msk.f32.gmra.mrb[14].mxu0 %vm701_vm1, %v692_v34  ;;  %vm1084_vm1 = vcmask 523264  }
 0x1d9   : > { %1130 = vperm.xlu0 %5857, %v1112_v51  }
 0x230   : > { %v704_v63 = vpop.xlane.xlu0 %703 }
 0x231   : > { %v988_v25 = vadd.f32 %v987_v18, %v704_v63 }
 0x241   : > { %v707_v22 = vpop.xlane.xlu1 %706 }
 0x242   : > { %v989_v14 = vadd.f32 %v987_v18, %v707_v22 }
 0x244   : > { %v710_v3 = vpop.xlane.xlu0 %709 }
 0x245   : > { %v990_v33 = vadd.f32 %v987_v18, %v710_v3 }
 0x248   : > { %v713_v16 = vpop.xlane.xlu0 %712  ;;  %v716_v29 = vpop.xlane.xlu1 %715 }
 0x249   : > { %v991_v28 = vadd.f32 %v987_v18, %v713_v16  ;;  %v992_v48 = vadd.f32 %v987_v18, %v716_v29 }
 0x24c   : > { %v719_v19 = vpop.xlane.xlu0 %718  ;;  %v722_v53 = vpop.xlane.xlu1 %721 }
 0x24d   : > { %v993_v42 = vadd.f32 %v987_v18, %v719_v19  ;;  %v994_v63 = vadd.f32 %v987_v18, %v722_v53 }
 0x250   : > { %v725_v49 = vpop.xlane.xlu0 %724 }
 0x251   : > { %v995_v40 = vadd.f32 %v987_v18, %v725_v49 }
 0x26f   : > { %v6629_v59 = vpop.f32.mrb[0].mxu0 }
 0x270   : > { %v6631_v60 = vpop.f32.mrb[1].mxu0 }
 0x278   : > { %v6633_v62 = vpop.f32.mrb[2].mxu0 }
 0x279   : > { %v6635_v4 = vpop.f32.mrb[3].mxu0 }
 0x27c   : > { %v6637_v6 = vpop.f32.mrb[4].mxu0 }
 0x27d   : > { %v6639_v57 = vpop.f32.mrb[5].mxu0 }
 0x280   : > { %v6641_v58 = vpop.f32.mrb[6].mxu0 }
 0x281   : > { %v6643_v7 = vpop.f32.mrb[7].mxu0 }
 0x290   : > { %v4772_v11 = vpop.f32.mrb[8].mxu0 }
 0x291   : > { %v997_v23 = vmul.f32 2.0, %v4772_v11  ;;  %v945_v24 = vpop.f32.mrb[9].mxu0 }
 0x292   : > { %v996_v26 = vmul.f32 2.0, %v945_v24  ;;  %v6671_v24 = vsel %vm295_vm5, 1.0, %v6286_v10 }
 0x293   : > { %v1005_v20 = vsub.f32 %v989_v14, %v997_v23 }
 0x294   : > { %v1004_v21 = vsub.f32 %v988_v25, %v996_v26  ;;  %v4775_v27 = vpop.f32.mrb[10].mxu0 }
 0x295   : > { %v6648_v30 = vmax.f32 %v1005_v20, 0.0  ;;  %v999_v31 = vmul.f32 2.0, %v4775_v27  ;;  %v955_v32 = vpop.f32.mrb[11].mxu0 }
 0x296   : > { %v6650_v35 = vmax.f32 %v1004_v21, 0.0  ;;  %v998_v36 = vmul.f32 2.0, %v955_v32 }
 0x297   : > { %5913 = vrsqrt.f32 %v6648_v30  ;;  %v1007_v37 = vsub.f32 %v991_v28, %v999_v31  ;;  %vm1029_vm7 = vcmp.eq.f32.partialorder %v6648_v30, inf  ;;  %vm1031_vm8 = vcmp.eq.f32.partialorder %v6648_v30, 0.0 }
 0x298   : > { %5915 = vrsqrt.f32 %v6650_v35  ;;  %v1006_v38 = vsub.f32 %v990_v33, %v998_v36  ;;  %v4778_v41 = vpop.f32.mrb[12].mxu0  ;;  %vm1022_vm6 = vcmp.eq.f32.partialorder %v6650_v35, inf  ;;  %vm1024_vm9 = vcmp.eq.f32.partialorder %v6650_v35, 0.0 }
 0x299   : > { %v6654_v43 = vmax.f32 %v1007_v37, 0.0  ;;  %v1001_v44 = vmul.f32 2.0, %v4778_v41  ;;  %v965_v47 = vpop.f32.mrb[13].mxu0  ;;  %v1025_v26 = vand.u32 2147483648, %v6650_v35  ;;  %v1032_v21 = vand.u32 2147483648, %v6648_v30 }
 0x29a   : > { %v6656_v50 = vmax.f32 %v1006_v38, 0.0  ;;  %v1000_v52 = vmul.f32 2.0, %v965_v47 }
 0x29b   : > { %5917 = vrsqrt.f32 %v6654_v43  ;;  %v1009_v54 = vsub.f32 %v993_v42, %v1001_v44  ;;  %vm1043_vm10 = vcmp.eq.f32.partialorder %v6654_v43, inf  ;;  %vm1045_vm11 = vcmp.eq.f32.partialorder %v6654_v43, 0.0 }
 0x29c   : > { %5919 = vrsqrt.f32 %v6656_v50  ;;  %v1008_v34 = vsub.f32 %v992_v48, %v1000_v52  ;;  %v4781_v39 = vpop.f32.mrb[14].mxu0  ;;  %vm1036_vm12 = vcmp.eq.f32.partialorder %v6656_v50, inf  ;;  %vm1038_vm13 = vcmp.eq.f32.partialorder %v6656_v50, 0.0 }
 0x29d   : > { %v6662_v56 = vmax.f32 %v1009_v54, 0.0  ;;  %v1003_v45 = vmul.f32 2.0, %v4781_v39  ;;  %v975_v51 = vpop.f32.mrb[15].mxu0  ;;  %v1039_v29 = vand.u32 2147483648, %v6656_v50  ;;  %v1046_v31 = vand.u32 2147483648, %v6654_v43 }
 0x29e   : > { %v1016_v3 = vmax.f32 %v1008_v34, 0.0  ;;  %v1002_v17 = vmul.f32 2.0, %v975_v51 }
 0x29f   : > { %5921 = vrsqrt.f32 %v6662_v56  ;;  %v1011_v22 = vsub.f32 %v995_v40, %v1003_v45  ;;  %vm1057_vm15 = vcmp.eq.f32.partialorder %v6662_v56, inf  ;;  %vm1059_vm0 = vcmp.eq.f32.partialorder %v6662_v56, 0.0 }
 0x2a0   : > { %5923 = vrsqrt.f32 %v1016_v3  ;;  %v1010_v15 = vsub.f32 %v994_v63, %v1002_v17  ;;  %vm1050_vm14 = vcmp.eq.f32.partialorder %v1016_v3, inf  ;;  %vm1052_vm2 = vcmp.eq.f32.partialorder %v1016_v3, 0.0 }
 0x2a1   : > { %v5914_v16 = vpop.eup %5913  ;;  %v6666_v11 = vmax.f32 %v1011_v22, 0.0  ;;  %v1053_v37 = vand.u32 2147483648, %v1016_v3  ;;  %v1060_v47 = vand.u32 2147483648, %v6662_v56 }
 0x2a2   : > { %v5916_v14 = vpop.eup %5915  ;;  %v6668_v23 = vmax.f32 %v1010_v15, 0.0  ;;  %v1028_v20 = vmul.f32 %v5914_v16, %v6648_v30 }
 0x2a3   : > { %5925 = vrsqrt.f32 %v6666_v11  ;;  %v1021_v25 = vmul.f32 %v5916_v14, %v6650_v35  ;;  %vm1071_vm4 = vcmp.eq.f32.partialorder %v6666_v11, inf  ;;  %vm1073_vm5 = vcmp.eq.f32.partialorder %v6666_v11, 0.0 }
 0x2a4   : > { %5927 = vrsqrt.f32 %v6668_v23  ;;  %v1030_v36 = vsel %vm1029_vm7, %v6648_v30, %v1028_v20  ;;  %vm1064_vm3 = vcmp.eq.f32.partialorder %v6668_v23, inf  ;;  %v1067_v17 = vand.u32 2147483648, %v6668_v23 }
 0x2a5   : > { %v5918_v18 = vpop.eup %5917  ;;  %v1023_v33 = vsel %vm1022_vm6, %v6650_v35, %v1021_v25  ;;  %v6714_v52 = vsel %vm1031_vm8, %v1032_v21, %v1030_v36  ;;  %vm1066_vm6 = vcmp.eq.f32.partialorder %v6668_v23, 0.0 }
 0x2a6   : > { %v5920_v19 = vpop.eup %5919  ;;  %v1042_v27 = vmul.f32 %v5918_v18, %v6654_v43  ;;  %v6710_v49 = vsel %vm1024_vm9, %v1025_v26, %v1023_v33 }
 0x2a7   : > { %v1035_v28 = vmul.f32 %v5920_v19, %v6656_v50  ;;  %v1076_v63 = vmul.f32 %v6671_v24, %v6710_v49 }
 0x2a8   : > { %v1044_v42 = vsel %vm1043_vm10, %v6654_v43, %v1042_v27 }
 0x2a9   : > { %v5922_v32 = vpop.eup %5921  ;;  %v1037_v41 = vsel %vm1036_vm12, %v6656_v50, %v1035_v28  ;;  %v6726_v35 = vsel %vm1045_vm11, %v1046_v31, %v1044_v42  ;;  %v1074_v50 = vand.u32 2147483648, %v6666_v11  ;;  %v1085_v27 = vsel %vm1084_vm1, %v1076_v63, -inf }
 0x2aa   : > { %v5924_v38 = vpop.eup %5923  ;;  %v1056_v44 = vmul.f32 %v5922_v32, %v6662_v56  ;;  %v6722_v61 = vsel %vm1038_vm13, %v1039_v29, %v1037_v41  ;;  %v1079_v16 = vmul.f32 %v6671_v24, %v6726_v35 }
 0x2ab   : > { %v1049_v48 = vmul.f32 %v5924_v38, %v1016_v3  ;;  %v1078_v15 = vmul.f32 %v6671_v24, %v6722_v61 }
 0x2ac   : > { %v1058_v53 = vsel %vm1057_vm15, %v6662_v56, %v1056_v44  ;;  %v1077_v56 = vmul.f32 %v6671_v24, %v6714_v52  ;;  %v1088_v28 = vsel %vm1084_vm1, %v1079_v16, -inf  ;;  %v1113_v44 = vsub.f32 1.0, %v6350_v1 }
 0x2ad   : > { %v5926_v54 = vpop.eup %5925  ;;  %v1051_v34 = vsel %vm1050_vm14, %v1016_v3, %v1049_v48  ;;  %v6731_v30 = vsel %vm1059_vm0, %v1060_v47, %v1058_v53  ;;  %v1114_v47 = vsub.f32 1.0, %v6353_v2  ;;  %v1115_v48 = vsub.f32 1.0, %v6360_v5 }
 0x2ae   : > { %v5928_v39 = vpop.eup %5927  ;;  %v6734_v40 = vsel %vm1052_vm2, %v1053_v37, %v1051_v34  ;;  %v1070_v45 = vmul.f32 %v5926_v54, %v6666_v11  ;;  %v1081_v51 = vmul.f32 %v6671_v24, %v6731_v30  ;;  %v1116_v53 = vsub.f32 1.0, %v6369_v8 }
 0x2af   : > { %v1063_v43 = vmul.f32 %v5928_v39, %v6668_v23  ;;  %v1080_v3 = vmul.f32 %v6671_v24, %v6734_v40  ;;  %v1117_v54 = vsub.f32 1.0, %v6372_v9  ;;  %v1118_v34 = vsub.f32 1.0, %v6381_v12 }
 0x2b0   : > { %v1072_v22 = vsel %vm1071_vm4, %v6666_v11, %v1070_v45  ;;  %v1091_v26 = vsel %vm1084_vm1, %v1081_v51, -inf  ;;  %v1086_v11 = vsel %vm1084_vm1, %v1077_v56, -inf  ;;  %v1119_v39 = vsub.f32 1.0, %v6384_v13 }
 0x2b1   : > { %v1065_v14 = vsel %vm1064_vm3, %v6668_v23, %v1063_v43  ;;  %v6760_v18 = vsel %vm1073_vm5, %v1074_v50, %v1072_v22  ;;  %v1089_v25 = vsel %vm1084_vm1, %v1080_v3, -inf  ;;  %v1092_v31 = vmax.f32 %v1086_v11, %v1091_v26 }
 0x2b2   : > { %v6766_v20 = vsel %vm1066_vm6, %v1067_v17, %v1065_v14  ;;  %v1083_v19 = vmul.f32 %v6671_v24, %v6760_v18  ;;  %v1090_v29 = vmax.f32 %v1085_v27, %v1089_v25  ;;  %v1087_v23 = vsel %vm1084_vm1, %v1078_v15, -inf  ;;  %v1131_v15 = vpop.permute.xlu0 %1130 }
 0x2b3   : > { %v1082_v21 = vmul.f32 %v6671_v24, %v6766_v20  ;;  %v6290_v1 = vmov 1.0|1.0   ;;  %v1120_v22 = vsub.f32 1.0, %v6631_v60  ;;  %v1121_v16 = vsub.f32 1.0, %v6629_v59 }
 0x2b4   : > { %v1095_v32 = vsel %vm1084_vm1, %v1083_v19, -inf  ;;  %v1097_v38 = vmax.f32 %v1090_v29, %v1092_v31  ;;  %5478 = vmatprep.subr.bf16.mxu1 %v6290_v1  ;;  %v1123_v25 = vsub.f32 1.0, %v6633_v62  ;;  %v1122_v26 = vsub.f32 1.0, %v6635_v4 }
 0x2b5   : > { %v1093_v33 = vsel %vm1084_vm1, %v1082_v21, -inf  ;;  %v1096_v36 = vmax.f32 %v1088_v28, %v1095_v32  ;;  %5479 = vmatpush3.bf16.msra.mxu1 %v6290_v1  ;;  %v1125_v19 = vsub.f32 1.0, %v6637_v6  ;;  %v1124_v21 = vsub.f32 1.0, %v6639_v57 }
 0x2b6   : > { %v1094_v37 = vmax.f32 %v1087_v23, %v1093_v33  ;;  %5480 = vmatprep.subr.bf16.mxu1 %v6290_v1  ;;  %v1168_v27 = vadd.f32 %v1131_v15, %v1120_v22  ;;  %v1127_v11 = vsub.f32 1.0, %v6641_v58  ;;  %v1126_v28 = vsub.f32 1.0, %v6643_v7 }
 0x2b7   : > { %vm307_vm0 = vcmp.lt.s32.totalorder %v6645_v0, %v6660_v55 }
 0x2b8   : > { %v1098_v41 = vmax.f32 %v1094_v37, %v1096_v36 }
 0x2b9   : > { %5481 = vmatpush3.bf16.msra.mxu1 %v6290_v1 }
 0x2ba   : > { %v1099_v42 = vmax.f32 %v1097_v38, %v1098_v41  ;;  %5482 = vmatprep.subr.bf16.mxu1 %v6290_v1 }
 0x2bc   : > { %1100 = vmax.xlane.f32.xlu1 %v1099_v42 }
 0x2bd   : > { %5483 = vmatpush3.bf16.msra.mxu1 %v6290_v1 }
 0x2be   : > { %5484 = vmatprep.subr.bf16.mxu1 %v6290_v1 }
 0x2c1   : > { %5485 = vmatpush3.bf16.msra.mxu1 %v6290_v1 }
 0x2cd   : > { %1135 = vperm.xlu1 %5858, %v1113_v44  }
 0x2d1   : > { %1140 = vperm.xlu1 %5858, %v1114_v47  }
 0x2d5   : > { %1145 = vperm.xlu1 %5858, %v1115_v48  }
 0x2d9   : > { %1150 = vperm.xlu1 %5858, %v1116_v53  }
 0x2dd   : > { %1155 = vperm.xlu1 %5858, %v1117_v54  }
 0x2e1   : > { %1160 = vperm.xlu1 %5858, %v1118_v34  }
 0x2e5   : > { %1165 = vperm.xlu1 %5858, %v1119_v39  }
 0x349   : > { %v1101_v2 = vpop.xlane.xlu1 %1100 }
 0x34a   : > { %v1102_v5 = vrot.slane %v1101_v2, 4 }
 0x34c   : > { %v1103_v8 = vmax.f32 %v1101_v2, %v1102_v5 }
 0x34d   : > { %v1136_v51 = vpop.permute.xlu1 %1135 }
 0x34e   : > { %v1104_v9 = vrot.slane %v1103_v8, 2  ;;  %v1169_v29 = vadd.f32 %v1136_v51, %v1121_v16 }
 0x350   : > { %v1105_v45 = vmax.f32 %v1103_v8, %v1104_v9 }
 0x351   : > { %v1141_v13 = vpop.permute.xlu1 %1140 }
 0x352   : > { %v1106_v50 = vrot.slane %v1105_v45, 1  ;;  %v1170_v60 = vadd.f32 %v1141_v13, %v1122_v26 }
 0x354   : > { %v1107_v12 = vmax.f32 %v1105_v45, %v1106_v50 }
 0x355   : > { %v1146_v43 = vpop.permute.xlu1 %1145 }
 0x356   : > { %5838 = vpush %v1107_v12  ;;  %v1171_v32 = vadd.f32 %v1146_v43, %v1123_v25 }
 0x359   : > { %v1151_v63 = vpop.permute.xlu1 %1150 }
 0x35a   : > { %v1172_v23 = vadd.f32 %v1151_v63, %v1124_v21 }
 0x35d   : > { %v1156_v17 = vpop.permute.xlu1 %1155 }
 0x35e   : > { %v1173_v59 = vadd.f32 %v1156_v17, %v1125_v19 }
 0x361   : > { %v1161_v14 = vpop.permute.xlu1 %1160 }
 0x362   : > { %v1174_v57 = vadd.f32 %v1161_v14, %v1126_v28 }
 0x365   : > { %v1166_v37 = vpop.permute.xlu1 %1165 }
 0x366   : > { %v1175_v34 = vadd.f32 %v1166_v37, %v1127_v11 }
 0x387   : > { %s5839_s13 = spop %5838 }
 0x388   : > { %v1109_v56 = vstv %s5839_s13 }
 0x389   : > { %v1110_v3 = vmax.f32 %v1109_v56, 1e-10 }
 0x38b   : > { %5929 = vrcp.f32 %v1110_v3 }
 0x395   : > { %v5930_v31 = vpop.eup %5929 }
 0x396   : > { %v1176_v33 = vmul.f32 %v5930_v31, %v6710_v49  ;;  %v1177_v62 = vmul.f32 %v5930_v31, %v6714_v52  ;;  %v1178_v4 = vmul.f32 %v5930_v31, %v6722_v61  ;;  %v1179_v6 = vmul.f32 %v5930_v31, %v6726_v35 }
 0x397   : > { %v1180_v36 = vmul.f32 %v5930_v31, %v6734_v40  ;;  %v1181_v58 = vmul.f32 %v5930_v31, %v6731_v30  ;;  %v1182_v7 = vmul.f32 %v5930_v31, %v6766_v20  ;;  %v1183_v52 = vmul.f32 %v5930_v31, %v6760_v18 }
 0x398   : > { %v1184_v38 = vadd.f32 %v1176_v33, %v1168_v27  ;;  %v1185_v41 = vadd.f32 %v1177_v62, %v1169_v29  ;;  %v1186_v42 = vadd.f32 %v1178_v4, %v1170_v60  ;;  %v1187_v44 = vadd.f32 %v1179_v6, %v1171_v32 }
 0x399   : > { %v1188_v47 = vadd.f32 %v1180_v36, %v1172_v23  ;;  %v1189_v49 = vadd.f32 %v1181_v58, %v1173_v59  ;;  %v1190_v48 = vadd.f32 %v1182_v7, %v1174_v57  ;;  %v1191_v5 = vadd.f32 %v1183_v52, %v1175_v34 }
 0x39a   : > { %v1192_v61 = vmul.f32 -10.0, %v1184_v38  ;;  %v1193_v53 = vmul.f32 -10.0, %v1185_v41  ;;  %v1194_v35 = vmul.f32 -10.0, %v1186_v42  ;;  %v1195_v54 = vmul.f32 -10.0, %v1187_v44 }
 0x39b   : > { %v1196_v40 = vmul.f32 -10.0, %v1188_v47  ;;  %v1197_v2 = vmul.f32 -10.0, %v1189_v49  ;;  %v1198_v9 = vmul.f32 -10.0, %v1190_v48  ;;  %v1199_v18 = vmul.f32 -10.0, %v1191_v5 }
 0x39c   : > { %v1200_v39 = vmul.f32 1.442695, %v1192_v61  ;;  %v1202_v30 = vmul.f32 1.442695, %v1193_v53  ;;  %v1204_v1 = vmul.f32 1.442695, %v1194_v35 }
 0x39d   : > { %v1206_v20 = vmul.f32 1.442695, %v1195_v54  ;;  %v1208_v8 = vmul.f32 1.442695, %v1196_v40  ;;  %v1210_v45 = vmul.f32 1.442695, %v1197_v2 }
 0x39e   : > { %5931 = vpow2.f32 %v1200_v39  ;;  %v1212_v50 = vmul.f32 1.442695, %v1198_v9  ;;  %v1214_v12 = vmul.f32 1.442695, %v1199_v18 }
 0x39f   : > { %5933 = vpow2.f32 %v1202_v30 }
 0x3a0   : > { %5935 = vpow2.f32 %v1204_v1 }
 0x3a1   : > { %5937 = vpow2.f32 %v1206_v20 }
 0x3a2   : > { %5939 = vpow2.f32 %v1208_v8 }
 0x3a3   : > { %5941 = vpow2.f32 %v1210_v45 }
 0x3a4   : > { %5943 = vpow2.f32 %v1212_v50 }
 0x3a5   : > { %5945 = vpow2.f32 %v1214_v12 }
 0x3a8   : > { %v5932_v51 = vpop.eup %5931 }
 0x3a9   : > { %v5934_v13 = vpop.eup %5933  ;;  %v6802_v43 = vmul.f32 %v5932_v51, %v6671_v24 }
 0x3aa   : > { %v5936_v63 = vpop.eup %5935  ;;  %v6805_v56 = vmul.f32 %v5934_v13, %v6671_v24 }
 0x3ab   : > { %v5938_v3 = vpop.eup %5937  ;;  %1361 = vxpose.xlu1.b32.start [1/8] (short) (narrow) %v6802_v43, 64  ;;  %4798 = vmatprep.mubr.msk.f32.mxu1 %vm1084_vm1, %v6802_v43  ;;  %v6811_v17 = vmul.f32 %v5936_v63, %v6671_v24 }
 0x3ac   : > { %v5940_v22 = vpop.eup %5939  ;;  %4854 = vmatprep.mubr.msk.f32.mxu0 %vm1084_vm1, %v6802_v43  ;;  %4799 = vmatmul.mubr.msk.f32.vlgmr.msra.gmra.mrb[2].mxu1 %vm1084_vm1, %v6805_v56  ;;  %v6820_v15 = vmul.f32 %v5938_v3, %v6671_v24 }
 0x3ad   : > { %4801 = vmatprep.mubr.msk.f32.mxu1 %vm1084_vm1, %v6811_v17  ;;  %v5942_v16 = vpop.eup %5941  ;;  %v6824_v14 = vmul.f32 %v5940_v22, %v6671_v24 }
 0x3ae   : > { %v5944_v25 = vpop.eup %5943  ;;  %v6831_v26 = vmul.f32 %v5942_v16, %v6671_v24 }
 0x3af   : > { %1362 = vxpose.xlu1.b32.cont [2/8] (short) (narrow) %v6805_v56, 64  ;;  %v5946_v19 = vpop.eup %5945  ;;  %v6835_v21 = vmul.f32 %v5944_v25, %v6671_v24 }
 0x3b0   : > { %4802 = vmatmul.mubr.msk.f32.gmra.mrb[4].mxu1 %vm1084_vm1, %v6820_v15  ;;  %v6842_v27 = vmul.f32 %v5946_v19, %v6671_v24 }
 0x3b1   : > { %4804 = vmatprep.mubr.msk.f32.mxu1 %vm1084_vm1, %v6824_v14 }
 0x3b3   : > { %1363 = vxpose.xlu1.b32.cont [3/8] (short) (narrow) %v6811_v17, 64 }
 0x3b4   : > { %4805 = vmatmul.mubr.msk.f32.gmra.mrb[6].mxu1 %vm1084_vm1, %v6831_v26 }
 0x3b5   : > { %4807 = vmatprep.mubr.msk.f32.mxu1 %vm1084_vm1, %v6835_v21 }
 0x3b7   : > { %1364 = vxpose.xlu1.b32.cont [4/8] (short) (narrow) %v6820_v15, 64 }
 0x3b8   : > { %4808 = vmatmul.mubr.msk.f32.gmra.mrb[8].mxu1 %vm1084_vm1, %v6842_v27 }
 0x3bb   : > { %1365 = vxpose.xlu1.b32.cont [5/8] (short) (narrow) %v6824_v14, 64 }
 0x3bf   : > { %1366 = vxpose.xlu1.b32.cont [6/8] (short) (narrow) %v6831_v26, 64 }
 0x3c3   : > { %1367 = vxpose.xlu1.b32.cont [7/8] (short) (narrow) %v6835_v21, 64 }
 0x3c7   : > { %1368 = vxpose.xlu1.b32.end [8/8] (short) (narrow) %v6842_v27, 64 }
 0x42b   : > { %v6851_v11 = vpop.trf.xlu1 }
 0x42c   : > { %4826 = vmatprep.mubr.msk.f32.mxu1 %vm1084_vm1, %v6851_v11 }
 0x42f   : > { %v6855_v33 = vpop.trf.xlu1 }
 0x433   : > { %v6857_v58 = vpop.trf.xlu1 }
 0x437   : > { %v6859_v48 = vpop.trf.xlu1 }
 0x43b   : > { %v6861_v54 = vpop.trf.xlu1 }
 0x43f   : > { %v6863_v30 = vpop.trf.xlu1 }
 0x443   : > { %v6869_v1 = vpop.trf.xlu1 }
 0x447   : > { %v6879_v20 = vpop.trf.xlu1 }
 0x47f   : > { %v4800_v24 = vpop.f32.mrb[2].mxu1 }
 0x480   : > { %v1320_v28 = vadd.f32 1e-10, %v4800_v24  ;;  %v1314_v29 = vpop.f32.mrb[3].mxu1 }
 0x481   : > { %v1315_v31 = vadd.f32 1e-10, %v1314_v29 }
 0x482   : > { %5947 = vrcp.f32 %v1320_v28 }
 0x483   : > { %5949 = vrcp.f32 %v1315_v31  ;;  %v4803_v60 = vpop.f32.mrb[4].mxu1 }
 0x484   : > { %v1330_v32 = vadd.f32 1e-10, %v4803_v60  ;;  %v1324_v23 = vpop.f32.mrb[5].mxu1 }
 0x485   : > { %v1325_v59 = vadd.f32 1e-10, %v1324_v23 }
 0x486   : > { %5951 = vrcp.f32 %v1330_v32 }
 0x487   : > { %5953 = vrcp.f32 %v1325_v59  ;;  %v4806_v62 = vpop.f32.mrb[6].mxu1 }
 0x488   : > { %v1340_v4 = vadd.f32 1e-10, %v4806_v62  ;;  %v1334_v6 = vpop.f32.mrb[7].mxu1 }
 0x489   : > { %v1335_v57 = vadd.f32 1e-10, %v1334_v6 }
 0x48a   : > { %5955 = vrcp.f32 %v1340_v4 }
 0x48b   : > { %5957 = vrcp.f32 %v1335_v57  ;;  %v4809_v36 = vpop.f32.mrb[8].mxu1 }
 0x48c   : > { %v5948_v7 = vpop.eup %5947  ;;  %v1350_v37 = vadd.f32 1e-10, %v4809_v36  ;;  %v1344_v38 = vpop.f32.mrb[9].mxu1 }
 0x48d   : > { %v5950_v41 = vpop.eup %5949  ;;  %v1345_v42 = vadd.f32 1e-10, %v1344_v38 }
 0x48e   : > { %5959 = vrcp.f32 %v1350_v37  ;;  %v5486_v44 = vpack.c.bf16 %v5948_v7, %v5950_v41 }
 0x48f   : > { %5961 = vrcp.f32 %v1345_v42 }
 0x490   : > { %v5952_v47 = vpop.eup %5951  ;;  %5487 = vmatprep.subr.bf16.mxu1 %v5486_v44 }
 0x491   : > { %v5954_v49 = vpop.eup %5953  ;;  %5489 = vmatpush3.bf16.msra.mxu1 %v5486_v44 }
 0x492   : > { %v5490_v52 = vpack.c.bf16 %v5952_v47, %v5954_v49 }
 0x494   : > { %v5956_v61 = vpop.eup %5955  ;;  %5491 = vmatprep.subr.bf16.mxu1 %v5490_v52 }
 0x495   : > { %v5958_v53 = vpop.eup %5957  ;;  %5493 = vmatpush3.bf16.msra.mxu1 %v5490_v52 }
 0x496   : > { %v5494_v35 = vpack.c.bf16 %v5956_v61, %v5958_v53 }
 0x498   : > { %v5960_v34 = vpop.eup %5959  ;;  %5495 = vmatprep.subr.bf16.mxu1 %v5494_v35 }
 0x499   : > { %v5962_v40 = vpop.eup %5961  ;;  %5497 = vmatpush3.bf16.msra.mxu1 %v5494_v35 }
 0x49a   : > { %v5498_v39 = vpack.c.bf16 %v5960_v34, %v5962_v40 }
 0x49c   : > { %5499 = vmatprep.subr.bf16.mxu1 %v5498_v39 }
 0x49d   : > { %5501 = vmatpush3.bf16.msra.mxu1 %v5498_v39 }
 0x4a0   : > { %4827 = vmatmul.mubr.msk.f32.vlgmr.msra.gmra.mrb[10].mxu1 %vm1084_vm1, %v6855_v33 }
 0x4a1   : > { %4829 = vmatprep.mubr.msk.f32.mxu1 %vm1084_vm1, %v6857_v58 }
 0x4a4   : > { %4830 = vmatmul.mubr.msk.f32.gmra.mrb[12].mxu1 %vm1084_vm1, %v6859_v48 }
 0x4a5   : > { %4832 = vmatprep.mubr.msk.f32.mxu1 %vm1084_vm1, %v6861_v54 }
 0x4a8   : > { %4833 = vmatmul.mubr.msk.f32.gmra.mrb[14].mxu1 %vm1084_vm1, %v6863_v30 }
 0x4a9   : > { %4835 = vmatprep.mubr.msk.f32.mxu1 %vm1084_vm1, %v6869_v1 }
 0x4ac   : > { %4836 = vmatmul.mubr.msk.f32.gmra.mrb[16].mxu1 %vm1084_vm1, %v6879_v20 }
 0x4ad   : > { %4882 = vmatprep.mubr.msk.f32.mxu1 %vm1084_vm1, %v6851_v11 }
 0x573   : > { %v4828_v2 = vpop.f32.mrb[10].mxu1 }
 0x574   : > { %v1489_v5 = vadd.f32 1e-10, %v4828_v2  ;;  %v1483_v8 = vpop.f32.mrb[11].mxu1 }
 0x575   : > { %v1484_v9 = vadd.f32 1e-10, %v1483_v8 }
 0x576   : > { %5963 = vrcp.f32 %v1489_v5 }
 0x577   : > { %5965 = vrcp.f32 %v1484_v9  ;;  %v4831_v45 = vpop.f32.mrb[12].mxu1 }
 0x578   : > { %v1499_v18 = vadd.f32 1e-10, %v4831_v45  ;;  %v1493_v50 = vpop.f32.mrb[13].mxu1 }
 0x579   : > { %v1494_v12 = vadd.f32 1e-10, %v1493_v50 }
 0x57a   : > { %5967 = vrcp.f32 %v1499_v18 }
 0x57b   : > { %5969 = vrcp.f32 %v1494_v12  ;;  %v4834_v51 = vpop.f32.mrb[14].mxu1 }
 0x57c   : > { %v1509_v13 = vadd.f32 1e-10, %v4834_v51  ;;  %v1503_v63 = vpop.f32.mrb[15].mxu1 }
 0x57d   : > { %v1504_v3 = vadd.f32 1e-10, %v1503_v63 }
 0x57e   : > { %5971 = vrcp.f32 %v1509_v13 }
 0x57f   : > { %5973 = vrcp.f32 %v1504_v3  ;;  %v4837_v22 = vpop.f32.mrb[16].mxu1 }
 0x580   : > { %v5964_v16 = vpop.eup %5963  ;;  %v1519_v25 = vadd.f32 1e-10, %v4837_v22  ;;  %v1513_v19 = vpop.f32.mrb[17].mxu1 }
 0x581   : > { %v5966_v24 = vpop.eup %5965  ;;  %v1514_v28 = vadd.f32 1e-10, %v1513_v19 }
 0x582   : > { %5975 = vrcp.f32 %v1519_v25  ;;  %v5502_v29 = vpack.c.bf16 %v5964_v16, %v5966_v24 }
 0x583   : > { %5977 = vrcp.f32 %v1514_v28 }
 0x584   : > { %v5968_v31 = vpop.eup %5967  ;;  %5503 = vmatprep.subr.bf16.mxu0 %v5502_v29 }
 0x585   : > { %v5970_v60 = vpop.eup %5969  ;;  %5505 = vmatpush3.bf16.msra.mxu0 %v5502_v29 }
 0x586   : > { %v5506_v32 = vpack.c.bf16 %v5968_v31, %v5970_v60 }
 0x588   : > { %v5972_v23 = vpop.eup %5971  ;;  %5507 = vmatprep.subr.bf16.mxu0 %v5506_v32 }
 0x589   : > { %v5974_v59 = vpop.eup %5973  ;;  %5509 = vmatpush3.bf16.msra.mxu0 %v5506_v32 }
 0x58a   : > { %v5510_v62 = vpack.c.bf16 %v5972_v23, %v5974_v59 }
 0x58c   : > { %v5976_v4 = vpop.eup %5975  ;;  %5511 = vmatprep.subr.bf16.mxu0 %v5510_v62 }
 0x58d   : > { %v5978_v6 = vpop.eup %5977  ;;  %5513 = vmatpush3.bf16.msra.mxu0 %v5510_v62 }
 0x58e   : > { %v5514_v57 = vpack.c.bf16 %v5976_v4, %v5978_v6 }
 0x590   : > { %5515 = vmatprep.subr.bf16.mxu0 %v5514_v57 }
 0x591   : > { %5517 = vmatpush3.bf16.msra.mxu0 %v5514_v57 }
 0x594   : > { %4855 = vmatmul.mubr.msk.f32.vlgmr.msra.gmra.mrb[16].mxu0 %vm1084_vm1, %v6805_v56 }
 0x595   : > { %4857 = vmatprep.mubr.msk.f32.mxu0 %vm1084_vm1, %v6811_v17 }
 0x598   : > { %4858 = vmatmul.mubr.msk.f32.gmra.mrb[18].mxu0 %vm1084_vm1, %v6820_v15 }
 0x599   : > { %4860 = vmatprep.mubr.msk.f32.mxu0 %vm1084_vm1, %v6824_v14 }
 0x59c   : > { %4861 = vmatmul.mubr.msk.f32.gmra.mrb[20].mxu0 %vm1084_vm1, %v6831_v26 }
 0x59d   : > { %4863 = vmatprep.mubr.msk.f32.mxu0 %vm1084_vm1, %v6835_v21 }
 0x5a0   : > { %4864 = vmatmul.mubr.msk.f32.gmra.mrb[22].mxu0 %vm1084_vm1, %v6842_v27 }
 0x5a1   : > { %4910 = vmatprep.mubr.msk.f32.mxu0 %vm1084_vm1, %v6802_v43 }
 0x667   : > { %v4856_v36 = vpop.f32.mrb[16].mxu0 }
 0x668   : > { %v1602_v7 = vadd.f32 1e-10, %v4856_v36  ;;  %v1596_v37 = vpop.f32.mrb[17].mxu0 }
 0x669   : > { %v1597_v38 = vadd.f32 1e-10, %v1596_v37 }
 0x66a   : > { %5979 = vrcp.f32 %v1602_v7 }
 0x66b   : > { %5981 = vrcp.f32 %v1597_v38  ;;  %v4859_v41 = vpop.f32.mrb[18].mxu0 }
 0x66c   : > { %v1612_v42 = vadd.f32 1e-10, %v4859_v41  ;;  %v1606_v44 = vpop.f32.mrb[19].mxu0 }
 0x66d   : > { %v1607_v47 = vadd.f32 1e-10, %v1606_v44 }
 0x66e   : > { %5983 = vrcp.f32 %v1612_v42 }
 0x66f   : > { %5985 = vrcp.f32 %v1607_v47  ;;  %v4862_v49 = vpop.f32.mrb[20].mxu0 }
 0x670   : > { %v1622_v52 = vadd.f32 1e-10, %v4862_v49  ;;  %v1616_v61 = vpop.f32.mrb[21].mxu0 }
 0x671   : > { %v1617_v53 = vadd.f32 1e-10, %v1616_v61 }
 0x672   : > { %5987 = vrcp.f32 %v1622_v52 }
 0x673   : > { %5989 = vrcp.f32 %v1617_v53  ;;  %v4865_v35 = vpop.f32.mrb[22].mxu0 }
 0x674   : > { %v5980_v34 = vpop.eup %5979  ;;  %v1632_v40 = vadd.f32 1e-10, %v4865_v35  ;;  %v1626_v39 = vpop.f32.mrb[23].mxu0 }
 0x675   : > { %v5982_v2 = vpop.eup %5981  ;;  %v1627_v5 = vadd.f32 1e-10, %v1626_v39 }
 0x676   : > { %5991 = vrcp.f32 %v1632_v40  ;;  %v5518_v8 = vpack.c.bf16 %v5980_v34, %v5982_v2 }
 0x677   : > { %5993 = vrcp.f32 %v1627_v5 }
 0x678   : > { %v5984_v9 = vpop.eup %5983  ;;  %5519 = vmatprep.subr.bf16.mxu1 %v5518_v8 }
 0x679   : > { %v5986_v45 = vpop.eup %5985  ;;  %5521 = vmatpush3.bf16.msra.mxu1 %v5518_v8 }
 0x67a   : > { %v5522_v18 = vpack.c.bf16 %v5984_v9, %v5986_v45 }
 0x67c   : > { %v5988_v50 = vpop.eup %5987  ;;  %5523 = vmatprep.subr.bf16.mxu1 %v5522_v18 }
 0x67d   : > { %v5990_v12 = vpop.eup %5989  ;;  %5525 = vmatpush3.bf16.msra.mxu1 %v5522_v18 }
 0x67e   : > { %v5526_v51 = vpack.c.bf16 %v5988_v50, %v5990_v12 }
 0x680   : > { %v5992_v13 = vpop.eup %5991  ;;  %5527 = vmatprep.subr.bf16.mxu1 %v5526_v51 }
 0x681   : > { %v5994_v63 = vpop.eup %5993  ;;  %5529 = vmatpush3.bf16.msra.mxu1 %v5526_v51 }
 0x682   : > { %v5530_v3 = vpack.c.bf16 %v5992_v13, %v5994_v63 }
 0x684   : > { %5531 = vmatprep.subr.bf16.mxu1 %v5530_v3 }
 0x685   : > { %5533 = vmatpush3.bf16.msra.mxu1 %v5530_v3 }
 0x688   : > { %4883 = vmatmul.mubr.msk.f32.vlgmr.msra.gmra.mrb[18].mxu1 %vm1084_vm1, %v6855_v33 }
 0x689   : > { %4885 = vmatprep.mubr.msk.f32.mxu1 %vm1084_vm1, %v6857_v58 }
 0x68c   : > { %4886 = vmatmul.mubr.msk.f32.gmra.mrb[20].mxu1 %vm1084_vm1, %v6859_v48 }
 0x68d   : > { %4888 = vmatprep.mubr.msk.f32.mxu1 %vm1084_vm1, %v6861_v54 }
 0x690   : > { %4889 = vmatmul.mubr.msk.f32.gmra.mrb[22].mxu1 %vm1084_vm1, %v6863_v30 }
 0x691   : > { %4891 = vmatprep.mubr.msk.f32.mxu1 %vm1084_vm1, %v6869_v1 }
 0x694   : > { %4892 = vmatmul.mubr.msk.f32.gmra.mrb[24].mxu1 %vm1084_vm1, %v6879_v20 }
 0x695   : > { %4938 = vmatprep.mubr.msk.f32.mxu1 %vm1084_vm1, %v6851_v11 }
 0x75b   : > { %v4884_v22 = vpop.f32.mrb[18].mxu1 }
 0x75c   : > { %v1715_v16 = vadd.f32 1e-10, %v4884_v22  ;;  %v1709_v25 = vpop.f32.mrb[19].mxu1 }
 0x75d   : > { %v1710_v19 = vadd.f32 1e-10, %v1709_v25 }
 0x75e   : > { %5995 = vrcp.f32 %v1715_v16 }
 0x75f   : > { %5997 = vrcp.f32 %v1710_v19  ;;  %v4887_v24 = vpop.f32.mrb[20].mxu1 }
 0x760   : > { %v1725_v28 = vadd.f32 1e-10, %v4887_v24  ;;  %v1719_v29 = vpop.f32.mrb[21].mxu1 }
 0x761   : > { %v1720_v31 = vadd.f32 1e-10, %v1719_v29 }
 0x762   : > { %5999 = vrcp.f32 %v1725_v28 }
 0x763   : > { %6001 = vrcp.f32 %v1720_v31  ;;  %v4890_v60 = vpop.f32.mrb[22].mxu1 }
 0x764   : > { %v1735_v32 = vadd.f32 1e-10, %v4890_v60  ;;  %v1729_v23 = vpop.f32.mrb[23].mxu1 }
 0x765   : > { %v1730_v59 = vadd.f32 1e-10, %v1729_v23 }
 0x766   : > { %6003 = vrcp.f32 %v1735_v32 }
 0x767   : > { %6005 = vrcp.f32 %v1730_v59  ;;  %v4893_v62 = vpop.f32.mrb[24].mxu1 }
 0x768   : > { %v5996_v4 = vpop.eup %5995  ;;  %v1745_v6 = vadd.f32 1e-10, %v4893_v62  ;;  %v1739_v57 = vpop.f32.mrb[25].mxu1 }
 0x769   : > { %v5998_v36 = vpop.eup %5997  ;;  %v1740_v7 = vadd.f32 1e-10, %v1739_v57 }
 0x76a   : > { %6007 = vrcp.f32 %v1745_v6  ;;  %v5534_v37 = vpack.c.bf16 %v5996_v4, %v5998_v36 }
 0x76b   : > { %6009 = vrcp.f32 %v1740_v7 }
 0x76c   : > { %v6000_v38 = vpop.eup %5999  ;;  %5535 = vmatprep.subr.bf16.mxu0 %v5534_v37 }
 0x76d   : > { %v6002_v41 = vpop.eup %6001  ;;  %5537 = vmatpush3.bf16.msra.mxu0 %v5534_v37 }
 0x76e   : > { %v5538_v42 = vpack.c.bf16 %v6000_v38, %v6002_v41 }
 0x770   : > { %v6004_v44 = vpop.eup %6003  ;;  %5539 = vmatprep.subr.bf16.mxu0 %v5538_v42 }
 0x771   : > { %v6006_v47 = vpop.eup %6005  ;;  %5541 = vmatpush3.bf16.msra.mxu0 %v5538_v42 }
 0x772   : > { %v5542_v49 = vpack.c.bf16 %v6004_v44, %v6006_v47 }
 0x774   : > { %v6008_v52 = vpop.eup %6007  ;;  %5543 = vmatprep.subr.bf16.mxu0 %v5542_v49 }
 0x775   : > { %v6010_v61 = vpop.eup %6009  ;;  %5545 = vmatpush3.bf16.msra.mxu0 %v5542_v49 }
 0x776   : > { %v5546_v53 = vpack.c.bf16 %v6008_v52, %v6010_v61 }
 0x778   : > { %5547 = vmatprep.subr.bf16.mxu0 %v5546_v53 }
 0x779   : > { %5549 = vmatpush3.bf16.msra.mxu0 %v5546_v53 }
 0x77c   : > { %4911 = vmatmul.mubr.msk.f32.vlgmr.msra.gmra.mrb[24].mxu0 %vm1084_vm1, %v6805_v56 }
 0x77d   : > { %4913 = vmatprep.mubr.msk.f32.mxu0 %vm1084_vm1, %v6811_v17 }
 0x780   : > { %4914 = vmatmul.mubr.msk.f32.gmra.mrb[26].mxu0 %vm1084_vm1, %v6820_v15 }
 0x781   : > { %4916 = vmatprep.mubr.msk.f32.mxu0 %vm1084_vm1, %v6824_v14 }
 0x784   : > { %4917 = vmatmul.mubr.msk.f32.gmra.mrb[28].mxu0 %vm1084_vm1, %v6831_v26 }
 0x785   : > { %4919 = vmatprep.mubr.msk.f32.mxu0 %vm1084_vm1, %v6835_v21 }
 0x788   : > { %4920 = vmatmul.mubr.msk.f32.gmra.mrb[30].mxu0 %vm1084_vm1, %v6842_v27 }
 0x789   : > { %4966 = vmatprep.mubr.msk.f32.mxu0 %vm1084_vm1, %v6802_v43 }
 0x84f   : > { %v4912_v35 = vpop.f32.mrb[24].mxu0 }
 0x850   : > { %v1828_v34 = vadd.f32 1e-10, %v4912_v35  ;;  %v1822_v40 = vpop.f32.mrb[25].mxu0 }
 0x851   : > { %v1823_v39 = vadd.f32 1e-10, %v1822_v40 }
 0x852   : > { %6011 = vrcp.f32 %v1828_v34 }
 0x853   : > { %6013 = vrcp.f32 %v1823_v39  ;;  %v4915_v2 = vpop.f32.mrb[26].mxu0 }
 0x854   : > { %v1838_v5 = vadd.f32 1e-10, %v4915_v2  ;;  %v1832_v8 = vpop.f32.mrb[27].mxu0 }
 0x855   : > { %v1833_v9 = vadd.f32 1e-10, %v1832_v8 }
 0x856   : > { %6015 = vrcp.f32 %v1838_v5 }
 0x857   : > { %6017 = vrcp.f32 %v1833_v9  ;;  %v4918_v45 = vpop.f32.mrb[28].mxu0 }
 0x858   : > { %v1848_v18 = vadd.f32 1e-10, %v4918_v45  ;;  %v1842_v50 = vpop.f32.mrb[29].mxu0 }
 0x859   : > { %v1843_v12 = vadd.f32 1e-10, %v1842_v50 }
 0x85a   : > { %6019 = vrcp.f32 %v1848_v18 }
 0x85b   : > { %6021 = vrcp.f32 %v1843_v12  ;;  %v4921_v51 = vpop.f32.mrb[30].mxu0 }
 0x85c   : > { %v6012_v13 = vpop.eup %6011  ;;  %v1858_v63 = vadd.f32 1e-10, %v4921_v51  ;;  %v1852_v3 = vpop.f32.mrb[31].mxu0 }
 0x85d   : > { %v6014_v22 = vpop.eup %6013  ;;  %v1853_v16 = vadd.f32 1e-10, %v1852_v3 }
 0x85e   : > { %6023 = vrcp.f32 %v1858_v63  ;;  %v5550_v25 = vpack.c.bf16 %v6012_v13, %v6014_v22 }
 0x85f   : > { %6025 = vrcp.f32 %v1853_v16 }
 0x860   : > { %v6016_v19 = vpop.eup %6015  ;;  %5551 = vmatprep.subr.bf16.mxu1 %v5550_v25 }
 0x861   : > { %v6018_v24 = vpop.eup %6017  ;;  %5553 = vmatpush3.bf16.msra.mxu1 %v5550_v25 }
 0x862   : > { %v5554_v28 = vpack.c.bf16 %v6016_v19, %v6018_v24 }
 0x864   : > { %v6020_v29 = vpop.eup %6019  ;;  %5555 = vmatprep.subr.bf16.mxu1 %v5554_v28 }
 0x865   : > { %v6022_v31 = vpop.eup %6021  ;;  %5557 = vmatpush3.bf16.msra.mxu1 %v5554_v28 }
 0x866   : > { %v5558_v60 = vpack.c.bf16 %v6020_v29, %v6022_v31 }
 0x868   : > { %v6024_v32 = vpop.eup %6023  ;;  %5559 = vmatprep.subr.bf16.mxu1 %v5558_v60 }
 0x869   : > { %v6026_v23 = vpop.eup %6025  ;;  %5561 = vmatpush3.bf16.msra.mxu1 %v5558_v60 }
 0x86a   : > { %v5562_v59 = vpack.c.bf16 %v6024_v32, %v6026_v23 }
 0x86c   : > { %5563 = vmatprep.subr.bf16.mxu1 %v5562_v59 }
 0x86d   : > { %5565 = vmatpush3.bf16.msra.mxu1 %v5562_v59 }
 0x870   : > { %4939 = vmatmul.mubr.msk.f32.vlgmr.msra.gmra.mrb[26].mxu1 %vm1084_vm1, %v6855_v33 }
 0x871   : > { %4941 = vmatprep.mubr.msk.f32.mxu1 %vm1084_vm1, %v6857_v58 }
 0x874   : > { %4942 = vmatmul.mubr.msk.f32.gmra.mrb[28].mxu1 %vm1084_vm1, %v6859_v48 }
 0x875   : > { %4944 = vmatprep.mubr.msk.f32.mxu1 %vm1084_vm1, %v6861_v54 }
 0x878   : > { %4945 = vmatmul.mubr.msk.f32.gmra.mrb[30].mxu1 %vm1084_vm1, %v6863_v30 }
 0x879   : > { %4947 = vmatprep.mubr.msk.f32.mxu1 %vm1084_vm1, %v6869_v1 }
 0x87c   : > { %4948 = vmatmul.mubr.msk.f32.gmra.mrb[32].mxu1 %vm1084_vm1, %v6879_v20 }
 0x87d   : > { %4994 = vmatprep.mubr.msk.f32.mxu1 %vm1084_vm1, %v6851_v11 }
 0x943   : > { %v4940_v62 = vpop.f32.mrb[26].mxu1 }
 0x944   : > { %v1941_v4 = vadd.f32 1e-10, %v4940_v62  ;;  %v1935_v6 = vpop.f32.mrb[27].mxu1 }
 0x945   : > { %v1936_v57 = vadd.f32 1e-10, %v1935_v6 }
 0x946   : > { %6027 = vrcp.f32 %v1941_v4 }
 0x947   : > { %6029 = vrcp.f32 %v1936_v57  ;;  %v4943_v36 = vpop.f32.mrb[28].mxu1 }
 0x948   : > { %v1951_v7 = vadd.f32 1e-10, %v4943_v36  ;;  %v1945_v37 = vpop.f32.mrb[29].mxu1 }
 0x949   : > { %v1946_v38 = vadd.f32 1e-10, %v1945_v37 }
 0x94a   : > { %6031 = vrcp.f32 %v1951_v7 }
 0x94b   : > { %6033 = vrcp.f32 %v1946_v38  ;;  %v4946_v41 = vpop.f32.mrb[30].mxu1 }
 0x94c   : > { %v1961_v42 = vadd.f32 1e-10, %v4946_v41  ;;  %v1955_v44 = vpop.f32.mrb[31].mxu1 }
 0x94d   : > { %v1956_v47 = vadd.f32 1e-10, %v1955_v44 }
 0x94e   : > { %6035 = vrcp.f32 %v1961_v42 }
 0x94f   : > { %6037 = vrcp.f32 %v1956_v47  ;;  %v4949_v49 = vpop.f32.mrb[32].mxu1 }
 0x950   : > { %v6028_v52 = vpop.eup %6027  ;;  %v1971_v61 = vadd.f32 1e-10, %v4949_v49  ;;  %v1965_v53 = vpop.f32.mrb[33].mxu1 }
 0x951   : > { %v6030_v35 = vpop.eup %6029  ;;  %v1966_v34 = vadd.f32 1e-10, %v1965_v53 }
 0x952   : > { %6039 = vrcp.f32 %v1971_v61  ;;  %v5566_v40 = vpack.c.bf16 %v6028_v52, %v6030_v35 }
 0x953   : > { %6041 = vrcp.f32 %v1966_v34 }
 0x954   : > { %v6032_v39 = vpop.eup %6031  ;;  %5567 = vmatprep.subr.bf16.mxu0 %v5566_v40 }
 0x955   : > { %v6034_v2 = vpop.eup %6033  ;;  %5569 = vmatpush3.bf16.msra.mxu0 %v5566_v40 }
 0x956   : > { %v5570_v5 = vpack.c.bf16 %v6032_v39, %v6034_v2 }
 0x958   : > { %v6036_v8 = vpop.eup %6035  ;;  %5571 = vmatprep.subr.bf16.mxu0 %v5570_v5 }
 0x959   : > { %v6038_v9 = vpop.eup %6037  ;;  %5573 = vmatpush3.bf16.msra.mxu0 %v5570_v5 }
 0x95a   : > { %v5574_v45 = vpack.c.bf16 %v6036_v8, %v6038_v9 }
 0x95c   : > { %v6040_v18 = vpop.eup %6039  ;;  %5575 = vmatprep.subr.bf16.mxu0 %v5574_v45 }
 0x95d   : > { %v6042_v50 = vpop.eup %6041  ;;  %5577 = vmatpush3.bf16.msra.mxu0 %v5574_v45 }
 0x95e   : > { %v5578_v12 = vpack.c.bf16 %v6040_v18, %v6042_v50 }
 0x960   : > { %5579 = vmatprep.subr.bf16.mxu0 %v5578_v12 }
 0x961   : > { %5581 = vmatpush3.bf16.msra.mxu0 %v5578_v12 }
 0x964   : > { %4967 = vmatmul.mubr.msk.f32.vlgmr.msra.gmra.mrb[32].mxu0 %vm1084_vm1, %v6805_v56 }
 0x965   : > { %4969 = vmatprep.mubr.msk.f32.mxu0 %vm1084_vm1, %v6811_v17 }
 0x968   : > { %4970 = vmatmul.mubr.msk.f32.gmra.mrb[34].mxu0 %vm1084_vm1, %v6820_v15 }
 0x969   : > { %4972 = vmatprep.mubr.msk.f32.mxu0 %vm1084_vm1, %v6824_v14 }
 0x96c   : > { %4973 = vmatmul.mubr.msk.f32.gmra.mrb[36].mxu0 %vm1084_vm1, %v6831_v26 }
 0x96d   : > { %4975 = vmatprep.mubr.msk.f32.mxu0 %vm1084_vm1, %v6835_v21 }
 0x970   : > { %4976 = vmatmul.mubr.msk.f32.gmra.mrb[38].mxu0 %vm1084_vm1, %v6842_v27 }
 0x971   : > { %5022 = vmatprep.mubr.msk.f32.mxu0 %vm1084_vm1, %v6802_v43 }
 0xa37   : > { %v4968_v51 = vpop.f32.mrb[32].mxu0 }
 0xa38   : > { %v2054_v13 = vadd.f32 1e-10, %v4968_v51  ;;  %v2048_v63 = vpop.f32.mrb[33].mxu0 }
 0xa39   : > { %v2049_v3 = vadd.f32 1e-10, %v2048_v63 }
 0xa3a   : > { %6043 = vrcp.f32 %v2054_v13 }
 0xa3b   : > { %6045 = vrcp.f32 %v2049_v3  ;;  %v4971_v22 = vpop.f32.mrb[34].mxu0 }
 0xa3c   : > { %v2064_v16 = vadd.f32 1e-10, %v4971_v22  ;;  %v2058_v25 = vpop.f32.mrb[35].mxu0 }
 0xa3d   : > { %v2059_v19 = vadd.f32 1e-10, %v2058_v25 }
 0xa3e   : > { %6047 = vrcp.f32 %v2064_v16 }
 0xa3f   : > { %6049 = vrcp.f32 %v2059_v19  ;;  %v4974_v24 = vpop.f32.mrb[36].mxu0 }
 0xa40   : > { %v2074_v28 = vadd.f32 1e-10, %v4974_v24  ;;  %v2068_v29 = vpop.f32.mrb[37].mxu0 }
 0xa41   : > { %v2069_v31 = vadd.f32 1e-10, %v2068_v29 }
 0xa42   : > { %6051 = vrcp.f32 %v2074_v28 }
 0xa43   : > { %6053 = vrcp.f32 %v2069_v31  ;;  %v4977_v60 = vpop.f32.mrb[38].mxu0 }
 0xa44   : > { %v6044_v32 = vpop.eup %6043  ;;  %v2084_v23 = vadd.f32 1e-10, %v4977_v60  ;;  %v2078_v59 = vpop.f32.mrb[39].mxu0 }
 0xa45   : > { %v6046_v62 = vpop.eup %6045  ;;  %v2079_v4 = vadd.f32 1e-10, %v2078_v59 }
 0xa46   : > { %6055 = vrcp.f32 %v2084_v23  ;;  %v5582_v6 = vpack.c.bf16 %v6044_v32, %v6046_v62 }
 0xa47   : > { %6057 = vrcp.f32 %v2079_v4 }
 0xa48   : > { %v6048_v57 = vpop.eup %6047  ;;  %5583 = vmatprep.subr.bf16.mxu1 %v5582_v6 }
 0xa49   : > { %v6050_v36 = vpop.eup %6049  ;;  %5585 = vmatpush3.bf16.msra.mxu1 %v5582_v6 }
 0xa4a   : > { %v5586_v7 = vpack.c.bf16 %v6048_v57, %v6050_v36 }
 0xa4c   : > { %v6052_v37 = vpop.eup %6051  ;;  %5587 = vmatprep.subr.bf16.mxu1 %v5586_v7 }
 0xa4d   : > { %v6054_v38 = vpop.eup %6053  ;;  %5589 = vmatpush3.bf16.msra.mxu1 %v5586_v7 }
 0xa4e   : > { %v5590_v41 = vpack.c.bf16 %v6052_v37, %v6054_v38 }
 0xa50   : > { %v6056_v42 = vpop.eup %6055  ;;  %5591 = vmatprep.subr.bf16.mxu1 %v5590_v41 }
 0xa51   : > { %v6058_v44 = vpop.eup %6057  ;;  %5593 = vmatpush3.bf16.msra.mxu1 %v5590_v41 }
 0xa52   : > { %v5594_v47 = vpack.c.bf16 %v6056_v42, %v6058_v44 }
 0xa54   : > { %5595 = vmatprep.subr.bf16.mxu1 %v5594_v47 }
 0xa55   : > { %5597 = vmatpush3.bf16.msra.mxu1 %v5594_v47 }
 0xa58   : > { %4995 = vmatmul.mubr.msk.f32.vlgmr.msra.gmra.mrb[34].mxu1 %vm1084_vm1, %v6855_v33 }
 0xa59   : > { %4997 = vmatprep.mubr.msk.f32.mxu1 %vm1084_vm1, %v6857_v58 }
 0xa5c   : > { %4998 = vmatmul.mubr.msk.f32.gmra.mrb[36].mxu1 %vm1084_vm1, %v6859_v48 }
 0xa5d   : > { %5000 = vmatprep.mubr.msk.f32.mxu1 %vm1084_vm1, %v6861_v54 }
 0xa60   : > { %5001 = vmatmul.mubr.msk.f32.gmra.mrb[38].mxu1 %vm1084_vm1, %v6863_v30 }
 0xa61   : > { %5003 = vmatprep.mubr.msk.f32.mxu1 %vm1084_vm1, %v6869_v1 }
 0xa64   : > { %5004 = vmatmul.mubr.msk.f32.gmra.mrb[40].mxu1 %vm1084_vm1, %v6879_v20 }
 0xa65   : > { %5050 = vmatprep.mubr.msk.f32.mxu1 %vm1084_vm1, %v6851_v11 }
 0xb2b   : > { %v4996_v49 = vpop.f32.mrb[34].mxu1 }
 0xb2c   : > { %v2167_v52 = vadd.f32 1e-10, %v4996_v49  ;;  %v2161_v61 = vpop.f32.mrb[35].mxu1 }
 0xb2d   : > { %v2162_v53 = vadd.f32 1e-10, %v2161_v61 }
 0xb2e   : > { %6059 = vrcp.f32 %v2167_v52 }
 0xb2f   : > { %6061 = vrcp.f32 %v2162_v53  ;;  %v4999_v35 = vpop.f32.mrb[36].mxu1 }
 0xb30   : > { %v2177_v34 = vadd.f32 1e-10, %v4999_v35  ;;  %v2171_v40 = vpop.f32.mrb[37].mxu1 }
 0xb31   : > { %v2172_v39 = vadd.f32 1e-10, %v2171_v40 }
 0xb32   : > { %6063 = vrcp.f32 %v2177_v34 }
 0xb33   : > { %6065 = vrcp.f32 %v2172_v39  ;;  %v5002_v2 = vpop.f32.mrb[38].mxu1 }
 0xb34   : > { %v2187_v5 = vadd.f32 1e-10, %v5002_v2  ;;  %v2181_v8 = vpop.f32.mrb[39].mxu1 }
 0xb35   : > { %v2182_v9 = vadd.f32 1e-10, %v2181_v8 }
 0xb36   : > { %6067 = vrcp.f32 %v2187_v5 }
 0xb37   : > { %6069 = vrcp.f32 %v2182_v9  ;;  %v5005_v45 = vpop.f32.mrb[40].mxu1 }
 0xb38   : > { %v6060_v18 = vpop.eup %6059  ;;  %v2197_v50 = vadd.f32 1e-10, %v5005_v45  ;;  %v2191_v12 = vpop.f32.mrb[41].mxu1 }
 0xb39   : > { %v6062_v51 = vpop.eup %6061  ;;  %v2192_v13 = vadd.f32 1e-10, %v2191_v12 }
 0xb3a   : > { %6071 = vrcp.f32 %v2197_v50  ;;  %v5598_v63 = vpack.c.bf16 %v6060_v18, %v6062_v51 }
 0xb3b   : > { %6073 = vrcp.f32 %v2192_v13 }
 0xb3c   : > { %v6064_v3 = vpop.eup %6063  ;;  %5599 = vmatprep.subr.bf16.mxu0 %v5598_v63 }
 0xb3d   : > { %v6066_v22 = vpop.eup %6065  ;;  %5601 = vmatpush3.bf16.msra.mxu0 %v5598_v63 }
 0xb3e   : > { %v5602_v16 = vpack.c.bf16 %v6064_v3, %v6066_v22 }
 0xb40   : > { %v6068_v25 = vpop.eup %6067  ;;  %5603 = vmatprep.subr.bf16.mxu0 %v5602_v16 }
 0xb41   : > { %v6070_v19 = vpop.eup %6069  ;;  %5605 = vmatpush3.bf16.msra.mxu0 %v5602_v16 }
 0xb42   : > { %v5606_v24 = vpack.c.bf16 %v6068_v25, %v6070_v19 }
 0xb44   : > { %v6072_v28 = vpop.eup %6071  ;;  %5607 = vmatprep.subr.bf16.mxu0 %v5606_v24 }
 0xb45   : > { %v6074_v29 = vpop.eup %6073  ;;  %5609 = vmatpush3.bf16.msra.mxu0 %v5606_v24 }
 0xb46   : > { %v5610_v31 = vpack.c.bf16 %v6072_v28, %v6074_v29 }
 0xb48   : > { %5611 = vmatprep.subr.bf16.mxu0 %v5610_v31 }
 0xb49   : > { %5613 = vmatpush3.bf16.msra.mxu0 %v5610_v31 }
 0xb4c   : > { %5023 = vmatmul.mubr.msk.f32.vlgmr.msra.gmra.mrb[40].mxu0 %vm1084_vm1, %v6805_v56 }
 0xb4d   : > { %5025 = vmatprep.mubr.msk.f32.mxu0 %vm1084_vm1, %v6811_v17 }
 0xb50   : > { %5026 = vmatmul.mubr.msk.f32.gmra.mrb[42].mxu0 %vm1084_vm1, %v6820_v15 }
 0xb51   : > { %5028 = vmatprep.mubr.msk.f32.mxu0 %vm1084_vm1, %v6824_v14 }
 0xb54   : > { %5029 = vmatmul.mubr.msk.f32.gmra.mrb[44].mxu0 %vm1084_vm1, %v6831_v26 }
 0xb55   : > { %5031 = vmatprep.mubr.msk.f32.mxu0 %vm1084_vm1, %v6835_v21 }
 0xb58   : > { %5032 = vmatmul.mubr.msk.f32.gmra.mrb[46].mxu0 %vm1084_vm1, %v6842_v27 }
 0xb59   : > { %5078 = vmatprep.mubr.msk.f32.mxu0 %vm1084_vm1, %v6802_v43 }
 0xc1f   : > { %v5024_v60 = vpop.f32.mrb[40].mxu0 }
 0xc20   : > { %v2280_v32 = vadd.f32 1e-10, %v5024_v60  ;;  %v2274_v23 = vpop.f32.mrb[41].mxu0 }
 0xc21   : > { %v2275_v59 = vadd.f32 1e-10, %v2274_v23 }
 0xc22   : > { %6075 = vrcp.f32 %v2280_v32 }
 0xc23   : > { %6077 = vrcp.f32 %v2275_v59  ;;  %v5027_v62 = vpop.f32.mrb[42].mxu0 }
 0xc24   : > { %v2290_v4 = vadd.f32 1e-10, %v5027_v62  ;;  %v2284_v6 = vpop.f32.mrb[43].mxu0 }
 0xc25   : > { %v2285_v57 = vadd.f32 1e-10, %v2284_v6 }
 0xc26   : > { %6079 = vrcp.f32 %v2290_v4 }
 0xc27   : > { %6081 = vrcp.f32 %v2285_v57  ;;  %v5030_v36 = vpop.f32.mrb[44].mxu0 }
 0xc28   : > { %v2300_v7 = vadd.f32 1e-10, %v5030_v36  ;;  %v2294_v37 = vpop.f32.mrb[45].mxu0 }
 0xc29   : > { %v2295_v38 = vadd.f32 1e-10, %v2294_v37 }
 0xc2a   : > { %6083 = vrcp.f32 %v2300_v7 }
 0xc2b   : > { %6085 = vrcp.f32 %v2295_v38  ;;  %v5033_v41 = vpop.f32.mrb[46].mxu0 }
 0xc2c   : > { %v6076_v42 = vpop.eup %6075  ;;  %v2310_v44 = vadd.f32 1e-10, %v5033_v41  ;;  %v2304_v47 = vpop.f32.mrb[47].mxu0 }
 0xc2d   : > { %v6078_v49 = vpop.eup %6077  ;;  %v2305_v52 = vadd.f32 1e-10, %v2304_v47 }
 0xc2e   : > { %6087 = vrcp.f32 %v2310_v44  ;;  %v5614_v61 = vpack.c.bf16 %v6076_v42, %v6078_v49 }
 0xc2f   : > { %6089 = vrcp.f32 %v2305_v52 }
 0xc30   : > { %v6080_v53 = vpop.eup %6079  ;;  %5615 = vmatprep.subr.bf16.mxu1 %v5614_v61 }
 0xc31   : > { %v6082_v35 = vpop.eup %6081  ;;  %5617 = vmatpush3.bf16.msra.mxu1 %v5614_v61 }
 0xc32   : > { %v5618_v34 = vpack.c.bf16 %v6080_v53, %v6082_v35 }
 0xc34   : > { %v6084_v40 = vpop.eup %6083  ;;  %5619 = vmatprep.subr.bf16.mxu1 %v5618_v34 }
 0xc35   : > { %v6086_v39 = vpop.eup %6085  ;;  %5621 = vmatpush3.bf16.msra.mxu1 %v5618_v34 }
 0xc36   : > { %v5622_v2 = vpack.c.bf16 %v6084_v40, %v6086_v39 }
 0xc38   : > { %v6088_v5 = vpop.eup %6087  ;;  %5623 = vmatprep.subr.bf16.mxu1 %v5622_v2 }
 0xc39   : > { %v6090_v8 = vpop.eup %6089  ;;  %5625 = vmatpush3.bf16.msra.mxu1 %v5622_v2 }
 0xc3a   : > { %v5626_v9 = vpack.c.bf16 %v6088_v5, %v6090_v8 }
 0xc3c   : > { %5627 = vmatprep.subr.bf16.mxu1 %v5626_v9 }
 0xc3d   : > { %5629 = vmatpush3.bf16.msra.mxu1 %v5626_v9 }
 0xc40   : > { %5051 = vmatmul.mubr.msk.f32.vlgmr.msra.gmra.mrb[42].mxu1 %vm1084_vm1, %v6855_v33 }
 0xc41   : > { %5053 = vmatprep.mubr.msk.f32.mxu1 %vm1084_vm1, %v6857_v58 }
 0xc44   : > { %5054 = vmatmul.mubr.msk.f32.gmra.mrb[44].mxu1 %vm1084_vm1, %v6859_v48 }
 0xc45   : > { %5056 = vmatprep.mubr.msk.f32.mxu1 %vm1084_vm1, %v6861_v54 }
 0xc48   : > { %5057 = vmatmul.mubr.msk.f32.gmra.mrb[46].mxu1 %vm1084_vm1, %v6863_v30 }
 0xc49   : > { %5059 = vmatprep.mubr.msk.f32.mxu1 %vm1084_vm1, %v6869_v1 }
 0xc4c   : > { %5060 = vmatmul.mubr.msk.f32.gmra.mrb[48].mxu1 %vm1084_vm1, %v6879_v20 }
 0xc4d   : > { %5106 = vmatprep.mubr.msk.f32.mxu1 %vm1084_vm1, %v6851_v11 }
 0xd13   : > { %v5052_v45 = vpop.f32.mrb[42].mxu1 }
 0xd14   : > { %v2393_v18 = vadd.f32 1e-10, %v5052_v45  ;;  %v2387_v50 = vpop.f32.mrb[43].mxu1 }
 0xd15   : > { %v2388_v12 = vadd.f32 1e-10, %v2387_v50 }
 0xd16   : > { %6091 = vrcp.f32 %v2393_v18 }
 0xd17   : > { %6093 = vrcp.f32 %v2388_v12  ;;  %v5055_v51 = vpop.f32.mrb[44].mxu1 }
 0xd18   : > { %v2403_v13 = vadd.f32 1e-10, %v5055_v51  ;;  %v2397_v63 = vpop.f32.mrb[45].mxu1 }
 0xd19   : > { %v2398_v3 = vadd.f32 1e-10, %v2397_v63 }
 0xd1a   : > { %6095 = vrcp.f32 %v2403_v13 }
 0xd1b   : > { %6097 = vrcp.f32 %v2398_v3  ;;  %v5058_v22 = vpop.f32.mrb[46].mxu1 }
 0xd1c   : > { %v2413_v16 = vadd.f32 1e-10, %v5058_v22  ;;  %v2407_v25 = vpop.f32.mrb[47].mxu1 }
 0xd1d   : > { %v2408_v19 = vadd.f32 1e-10, %v2407_v25 }
 0xd1e   : > { %6099 = vrcp.f32 %v2413_v16 }
 0xd1f   : > { %6101 = vrcp.f32 %v2408_v19  ;;  %v5061_v24 = vpop.f32.mrb[48].mxu1 }
 0xd20   : > { %v6092_v28 = vpop.eup %6091  ;;  %v2423_v29 = vadd.f32 1e-10, %v5061_v24  ;;  %v2417_v31 = vpop.f32.mrb[49].mxu1 }
 0xd21   : > { %v6094_v60 = vpop.eup %6093  ;;  %v2418_v32 = vadd.f32 1e-10, %v2417_v31 }
 0xd22   : > { %6103 = vrcp.f32 %v2423_v29  ;;  %v5630_v23 = vpack.c.bf16 %v6092_v28, %v6094_v60 }
 0xd23   : > { %6105 = vrcp.f32 %v2418_v32 }
 0xd24   : > { %v6096_v59 = vpop.eup %6095  ;;  %5631 = vmatprep.subr.bf16.mxu0 %v5630_v23 }
 0xd25   : > { %v6098_v62 = vpop.eup %6097  ;;  %5633 = vmatpush3.bf16.msra.mxu0 %v5630_v23 }
 0xd26   : > { %v5634_v4 = vpack.c.bf16 %v6096_v59, %v6098_v62 }
 0xd28   : > { %v6100_v6 = vpop.eup %6099  ;;  %5635 = vmatprep.subr.bf16.mxu0 %v5634_v4 }
 0xd29   : > { %v6102_v57 = vpop.eup %6101  ;;  %5637 = vmatpush3.bf16.msra.mxu0 %v5634_v4 }
 0xd2a   : > { %v5638_v36 = vpack.c.bf16 %v6100_v6, %v6102_v57 }
 0xd2c   : > { %v6104_v7 = vpop.eup %6103  ;;  %5639 = vmatprep.subr.bf16.mxu0 %v5638_v36 }
 0xd2d   : > { %v6106_v37 = vpop.eup %6105  ;;  %5641 = vmatpush3.bf16.msra.mxu0 %v5638_v36 }
 0xd2e   : > { %v5642_v38 = vpack.c.bf16 %v6104_v7, %v6106_v37 }
 0xd30   : > { %5643 = vmatprep.subr.bf16.mxu0 %v5642_v38 }
 0xd31   : > { %5645 = vmatpush3.bf16.msra.mxu0 %v5642_v38 }
 0xd34   : > { %5079 = vmatmul.mubr.msk.f32.vlgmr.msra.gmra.mrb[48].mxu0 %vm1084_vm1, %v6805_v56 }
 0xd35   : > { %5081 = vmatprep.mubr.msk.f32.mxu0 %vm1084_vm1, %v6811_v17 }
 0xd38   : > { %5082 = vmatmul.mubr.msk.f32.gmra.mrb[50].mxu0 %vm1084_vm1, %v6820_v15 }
 0xd39   : > { %5084 = vmatprep.mubr.msk.f32.mxu0 %vm1084_vm1, %v6824_v14 }
 0xd3c   : > { %5085 = vmatmul.mubr.msk.f32.gmra.mrb[52].mxu0 %vm1084_vm1, %v6831_v26 }
 0xd3d   : > { %5087 = vmatprep.mubr.msk.f32.mxu0 %vm1084_vm1, %v6835_v21 }
 0xd40   : > { %5088 = vmatmul.mubr.msk.f32.gmra.mrb[54].mxu0 %vm1084_vm1, %v6842_v27 }
 0xd41   : > { %5134 = vmatprep.mubr.msk.f32.mxu0 %vm1084_vm1, %v6802_v43 }
 0xe07   : > { %v5080_v41 = vpop.f32.mrb[48].mxu0 }
 0xe08   : > { %v2506_v42 = vadd.f32 1e-10, %v5080_v41  ;;  %v2500_v44 = vpop.f32.mrb[49].mxu0 }
 0xe09   : > { %v2501_v47 = vadd.f32 1e-10, %v2500_v44 }
 0xe0a   : > { %6107 = vrcp.f32 %v2506_v42 }
 0xe0b   : > { %6109 = vrcp.f32 %v2501_v47  ;;  %v5083_v49 = vpop.f32.mrb[50].mxu0 }
 0xe0c   : > { %v2516_v52 = vadd.f32 1e-10, %v5083_v49  ;;  %v2510_v61 = vpop.f32.mrb[51].mxu0 }
 0xe0d   : > { %v2511_v53 = vadd.f32 1e-10, %v2510_v61 }
 0xe0e   : > { %6111 = vrcp.f32 %v2516_v52 }
 0xe0f   : > { %6113 = vrcp.f32 %v2511_v53  ;;  %v5086_v35 = vpop.f32.mrb[52].mxu0 }
 0xe10   : > { %v2526_v34 = vadd.f32 1e-10, %v5086_v35  ;;  %v2520_v40 = vpop.f32.mrb[53].mxu0 }
 0xe11   : > { %v2521_v39 = vadd.f32 1e-10, %v2520_v40 }
 0xe12   : > { %6115 = vrcp.f32 %v2526_v34 }
 0xe13   : > { %6117 = vrcp.f32 %v2521_v39  ;;  %v5089_v2 = vpop.f32.mrb[54].mxu0 }
 0xe14   : > { %v6108_v5 = vpop.eup %6107  ;;  %v2536_v8 = vadd.f32 1e-10, %v5089_v2  ;;  %v2530_v9 = vpop.f32.mrb[55].mxu0 }
 0xe15   : > { %v6110_v45 = vpop.eup %6109  ;;  %v2531_v18 = vadd.f32 1e-10, %v2530_v9 }
 0xe16   : > { %6119 = vrcp.f32 %v2536_v8  ;;  %v5646_v50 = vpack.c.bf16 %v6108_v5, %v6110_v45 }
 0xe17   : > { %6121 = vrcp.f32 %v2531_v18 }
 0xe18   : > { %v6112_v12 = vpop.eup %6111  ;;  %5647 = vmatprep.subr.bf16.mxu1 %v5646_v50 }
 0xe19   : > { %v6114_v51 = vpop.eup %6113  ;;  %5649 = vmatpush3.bf16.msra.mxu1 %v5646_v50 }
 0xe1a   : > { %v5650_v13 = vpack.c.bf16 %v6112_v12, %v6114_v51 }
 0xe1c   : > { %v6116_v63 = vpop.eup %6115  ;;  %5651 = vmatprep.subr.bf16.mxu1 %v5650_v13 }
 0xe1d   : > { %v6118_v3 = vpop.eup %6117  ;;  %5653 = vmatpush3.bf16.msra.mxu1 %v5650_v13 }
 0xe1e   : > { %v5654_v22 = vpack.c.bf16 %v6116_v63, %v6118_v3 }
 0xe20   : > { %v6120_v16 = vpop.eup %6119  ;;  %5655 = vmatprep.subr.bf16.mxu1 %v5654_v22 }
 0xe21   : > { %v6122_v25 = vpop.eup %6121  ;;  %5657 = vmatpush3.bf16.msra.mxu1 %v5654_v22 }
 0xe22   : > { %v5658_v19 = vpack.c.bf16 %v6120_v16, %v6122_v25 }
 0xe24   : > { %5659 = vmatprep.subr.bf16.mxu1 %v5658_v19 }
 0xe25   : > { %5661 = vmatpush3.bf16.msra.mxu1 %v5658_v19 }
 0xe28   : > { %5107 = vmatmul.mubr.msk.f32.vlgmr.msra.gmra.mrb[50].mxu1 %vm1084_vm1, %v6855_v33 }
 0xe29   : > { %5109 = vmatprep.mubr.msk.f32.mxu1 %vm1084_vm1, %v6857_v58 }
 0xe2c   : > { %5110 = vmatmul.mubr.msk.f32.gmra.mrb[52].mxu1 %vm1084_vm1, %v6859_v48 }
 0xe2d   : > { %5112 = vmatprep.mubr.msk.f32.mxu1 %vm1084_vm1, %v6861_v54 }
 0xe30   : > { %5113 = vmatmul.mubr.msk.f32.gmra.mrb[54].mxu1 %vm1084_vm1, %v6863_v30 }
 0xe31   : > { %5115 = vmatprep.mubr.msk.f32.mxu1 %vm1084_vm1, %v6869_v1 }
 0xe34   : > { %5116 = vmatmul.mubr.msk.f32.gmra.mrb[56].mxu1 %vm1084_vm1, %v6879_v20 }
 0xe35   : > { %5162 = vmatprep.mubr.msk.f32.mxu1 %vm1084_vm1, %v6851_v11 }
 0xefb   : > { %v5108_v24 = vpop.f32.mrb[50].mxu1 }
 0xefc   : > { %v2619_v28 = vadd.f32 1e-10, %v5108_v24  ;;  %v2613_v29 = vpop.f32.mrb[51].mxu1 }
 0xefd   : > { %v2614_v31 = vadd.f32 1e-10, %v2613_v29 }
 0xefe   : > { %6123 = vrcp.f32 %v2619_v28 }
 0xeff   : > { %6125 = vrcp.f32 %v2614_v31  ;;  %v5111_v60 = vpop.f32.mrb[52].mxu1 }
 0xf00   : > { %v2629_v32 = vadd.f32 1e-10, %v5111_v60  ;;  %v2623_v23 = vpop.f32.mrb[53].mxu1 }
 0xf01   : > { %v2624_v59 = vadd.f32 1e-10, %v2623_v23 }
 0xf02   : > { %6127 = vrcp.f32 %v2629_v32 }
 0xf03   : > { %6129 = vrcp.f32 %v2624_v59  ;;  %v5114_v62 = vpop.f32.mrb[54].mxu1 }
 0xf04   : > { %v2639_v4 = vadd.f32 1e-10, %v5114_v62  ;;  %v2633_v6 = vpop.f32.mrb[55].mxu1 }
 0xf05   : > { %v2634_v57 = vadd.f32 1e-10, %v2633_v6 }
 0xf06   : > { %6131 = vrcp.f32 %v2639_v4 }
 0xf07   : > { %6133 = vrcp.f32 %v2634_v57  ;;  %v5117_v36 = vpop.f32.mrb[56].mxu1 }
 0xf08   : > { %v6124_v7 = vpop.eup %6123  ;;  %v2649_v37 = vadd.f32 1e-10, %v5117_v36  ;;  %v2643_v38 = vpop.f32.mrb[57].mxu1 }
 0xf09   : > { %v6126_v41 = vpop.eup %6125  ;;  %v2644_v42 = vadd.f32 1e-10, %v2643_v38 }
 0xf0a   : > { %6135 = vrcp.f32 %v2649_v37  ;;  %v5662_v44 = vpack.c.bf16 %v6124_v7, %v6126_v41 }
 0xf0b   : > { %6137 = vrcp.f32 %v2644_v42 }
 0xf0c   : > { %v6128_v47 = vpop.eup %6127  ;;  %5663 = vmatprep.subr.bf16.mxu0 %v5662_v44 }
 0xf0d   : > { %v6130_v49 = vpop.eup %6129  ;;  %5665 = vmatpush3.bf16.msra.mxu0 %v5662_v44 }
 0xf0e   : > { %v5666_v52 = vpack.c.bf16 %v6128_v47, %v6130_v49 }
 0xf10   : > { %v6132_v61 = vpop.eup %6131  ;;  %5667 = vmatprep.subr.bf16.mxu0 %v5666_v52 }
 0xf11   : > { %v6134_v53 = vpop.eup %6133  ;;  %5669 = vmatpush3.bf16.msra.mxu0 %v5666_v52 }
 0xf12   : > { %v5670_v35 = vpack.c.bf16 %v6132_v61, %v6134_v53 }
 0xf14   : > { %v6136_v34 = vpop.eup %6135  ;;  %5671 = vmatprep.subr.bf16.mxu0 %v5670_v35 }
 0xf15   : > { %v6138_v40 = vpop.eup %6137  ;;  %5673 = vmatpush3.bf16.msra.mxu0 %v5670_v35 }
 0xf16   : > { %v5674_v39 = vpack.c.bf16 %v6136_v34, %v6138_v40 }
 0xf18   : > { %5675 = vmatprep.subr.bf16.mxu0 %v5674_v39 }
 0xf19   : > { %5677 = vmatpush3.bf16.msra.mxu0 %v5674_v39 }
 0xf1c   : > { %5135 = vmatmul.mubr.msk.f32.vlgmr.msra.gmra.mrb[56].mxu0 %vm1084_vm1, %v6805_v56 }
 0xf1d   : > { %5137 = vmatprep.mubr.msk.f32.mxu0 %vm1084_vm1, %v6811_v17 }
 0xf20   : > { %5138 = vmatmul.mubr.msk.f32.gmra.mrb[58].mxu0 %vm1084_vm1, %v6820_v15 }
 0xf21   : > { %5140 = vmatprep.mubr.msk.f32.mxu0 %vm1084_vm1, %v6824_v14 }
 0xf24   : > { %5141 = vmatmul.mubr.msk.f32.gmra.mrb[60].mxu0 %vm1084_vm1, %v6831_v26 }
 0xf25   : > { %5143 = vmatprep.mubr.msk.f32.mxu0 %vm1084_vm1, %v6835_v21 }
 0xf28   : > { %5144 = vmatmul.mubr.msk.f32.gmra.mrb[62].mxu0 %vm1084_vm1, %v6842_v27 }
 0xf29   : > { %5190 = vmatprep.mubr.msk.f32.mxu0 %vm1084_vm1, %v6802_v43 }
 0xfef   : > { %v5136_v2 = vpop.f32.mrb[56].mxu0 }
 0xff0   : > { %v2732_v5 = vadd.f32 1e-10, %v5136_v2  ;;  %v2726_v8 = vpop.f32.mrb[57].mxu0 }
 0xff1   : > { %v2727_v9 = vadd.f32 1e-10, %v2726_v8 }
 0xff2   : > { %6139 = vrcp.f32 %v2732_v5 }
 0xff3   : > { %6141 = vrcp.f32 %v2727_v9  ;;  %v5139_v45 = vpop.f32.mrb[58].mxu0 }
 0xff4   : > { %v2742_v18 = vadd.f32 1e-10, %v5139_v45  ;;  %v2736_v50 = vpop.f32.mrb[59].mxu0 }
 0xff5   : > { %v2737_v12 = vadd.f32 1e-10, %v2736_v50 }
 0xff6   : > { %6143 = vrcp.f32 %v2742_v18 }
 0xff7   : > { %6145 = vrcp.f32 %v2737_v12  ;;  %v5142_v51 = vpop.f32.mrb[60].mxu0 }
 0xff8   : > { %v2752_v13 = vadd.f32 1e-10, %v5142_v51  ;;  %v2746_v63 = vpop.f32.mrb[61].mxu0 }
 0xff9   : > { %v2747_v3 = vadd.f32 1e-10, %v2746_v63 }
 0xffa   : > { %6147 = vrcp.f32 %v2752_v13 }
 0xffb   : > { %6149 = vrcp.f32 %v2747_v3  ;;  %v5145_v22 = vpop.f32.mrb[62].mxu0 }
 0xffc   : > { %v6140_v16 = vpop.eup %6139  ;;  %v2762_v25 = vadd.f32 1e-10, %v5145_v22  ;;  %v2756_v19 = vpop.f32.mrb[63].mxu0 }
 0xffd   : > { %v6142_v24 = vpop.eup %6141  ;;  %v2757_v28 = vadd.f32 1e-10, %v2756_v19 }
 0xffe   : > { %6151 = vrcp.f32 %v2762_v25  ;;  %v5678_v29 = vpack.c.bf16 %v6140_v16, %v6142_v24 }
 0xfff   : > { %6153 = vrcp.f32 %v2757_v28 }
0x1000   : > { %v6144_v31 = vpop.eup %6143  ;;  %5679 = vmatprep.subr.bf16.mxu1 %v5678_v29 }
0x1001   : > { %v6146_v60 = vpop.eup %6145  ;;  %5681 = vmatpush3.bf16.msra.mxu1 %v5678_v29 }
0x1002   : > { %v5682_v32 = vpack.c.bf16 %v6144_v31, %v6146_v60 }
0x1004   : > { %v6148_v23 = vpop.eup %6147  ;;  %5683 = vmatprep.subr.bf16.mxu1 %v5682_v32 }
0x1005   : > { %v6150_v59 = vpop.eup %6149  ;;  %5685 = vmatpush3.bf16.msra.mxu1 %v5682_v32 }
0x1006   : > { %v5686_v62 = vpack.c.bf16 %v6148_v23, %v6150_v59 }
0x1008   : > { %v6152_v4 = vpop.eup %6151  ;;  %5687 = vmatprep.subr.bf16.mxu1 %v5686_v62 }
0x1009   : > { %v6154_v6 = vpop.eup %6153  ;;  %5689 = vmatpush3.bf16.msra.mxu1 %v5686_v62 }
0x100a   : > { %v5690_v57 = vpack.c.bf16 %v6152_v4, %v6154_v6 }
0x100c   : > { %5691 = vmatprep.subr.bf16.mxu1 %v5690_v57 }
0x100d   : > { %5693 = vmatpush3.bf16.msra.mxu1 %v5690_v57 }
0x1010   : > { %5163 = vmatmul.mubr.msk.f32.vlgmr.msra.gmra.mrb[58].mxu1 %vm1084_vm1, %v6855_v33 }
0x1011   : > { %5165 = vmatprep.mubr.msk.f32.mxu1 %vm1084_vm1, %v6857_v58 }
0x1014   : > { %5166 = vmatmul.mubr.msk.f32.gmra.mrb[60].mxu1 %vm1084_vm1, %v6859_v48 }
0x1015   : > { %5168 = vmatprep.mubr.msk.f32.mxu1 %vm1084_vm1, %v6861_v54 }
0x1018   : > { %5169 = vmatmul.mubr.msk.f32.gmra.mrb[62].mxu1 %vm1084_vm1, %v6863_v30 }
0x1019   : > { %5171 = vmatprep.mubr.msk.f32.mxu1 %vm1084_vm1, %v6869_v1 }
0x101c   : > { %5172 = vmatmul.mubr.msk.f32.gmra.mrb[64].mxu1 %vm1084_vm1, %v6879_v20 }
0x101d   : > { %5218 = vmatprep.mubr.msk.f32.mxu1 %vm1084_vm1, %v6851_v11 }
0x10e3   : > { %v5164_v36 = vpop.f32.mrb[58].mxu1 }
0x10e4   : > { %v2845_v7 = vadd.f32 1e-10, %v5164_v36  ;;  %v2839_v37 = vpop.f32.mrb[59].mxu1 }
0x10e5   : > { %v2840_v38 = vadd.f32 1e-10, %v2839_v37 }
0x10e6   : > { %6155 = vrcp.f32 %v2845_v7 }
0x10e7   : > { %6157 = vrcp.f32 %v2840_v38  ;;  %v5167_v41 = vpop.f32.mrb[60].mxu1 }
0x10e8   : > { %v2855_v42 = vadd.f32 1e-10, %v5167_v41  ;;  %v2849_v44 = vpop.f32.mrb[61].mxu1 }
0x10e9   : > { %v2850_v47 = vadd.f32 1e-10, %v2849_v44 }
0x10ea   : > { %6159 = vrcp.f32 %v2855_v42 }
0x10eb   : > { %6161 = vrcp.f32 %v2850_v47  ;;  %v5170_v49 = vpop.f32.mrb[62].mxu1 }
0x10ec   : > { %v2865_v52 = vadd.f32 1e-10, %v5170_v49  ;;  %v2859_v61 = vpop.f32.mrb[63].mxu1 }
0x10ed   : > { %v2860_v53 = vadd.f32 1e-10, %v2859_v61 }
0x10ee   : > { %6163 = vrcp.f32 %v2865_v52 }
0x10ef   : > { %6165 = vrcp.f32 %v2860_v53  ;;  %v5173_v35 = vpop.f32.mrb[64].mxu1 }
0x10f0   : > { %v6156_v34 = vpop.eup %6155  ;;  %v2875_v40 = vadd.f32 1e-10, %v5173_v35  ;;  %v2869_v39 = vpop.f32.mrb[65].mxu1 }
0x10f1   : > { %v6158_v2 = vpop.eup %6157  ;;  %v2870_v5 = vadd.f32 1e-10, %v2869_v39 }
0x10f2   : > { %6167 = vrcp.f32 %v2875_v40  ;;  %v5694_v8 = vpack.c.bf16 %v6156_v34, %v6158_v2 }
0x10f3   : > { %6169 = vrcp.f32 %v2870_v5 }
0x10f4   : > { %v6160_v9 = vpop.eup %6159  ;;  %5695 = vmatprep.subr.bf16.mxu0 %v5694_v8 }
0x10f5   : > { %v6162_v45 = vpop.eup %6161  ;;  %5697 = vmatpush3.bf16.msra.mxu0 %v5694_v8 }
0x10f6   : > { %v5698_v18 = vpack.c.bf16 %v6160_v9, %v6162_v45 }
0x10f8   : > { %v6164_v50 = vpop.eup %6163  ;;  %5699 = vmatprep.subr.bf16.mxu0 %v5698_v18 }
0x10f9   : > { %v6166_v12 = vpop.eup %6165  ;;  %5701 = vmatpush3.bf16.msra.mxu0 %v5698_v18 }
0x10fa   : > { %v5702_v51 = vpack.c.bf16 %v6164_v50, %v6166_v12 }
0x10fc   : > { %v6168_v13 = vpop.eup %6167  ;;  %5703 = vmatprep.subr.bf16.mxu0 %v5702_v51 }
0x10fd   : > { %v6170_v63 = vpop.eup %6169  ;;  %5705 = vmatpush3.bf16.msra.mxu0 %v5702_v51 }
0x10fe   : > { %v5706_v3 = vpack.c.bf16 %v6168_v13, %v6170_v63 }
0x1100   : > { %5707 = vmatprep.subr.bf16.mxu0 %v5706_v3 }
0x1101   : > { %5709 = vmatpush3.bf16.msra.mxu0 %v5706_v3 }
0x1104   : > { %5191 = vmatmul.mubr.msk.f32.vlgmr.msra.gmra.mrb[64].mxu0 %vm1084_vm1, %v6805_v56 }
0x1105   : > { %5193 = vmatprep.mubr.msk.f32.mxu0 %vm1084_vm1, %v6811_v17 }
0x1108   : > { %5194 = vmatmul.mubr.msk.f32.gmra.mrb[66].mxu0 %vm1084_vm1, %v6820_v15 }
0x1109   : > { %5196 = vmatprep.mubr.msk.f32.mxu0 %vm1084_vm1, %v6824_v14 }
0x110c   : > { %5197 = vmatmul.mubr.msk.f32.gmra.mrb[68].mxu0 %vm1084_vm1, %v6831_v26 }
0x110d   : > { %5199 = vmatprep.mubr.msk.f32.mxu0 %vm1084_vm1, %v6835_v21 }
0x1110   : > { %5200 = vmatmul.mubr.msk.f32.gmra.mrb[70].mxu0 %vm1084_vm1, %v6842_v27 }
0x1111   : > { %5246 = vmatprep.mubr.msk.f32.mxu0 %vm1084_vm1, %v6802_v43 }
0x11d7   : > { %v5192_v22 = vpop.f32.mrb[64].mxu0 }
0x11d8   : > { %v2958_v16 = vadd.f32 1e-10, %v5192_v22  ;;  %v2952_v25 = vpop.f32.mrb[65].mxu0 }
0x11d9   : > { %v2953_v19 = vadd.f32 1e-10, %v2952_v25 }
0x11da   : > { %6171 = vrcp.f32 %v2958_v16 }
0x11db   : > { %6173 = vrcp.f32 %v2953_v19  ;;  %v5195_v24 = vpop.f32.mrb[66].mxu0 }
0x11dc   : > { %v2968_v28 = vadd.f32 1e-10, %v5195_v24  ;;  %v2962_v29 = vpop.f32.mrb[67].mxu0 }
0x11dd   : > { %v2963_v31 = vadd.f32 1e-10, %v2962_v29 }
0x11de   : > { %6175 = vrcp.f32 %v2968_v28 }
0x11df   : > { %6177 = vrcp.f32 %v2963_v31  ;;  %v5198_v60 = vpop.f32.mrb[68].mxu0 }
0x11e0   : > { %v2978_v32 = vadd.f32 1e-10, %v5198_v60  ;;  %v2972_v23 = vpop.f32.mrb[69].mxu0 }
0x11e1   : > { %v2973_v59 = vadd.f32 1e-10, %v2972_v23 }
0x11e2   : > { %6179 = vrcp.f32 %v2978_v32 }
0x11e3   : > { %6181 = vrcp.f32 %v2973_v59  ;;  %v5201_v62 = vpop.f32.mrb[70].mxu0 }
0x11e4   : > { %v6172_v4 = vpop.eup %6171  ;;  %v2988_v6 = vadd.f32 1e-10, %v5201_v62  ;;  %v2982_v57 = vpop.f32.mrb[71].mxu0 }
0x11e5   : > { %v6174_v36 = vpop.eup %6173  ;;  %v2983_v7 = vadd.f32 1e-10, %v2982_v57 }
0x11e6   : > { %6183 = vrcp.f32 %v2988_v6  ;;  %v5710_v37 = vpack.c.bf16 %v6172_v4, %v6174_v36 }
0x11e7   : > { %6185 = vrcp.f32 %v2983_v7 }
0x11e8   : > { %v6176_v38 = vpop.eup %6175  ;;  %5711 = vmatprep.subr.bf16.mxu1 %v5710_v37 }
0x11e9   : > { %v6178_v41 = vpop.eup %6177  ;;  %5713 = vmatpush3.bf16.msra.mxu1 %v5710_v37 }
0x11ea   : > { %v5714_v42 = vpack.c.bf16 %v6176_v38, %v6178_v41 }
0x11ec   : > { %v6180_v44 = vpop.eup %6179  ;;  %5715 = vmatprep.subr.bf16.mxu1 %v5714_v42 }
0x11ed   : > { %v6182_v47 = vpop.eup %6181  ;;  %5717 = vmatpush3.bf16.msra.mxu1 %v5714_v42 }
0x11ee   : > { %v5718_v49 = vpack.c.bf16 %v6180_v44, %v6182_v47 }
0x11f0   : > { %v6184_v52 = vpop.eup %6183  ;;  %5719 = vmatprep.subr.bf16.mxu1 %v5718_v49 }
0x11f1   : > { %v6186_v61 = vpop.eup %6185  ;;  %5721 = vmatpush3.bf16.msra.mxu1 %v5718_v49 }
0x11f2   : > { %v5722_v53 = vpack.c.bf16 %v6184_v52, %v6186_v61 }
0x11f4   : > { %5723 = vmatprep.subr.bf16.mxu1 %v5722_v53 }
0x11f5   : > { %5725 = vmatpush3.bf16.msra.mxu1 %v5722_v53 }
0x11f8   : > { %5219 = vmatmul.mubr.msk.f32.vlgmr.msra.gmra.mrb[66].mxu1 %vm1084_vm1, %v6855_v33 }
0x11f9   : > { %5221 = vmatprep.mubr.msk.f32.mxu1 %vm1084_vm1, %v6857_v58 }
0x11fc   : > { %5222 = vmatmul.mubr.msk.f32.gmra.mrb[68].mxu1 %vm1084_vm1, %v6859_v48 }
0x11fd   : > { %5224 = vmatprep.mubr.msk.f32.mxu1 %vm1084_vm1, %v6861_v54 }
0x1200   : > { %5225 = vmatmul.mubr.msk.f32.gmra.mrb[70].mxu1 %vm1084_vm1, %v6863_v30 }
0x1201   : > { %5227 = vmatprep.mubr.msk.f32.mxu1 %vm1084_vm1, %v6869_v1 }
0x1204   : > { %5228 = vmatmul.mubr.msk.f32.gmra.mrb[72].mxu1 %vm1084_vm1, %v6879_v20 }
0x1205   : > { %5274 = vmatprep.mubr.msk.f32.mxu1 %vm1084_vm1, %v6851_v11 }
0x12cb   : > { %v5220_v35 = vpop.f32.mrb[66].mxu1 }
0x12cc   : > { %v3071_v34 = vadd.f32 1e-10, %v5220_v35  ;;  %v3065_v40 = vpop.f32.mrb[67].mxu1 }
0x12cd   : > { %v3066_v39 = vadd.f32 1e-10, %v3065_v40 }
0x12ce   : > { %6187 = vrcp.f32 %v3071_v34 }
0x12cf   : > { %6189 = vrcp.f32 %v3066_v39  ;;  %v5223_v2 = vpop.f32.mrb[68].mxu1 }
0x12d0   : > { %v3081_v5 = vadd.f32 1e-10, %v5223_v2  ;;  %v3075_v8 = vpop.f32.mrb[69].mxu1 }
0x12d1   : > { %v3076_v9 = vadd.f32 1e-10, %v3075_v8 }
0x12d2   : > { %6191 = vrcp.f32 %v3081_v5 }
0x12d3   : > { %6193 = vrcp.f32 %v3076_v9  ;;  %v5226_v45 = vpop.f32.mrb[70].mxu1 }
0x12d4   : > { %v3091_v18 = vadd.f32 1e-10, %v5226_v45  ;;  %v3085_v50 = vpop.f32.mrb[71].mxu1 }
0x12d5   : > { %v3086_v12 = vadd.f32 1e-10, %v3085_v50 }
0x12d6   : > { %6195 = vrcp.f32 %v3091_v18 }
0x12d7   : > { %6197 = vrcp.f32 %v3086_v12  ;;  %v5229_v51 = vpop.f32.mrb[72].mxu1 }
0x12d8   : > { %v6188_v13 = vpop.eup %6187  ;;  %v3101_v63 = vadd.f32 1e-10, %v5229_v51  ;;  %v3095_v3 = vpop.f32.mrb[73].mxu1 }
0x12d9   : > { %v6190_v22 = vpop.eup %6189  ;;  %v3096_v16 = vadd.f32 1e-10, %v3095_v3 }
0x12da   : > { %6199 = vrcp.f32 %v3101_v63  ;;  %v5726_v25 = vpack.c.bf16 %v6188_v13, %v6190_v22 }
0x12db   : > { %6201 = vrcp.f32 %v3096_v16 }
0x12dc   : > { %v6192_v19 = vpop.eup %6191  ;;  %5727 = vmatprep.subr.bf16.mxu0 %v5726_v25 }
0x12dd   : > { %v6194_v24 = vpop.eup %6193  ;;  %5729 = vmatpush3.bf16.msra.mxu0 %v5726_v25 }
0x12de   : > { %v5730_v28 = vpack.c.bf16 %v6192_v19, %v6194_v24 }
0x12e0   : > { %v6196_v29 = vpop.eup %6195  ;;  %5731 = vmatprep.subr.bf16.mxu0 %v5730_v28 }
0x12e1   : > { %v6198_v31 = vpop.eup %6197  ;;  %5733 = vmatpush3.bf16.msra.mxu0 %v5730_v28 }
0x12e2   : > { %v5734_v60 = vpack.c.bf16 %v6196_v29, %v6198_v31 }
0x12e4   : > { %v6200_v32 = vpop.eup %6199  ;;  %5735 = vmatprep.subr.bf16.mxu0 %v5734_v60 }
0x12e5   : > { %v6202_v23 = vpop.eup %6201  ;;  %5737 = vmatpush3.bf16.msra.mxu0 %v5734_v60 }
0x12e6   : > { %v5738_v59 = vpack.c.bf16 %v6200_v32, %v6202_v23 }
0x12e8   : > { %5739 = vmatprep.subr.bf16.mxu0 %v5738_v59 }
0x12e9   : > { %5741 = vmatpush3.bf16.msra.mxu0 %v5738_v59 }
0x12ec   : > { %5247 = vmatmul.mubr.msk.f32.vlgmr.msra.gmra.mrb[72].mxu0 %vm1084_vm1, %v6805_v56 }
0x12ed   : > { %5249 = vmatprep.mubr.msk.f32.mxu0 %vm1084_vm1, %v6811_v17 }
0x12f0   : > { %5250 = vmatmul.mubr.msk.f32.gmra.mrb[74].mxu0 %vm1084_vm1, %v6820_v15 }
0x12f1   : > { %5252 = vmatprep.mubr.msk.f32.mxu0 %vm1084_vm1, %v6824_v14 }
0x12f4   : > { %5253 = vmatmul.mubr.msk.f32.gmra.mrb[76].mxu0 %vm1084_vm1, %v6831_v26 }
0x12f5   : > { %5255 = vmatprep.mubr.msk.f32.mxu0 %vm1084_vm1, %v6835_v21 }
0x12f8   : > { %5256 = vmatmul.mubr.msk.f32.gmra.mrb[78].mxu0 %vm1084_vm1, %v6842_v27 }
0x12f9   : > { %5302 = vmatprep.mubr.msk.f32.mxu0 %vm1084_vm1, %v6802_v43 }
0x13bf   : > { %v5248_v62 = vpop.f32.mrb[72].mxu0 }
0x13c0   : > { %v3184_v4 = vadd.f32 1e-10, %v5248_v62  ;;  %v3178_v6 = vpop.f32.mrb[73].mxu0 }
0x13c1   : > { %v3179_v57 = vadd.f32 1e-10, %v3178_v6 }
0x13c2   : > { %6203 = vrcp.f32 %v3184_v4 }
0x13c3   : > { %6205 = vrcp.f32 %v3179_v57  ;;  %v5251_v36 = vpop.f32.mrb[74].mxu0 }
0x13c4   : > { %v3194_v7 = vadd.f32 1e-10, %v5251_v36  ;;  %v3188_v37 = vpop.f32.mrb[75].mxu0 }
0x13c5   : > { %v3189_v38 = vadd.f32 1e-10, %v3188_v37 }
0x13c6   : > { %6207 = vrcp.f32 %v3194_v7 }
0x13c7   : > { %6209 = vrcp.f32 %v3189_v38  ;;  %v5254_v41 = vpop.f32.mrb[76].mxu0 }
0x13c8   : > { %v3204_v42 = vadd.f32 1e-10, %v5254_v41  ;;  %v3198_v44 = vpop.f32.mrb[77].mxu0 }
0x13c9   : > { %v3199_v47 = vadd.f32 1e-10, %v3198_v44 }
0x13ca   : > { %6211 = vrcp.f32 %v3204_v42 }
0x13cb   : > { %6213 = vrcp.f32 %v3199_v47  ;;  %v5257_v49 = vpop.f32.mrb[78].mxu0 }
0x13cc   : > { %v6204_v43 = vpop.eup %6203  ;;  %v3214_v52 = vadd.f32 1e-10, %v5257_v49  ;;  %v3208_v61 = vpop.f32.mrb[79].mxu0 }
0x13cd   : > { %v6206_v53 = vpop.eup %6205  ;;  %v3209_v35 = vadd.f32 1e-10, %v3208_v61 }
0x13ce   : > { %6215 = vrcp.f32 %v3214_v52  ;;  %v5742_v34 = vpack.c.bf16 %v6204_v43, %v6206_v53 }
0x13cf   : > { %6217 = vrcp.f32 %v3209_v35 }
0x13d0   : > { %v6208_v40 = vpop.eup %6207  ;;  %5743 = vmatprep.subr.bf16.mxu1 %v5742_v34 }
0x13d1   : > { %v6210_v39 = vpop.eup %6209  ;;  %5745 = vmatpush3.bf16.msra.mxu1 %v5742_v34 }
0x13d2   : > { %v5746_v2 = vpack.c.bf16 %v6208_v40, %v6210_v39 }
0x13d4   : > { %v6212_v5 = vpop.eup %6211  ;;  %5747 = vmatprep.subr.bf16.mxu1 %v5746_v2 }
0x13d5   : > { %v6214_v8 = vpop.eup %6213  ;;  %5749 = vmatpush3.bf16.msra.mxu1 %v5746_v2 }
0x13d6   : > { %v5750_v9 = vpack.c.bf16 %v6212_v5, %v6214_v8 }
0x13d8   : > { %v6216_v45 = vpop.eup %6215  ;;  %5751 = vmatprep.subr.bf16.mxu1 %v5750_v9 }
0x13d9   : > { %v6218_v18 = vpop.eup %6217  ;;  %5753 = vmatpush3.bf16.msra.mxu1 %v5750_v9 }
0x13da   : > { %v5754_v50 = vpack.c.bf16 %v6216_v45, %v6218_v18 }
0x13dc   : > { %5755 = vmatprep.subr.bf16.mxu1 %v5754_v50 }
0x13dd   : > { %5757 = vmatpush3.bf16.msra.mxu1 %v5754_v50 }
0x13e0   : > { %5275 = vmatmul.mubr.msk.f32.vlgmr.msra.gmra.mrb[74].mxu1 %vm1084_vm1, %v6855_v33 }
0x13e1   : > { %5277 = vmatprep.mubr.msk.f32.mxu1 %vm1084_vm1, %v6857_v58 }
0x13e4   : > { %5278 = vmatmul.mubr.msk.f32.gmra.mrb[76].mxu1 %vm1084_vm1, %v6859_v48 }
0x13e5   : > { %5280 = vmatprep.mubr.msk.f32.mxu1 %vm1084_vm1, %v6861_v54 }
0x13e8   : > { %5281 = vmatmul.mubr.msk.f32.gmra.mrb[78].mxu1 %vm1084_vm1, %v6863_v30 }
0x13e9   : > { %5283 = vmatprep.mubr.msk.f32.mxu1 %vm1084_vm1, %v6869_v1 }
0x13ec   : > { %5284 = vmatmul.mubr.msk.f32.gmra.mrb[80].mxu1 %vm1084_vm1, %v6879_v20 }
0x13ed   : > { %5330 = vmatprep.mubr.msk.f32.mxu1 %vm1084_vm1, %v6851_v11 }
0x14b3   : > { %v5276_v12 = vpop.f32.mrb[74].mxu1 }
0x14b4   : > { %v3297_v51 = vadd.f32 1e-10, %v5276_v12  ;;  %v3291_v13 = vpop.f32.mrb[75].mxu1 }
0x14b5   : > { %v3292_v63 = vadd.f32 1e-10, %v3291_v13 }
0x14b6   : > { %6219 = vrcp.f32 %v3297_v51 }
0x14b7   : > { %6221 = vrcp.f32 %v3292_v63  ;;  %v5279_v3 = vpop.f32.mrb[76].mxu1 }
0x14b8   : > { %v3307_v22 = vadd.f32 1e-10, %v5279_v3  ;;  %v3301_v16 = vpop.f32.mrb[77].mxu1 }
0x14b9   : > { %v3302_v25 = vadd.f32 1e-10, %v3301_v16  ;;  %v6267_v16 = vld [vmem:[%s6344_s27 + $0x8] sm:$0xff] }
0x14ba   : > { %6223 = vrcp.f32 %v3307_v22 }
0x14bb   : > { %6225 = vrcp.f32 %v3302_v25  ;;  %v5282_v19 = vpop.f32.mrb[78].mxu1 }
0x14bc   : > { %v3317_v24 = vadd.f32 1e-10, %v5282_v19  ;;  %v3311_v28 = vpop.f32.mrb[79].mxu1  ;;  %v6268_v19 = vld [vmem:[%s6344_s27] sm:$0xff] }
0x14bd   : > { %v3312_v29 = vadd.f32 1e-10, %v3311_v28 }
0x14be   : > { %6227 = vrcp.f32 %v3317_v24 }
0x14bf   : > { %6229 = vrcp.f32 %v3312_v29  ;;  %v5285_v31 = vpop.f32.mrb[80].mxu1 }
0x14c0   : > { %v6220_v60 = vpop.eup %6219  ;;  %v3327_v32 = vadd.f32 1e-10, %v5285_v31  ;;  %v3321_v23 = vpop.f32.mrb[81].mxu1 }
0x14c1   : > { %v6222_v59 = vpop.eup %6221  ;;  %v3322_v62 = vadd.f32 1e-10, %v3321_v23  ;;  %v6270_v23 = vld [vmem:[%s6344_s27 + $0x10] sm:$0xff] }
0x14c2   : > { %6231 = vrcp.f32 %v3327_v32  ;;  %v5758_v4 = vpack.c.bf16 %v6220_v60, %v6222_v59  ;;  %v6269_v60 = vld [vmem:[%s6344_s27 + $0x18] sm:$0xff] }
0x14c3   : > { %6233 = vrcp.f32 %v3322_v62 }
0x14c4   : > { %v6224_v6 = vpop.eup %6223  ;;  %5759 = vmatprep.subr.bf16.mxu0 %v5758_v4 }
0x14c5   : > { %v6226_v57 = vpop.eup %6225  ;;  %5761 = vmatpush3.bf16.msra.mxu0 %v5758_v4 }
0x14c6   : > { %v5762_v36 = vpack.c.bf16 %v6224_v6, %v6226_v57  ;;  %v6271_v57 = vld [vmem:[%s6344_s27 + $0x28] sm:$0xff] }
0x14c8   : > { %v6228_v7 = vpop.eup %6227  ;;  %5763 = vmatprep.subr.bf16.mxu0 %v5762_v36 }
0x14c9   : > { %v6230_v37 = vpop.eup %6229  ;;  %5765 = vmatpush3.bf16.msra.mxu0 %v5762_v36 }
0x14ca   : > { %v5766_v38 = vpack.c.bf16 %v6228_v7, %v6230_v37  ;;  %v6272_v7 = vld [vmem:[%s6344_s27 + $0x20] sm:$0xff] }
0x14cc   : > { %v6232_v41 = vpop.eup %6231  ;;  %5767 = vmatprep.subr.bf16.mxu0 %v5766_v38 }
0x14cd   : > { %v6234_v42 = vpop.eup %6233  ;;  %5769 = vmatpush3.bf16.msra.mxu0 %v5766_v38 }
0x14ce   : > { %v5770_v44 = vpack.c.bf16 %v6232_v41, %v6234_v42 }
0x14d0   : > { %5771 = vmatprep.subr.bf16.mxu0 %v5770_v44 }
0x14d1   : > { %5773 = vmatpush3.bf16.msra.mxu0 %v5770_v44  ;;  %v6273_v44 = vld [vmem:[%s6344_s27 + $0x30] sm:$0xff] }
0x14d4   : > { %5303 = vmatmul.mubr.msk.f32.vlgmr.msra.gmra.mrb[80].mxu0 %vm1084_vm1, %v6805_v56  ;;  %v6291_v56 = vmov 0  }
0x14d5   : > { %5305 = vmatprep.mubr.msk.f32.mxu0 %vm1084_vm1, %v6811_v17  ;;  %5859 = vset.pattern.permute.xlu0 %v6291_v56 }
0x14d8   : > { %5306 = vmatmul.mubr.msk.f32.gmra.mrb[82].mxu0 %vm1084_vm1, %v6820_v15 }
0x14d9   : > { %5308 = vmatprep.mubr.msk.f32.mxu0 %vm1084_vm1, %v6824_v14 }
0x14dc   : > { %5309 = vmatmul.mubr.msk.f32.gmra.mrb[84].mxu0 %vm1084_vm1, %v6831_v26 }
0x14dd   : > { %5311 = vmatprep.mubr.msk.f32.mxu0 %vm1084_vm1, %v6835_v21 }
0x14e0   : > { %5312 = vmatmul.mubr.msk.f32.gmra.mrb[86].mxu0 %vm1084_vm1, %v6842_v27 }
0x14e1   : > { %5358 = vmatprep.mubr.msk.f32.mxu0 %vm1084_vm1, %v6851_v11 }
0x15a7   : > { %v5304_v17 = vpop.f32.mrb[80].mxu0 }
0x15a8   : > { %v3410_v47 = vadd.f32 1e-10, %v5304_v17  ;;  %v3404_v15 = vpop.f32.mrb[81].mxu0  ;;  %v6274_v17 = vld [vmem:[%s6344_s27 + $0x38] sm:$0xff] }
0x15a9   : > { %v3405_v49 = vadd.f32 1e-10, %v3404_v15 }
0x15aa   : > { %6235 = vrcp.f32 %v3410_v47 }
0x15ab   : > { %6237 = vrcp.f32 %v3405_v49  ;;  %v5307_v14 = vpop.f32.mrb[82].mxu0 }
0x15ac   : > { %v3420_v43 = vadd.f32 1e-10, %v5307_v14  ;;  %v3414_v26 = vpop.f32.mrb[83].mxu0 }
0x15ad   : > { %v3415_v52 = vadd.f32 1e-10, %v3414_v26 }
0x15ae   : > { %6239 = vrcp.f32 %v3420_v43 }
0x15af   : > { %6241 = vrcp.f32 %v3415_v52  ;;  %v5310_v21 = vpop.f32.mrb[84].mxu0 }
0x15b0   : > { %v3430_v61 = vadd.f32 1e-10, %v5310_v21  ;;  %v3424_v27 = vpop.f32.mrb[85].mxu0 }
0x15b1   : > { %v3425_v53 = vadd.f32 1e-10, %v3424_v27 }
0x15b2   : > { %6243 = vrcp.f32 %v3430_v61 }
0x15b3   : > { %6245 = vrcp.f32 %v3425_v53  ;;  %v5313_v11 = vpop.f32.mrb[86].mxu0 }
0x15b4   : > { %v6236_v35 = vpop.eup %6235  ;;  %v3440_v34 = vadd.f32 1e-10, %v5313_v11  ;;  %v3434_v40 = vpop.f32.mrb[87].mxu0 }
0x15b5   : > { %v6238_v39 = vpop.eup %6237  ;;  %v3435_v2 = vadd.f32 1e-10, %v3434_v40  ;;  %3571 = vperm.xlu0 %5859, %v6236_v35  }
0x15b6   : > { %6247 = vrcp.f32 %v3440_v34  ;;  %v5774_v5 = vpack.c.bf16 %v6236_v35, %v6238_v39 }
0x15b7   : > { %6249 = vrcp.f32 %v3435_v2 }
0x15b8   : > { %v6240_v8 = vpop.eup %6239  ;;  %5775 = vmatprep.subr.bf16.mxu1 %v5774_v5 }
0x15b9   : > { %v6242_v9 = vpop.eup %6241  ;;  %3566 = vperm.xlu0 %5859, %v6238_v39   ;;  %5777 = vmatpush3.bf16.msra.mxu1 %v5774_v5 }
0x15ba   : > { %v5778_v45 = vpack.c.bf16 %v6240_v8, %v6242_v9 }
0x15bc   : > { %v6244_v18 = vpop.eup %6243  ;;  %5779 = vmatprep.subr.bf16.mxu1 %v5778_v45 }
0x15bd   : > { %v6246_v50 = vpop.eup %6245  ;;  %3581 = vperm.xlu0 %5859, %v6240_v8   ;;  %5781 = vmatpush3.bf16.msra.mxu1 %v5778_v45  ;;  %v3838_v45 = vld [vmem:[%s7298_s4 + $0x8] sm:$0xff] }
0x15be   : > { %v5782_v12 = vpack.c.bf16 %v6244_v18, %v6246_v50 }
0x15c0   : > { %v6248_v51 = vpop.eup %6247  ;;  %5783 = vmatprep.subr.bf16.mxu1 %v5782_v12 }
0x15c1   : > { %v6250_v13 = vpop.eup %6249  ;;  %3576 = vperm.xlu0 %5859, %v6242_v9   ;;  %5785 = vmatpush3.bf16.msra.mxu1 %v5782_v12  ;;  %v3837_v9 = vld [vmem:[%s7298_s4] sm:$0xff]  ;;  %v3840_v12 = vld [vmem:[%s7298_s4 + $0x18] sm:$0xff] }
0x15c2   : > { %v5786_v63 = vpack.c.bf16 %v6248_v51, %v6250_v13 }
0x15c4   : > { %5787 = vmatprep.subr.bf16.mxu1 %v5786_v63 }
0x15c5   : > { %3591 = vperm.xlu0 %5859, %v6244_v18   ;;  %5789 = vmatpush3.bf16.msra.mxu1 %v5786_v63  ;;  %v3839_v18 = vld [vmem:[%s7298_s4 + $0x10] sm:$0xff] }
0x15c8   : > { %5331 = vmatmul.mubr.msk.f32.vlgmr.msra.gmra.mrb[82].mxu1 %vm1084_vm1, %v6855_v33 }
0x15c9   : > { %3586 = vperm.xlu0 %5859, %v6246_v50   ;;  %5333 = vmatprep.mubr.msk.f32.mxu1 %vm1084_vm1, %v6857_v58  ;;  %v5806_v50 = vpack.c.bf16 %v3838_v45, %v3837_v9 }
0x15cb   : > { %5807 = vmatprep.subr.bf16.mxu1 %v5806_v50 }
0x15cc   : > { %5334 = vmatmul.mubr.msk.f32.gmra.mrb[84].mxu1 %vm1084_vm1, %v6859_v48 }
0x15cd   : > { %3596 = vperm.xlu0 %5859, %v6250_v13   ;;  %5336 = vmatprep.mubr.msk.f32.mxu1 %vm1084_vm1, %v6861_v54  ;;  %v3842_v13 = vld [vmem:[%s7298_s4 + $0x28] sm:$0xff] }
0x15ce   : > { %5809 = vmatpush3.bf16.msra.mxu1 %v5806_v50 }
0x15d0   : > { %5337 = vmatmul.mubr.msk.f32.gmra.mrb[86].mxu1 %vm1084_vm1, %v6863_v30 }
0x15d1   : > { %3601 = vperm.xlu0 %5859, %v6248_v51   ;;  %5339 = vmatprep.mubr.msk.f32.mxu1 %vm1084_vm1, %v6869_v1  ;;  %v5810_v51 = vpack.c.bf16 %v3840_v12, %v3839_v18 }
0x15d3   : > { %5811 = vmatprep.subr.bf16.mxu1 %v5810_v51 }
0x15d4   : > { %5340 = vmatmul.mubr.msk.f32.gmra.mrb[88].mxu1 %vm1084_vm1, %v6879_v20 }
0x15d5   : > { %5813 = vmatpush3.bf16.msra.mxu1 %v5810_v51 }
0x1634   : > { %v3572_v3 = vpop.permute.xlu0 %3571 }
0x1635   : > { %v3605_v25 = vmul.f32 %v6267_v16, %v3572_v3  ;;  %v3843_v3 = vld [vmem:[%s7298_s4 + $0x30] sm:$0xff] }
0x1638   : > { %v3567_v22 = vpop.permute.xlu0 %3566 }
0x1639   : > { %v3604_v24 = vmul.f32 %v6268_v19, %v3567_v22  ;;  %v3844_v22 = vld [vmem:[%s7298_s4 + $0x38] sm:$0xff]  ;;  %v3846_v19 = vld [vmem:[%s7298_s4 + $0x48] sm:$0xff] }
0x163a   : > { %v5818_v16 = vpack.c.bf16 %v3844_v22, %v3843_v3 }
0x163b   : > { %v5790_v28 = vpack.c.bf16 %v3605_v25, %v3604_v24  ;;  %v3845_v25 = vld [vmem:[%s7298_s4 + $0x40] sm:$0xff] }
0x163c   : > { %v3582_v29 = vpop.permute.xlu0 %3581  ;;  %v5822_v24 = vpack.c.bf16 %v3846_v19, %v3845_v25 }
0x163d   : > { %5791 = vmatprep.subr.bf16.mxu0 %v5790_v28  ;;  %v3607_v32 = vmul.f32 %v6269_v60, %v3582_v29  ;;  %v3848_v29 = vld [vmem:[%s7298_s4 + $0x58] sm:$0xff]  ;;  %v3849_v60 = vld [vmem:[%s7298_s4 + $0x60] sm:$0xff] }
0x163e   : > { %5793 = vmatpush3.bf16.msra.mxu0 %v5790_v28  ;;  %v3847_v28 = vld [vmem:[%s7298_s4 + $0x50] sm:$0xff] }
0x1640   : > { %v3577_v31 = vpop.permute.xlu0 %3576 }
0x1641   : > { %v3606_v59 = vmul.f32 %v6270_v23, %v3577_v31  ;;  %v5826_v31 = vpack.c.bf16 %v3848_v29, %v3847_v28 }
0x1643   : > { %v5794_v62 = vpack.c.bf16 %v3607_v32, %v3606_v59  ;;  %v3850_v32 = vld [vmem:[%s7298_s4 + $0x68] sm:$0xff] }
0x1644   : > { %v3592_v4 = vpop.permute.xlu0 %3591  ;;  %v5830_v23 = vpack.c.bf16 %v3850_v32, %v3849_v60  ;;  %v300_v32 = vadd.s32 8, %v6645_v0 }
0x1645   : > { %5795 = vmatprep.subr.bf16.mxu0 %v5794_v62  ;;  %v3609_v36 = vmul.f32 %v6271_v57, %v3592_v4 }
0x1646   : > { %5797 = vmatpush3.bf16.msra.mxu0 %v5794_v62  ;;  %vm308_vm15 = vcmp.lt.s32.totalorder %v300_v32, %v6660_v55 }
0x1648   : > { %v3587_v6 = vpop.permute.xlu0 %3586 }
0x1649   : > { %v3608_v37 = vmul.f32 %v6272_v7, %v3587_v6 }
0x164b   : > { %v5798_v38 = vpack.c.bf16 %v3609_v36, %v3608_v37 }
0x164c   : > { %v3597_v41 = vpop.permute.xlu0 %3596 }
0x164d   : > { %5799 = vmatprep.subr.bf16.mxu0 %v5798_v38  ;;  %v3610_v56 = vmul.f32 %v6273_v44, %v3597_v41 }
0x164e   : > { %5801 = vmatpush3.bf16.msra.mxu0 %v5798_v38 }
0x1650   : > { %v3602_v42 = vpop.permute.xlu0 %3601 }
0x1651   : > { %v3611_v47 = vmul.f32 %v6274_v17, %v3602_v42 }
0x1653   : > { %v5802_v15 = vpack.c.bf16 %v3611_v47, %v3610_v56 }
0x1655   : > { %5803 = vmatprep.subr.bf16.mxu0 %v5802_v15 }
0x1656   : > { %5805 = vmatpush3.bf16.msra.mxu0 %v5802_v15 }
0x1659   : > { %5359 = vmatmul.mubr.msk.f32.vlgmr.msra.gmra.mrb[88].mxu0 %vm1084_vm1, %v6855_v33 }
0x165a   : > { %5361 = vmatprep.mubr.msk.f32.mxu0 %vm1084_vm1, %v6857_v58 }
0x165d   : > { %5362 = vmatmul.mubr.msk.f32.gmra.mrb[90].mxu0 %vm1084_vm1, %v6859_v48 }
0x165e   : > { %5364 = vmatprep.mubr.msk.f32.mxu0 %vm1084_vm1, %v6861_v54 }
0x1661   : > { %5365 = vmatmul.mubr.msk.f32.gmra.mrb[92].mxu0 %vm1084_vm1, %v6863_v30 }
0x1662   : > { %5367 = vmatprep.mubr.msk.f32.mxu0 %vm1084_vm1, %v6869_v1 }
0x1665   : > { %5368 = vmatmul.mubr.msk.f32.gmra.mrb[94].mxu0 %vm1084_vm1, %v6879_v20 }
0x169b   : > { %v5332_v49 = vpop.f32.mrb[82].mxu1 }
0x169c   : > { %v3523_v33 = vadd.f32 1e-10, %v5332_v49  ;;  %v3517_v14 = vpop.f32.mrb[83].mxu1 }
0x169d   : > { %v3518_v58 = vadd.f32 1e-10, %v3517_v14  ;;  %v3852_v14 = vld [vmem:[%s7298_s4 + $0x78] sm:$0xff] }
0x169e   : > { %6251 = vrcp.f32 %v3523_v33  ;;  %v3851_v33 = vld [vmem:[%s7298_s4 + $0x70] sm:$0xff] }
0x169f   : > { %v5335_v43 = vpop.f32.mrb[84].mxu1  ;;  %6253 = vrcp.f32 %v3518_v58  ;;  %v5834_v58 = vpack.c.bf16 %v3852_v14, %v3851_v33  ;;  %v303_v33 = vadd.s32 32, %v6645_v0 }
0x16a0   : > { %v3527_v26 = vpop.f32.mrb[85].mxu1  ;;  %v3533_v48 = vadd.f32 1e-10, %v5335_v43 }
0x16a1   : > { %v3528_v21 = vadd.f32 1e-10, %v3527_v26  ;;  %vm311_vm4 = vcmp.lt.s32.totalorder %v303_v33, %v6660_v55 }
0x16a2   : > { %6255 = vrcp.f32 %v3533_v48 }
0x16a3   : > { %v5338_v52 = vpop.f32.mrb[86].mxu1  ;;  %6257 = vrcp.f32 %v3528_v21 }
0x16a4   : > { %v3537_v54 = vpop.f32.mrb[87].mxu1  ;;  %v3543_v1 = vadd.f32 1e-10, %v5338_v52 }
0x16a5   : > { %v3538_v53 = vadd.f32 1e-10, %v3537_v54 }
0x16a6   : > { %6259 = vrcp.f32 %v3543_v1 }
0x16a7   : > { %v5341_v30 = vpop.f32.mrb[88].mxu1  ;;  %6261 = vrcp.f32 %v3538_v53 }
0x16a8   : > { %v6252_v61 = vpop.eup %6251  ;;  %v3547_v27 = vpop.f32.mrb[89].mxu1  ;;  %v3553_v40 = vadd.f32 1e-10, %v5341_v30 }
0x16a9   : > { %3724 = vperm.xlu0 %5859, %v6252_v61   ;;  %v6254_v20 = vpop.eup %6253  ;;  %v3548_v35 = vadd.f32 1e-10, %v3547_v27 }
0x16ab   : > { %6263 = vrcp.f32 %v3548_v35 }
0x16ac   : > { %v6256_v11 = vpop.eup %6255  ;;  %6265 = vrcp.f32 %v3553_v40 }
0x16ad   : > { %3719 = vperm.xlu0 %5859, %v6254_v20   ;;  %v6258_v34 = vpop.eup %6257 }
0x16b0   : > { %v6260_v39 = vpop.eup %6259 }
0x16b1   : > { %3734 = vperm.xlu0 %5859, %v6256_v11   ;;  %v6262_v2 = vpop.eup %6261 }
0x16b5   : > { %3729 = vperm.xlu0 %5859, %v6258_v34   ;;  %v6264_v5 = vpop.eup %6263 }
0x16b6   : > { %v6266_v8 = vpop.eup %6265 }
0x16b9   : > { %3744 = vperm.xlu0 %5859, %v6260_v39  }
0x16bd   : > { %3739 = vperm.xlu0 %5859, %v6262_v2  }
0x16c1   : > { %3749 = vperm.xlu0 %5859, %v6264_v5  }
0x16c5   : > { %3754 = vperm.xlu0 %5859, %v6266_v8  }
0x16c9   : > { %5865 = vset.pattern.permute.xlu0 %v6289_v46  ;;  %v3841_v46 = vld [vmem:[%s7298_s4 + $0x20] sm:$0xff] }
0x16ca   : > { %v5814_v63 = vpack.c.bf16 %v3842_v13, %v3841_v46 }
0x16cc   : > { %5815 = vmatprep.subr.bf16.mxu1 %v5814_v63 }
0x16cd   : > { %5817 = vmatpush3.bf16.msra.mxu1 %v5814_v63 }
0x16ce   : > { %5819 = vmatprep.subr.bf16.mxu1 %v5818_v16 }
0x16d1   : > { %5821 = vmatpush3.bf16.msra.mxu1 %v5818_v16 }
0x16d2   : > { %5823 = vmatprep.subr.bf16.mxu1 %v5822_v24 }
0x16d5   : > { %5825 = vmatpush3.bf16.msra.mxu1 %v5822_v24 }
0x16d6   : > { %5827 = vmatprep.subr.bf16.mxu1 %v5826_v31 }
0x16d9   : > { %5829 = vmatpush3.bf16.msra.mxu1 %v5826_v31 }
0x16da   : > { %5831 = vmatprep.subr.bf16.mxu1 %v5830_v23 }
0x16dd   : > { %5833 = vmatpush3.bf16.msra.mxu1 %v5830_v23  ;;  %v4299_v23 = vld [vmem:[%s7299_s5] ss:$0 sm:$0xff] }
0x16de   : > { %5835 = vmatprep.subr.bf16.mxu1 %v5834_v58 }
0x16e1   : > { %5837 = vmatpush3.bf16.msra.mxu1 %v5834_v58 }
0x1728   : > { %v3725_v59 = vpop.permute.xlu0 %3724 }
0x172c   : > { %v5360_v62 = vpop.f32.mrb[88].mxu0  ;;  %v3720_v4 = vpop.permute.xlu0 %3719 }
0x172d   : > { %v3758_v6 = vmul.f32 %v5360_v62, %v3725_v59  ;;  %v3678_v57 = vpop.f32.mrb[89].mxu0  ;;  %v4075_v59 = vsel %vm308_vm15, 1.0, %v6286_v10 }
0x172e   : > { %v3757_v36 = vmul.f32 %v3720_v4, %v3678_v57  ;;  %v302_v4 = vadd.s32 24, %v6645_v0  ;;  %v4074_v57 = vsel %vm307_vm0, 1.0, %v6286_v10 }
0x172f   : > { %vm3766_vm7 = vcmp.gt.f32.partialorder %v3758_v6, 0.05 }
0x1730   : > { %v4292_v7 = vsel %vm3766_vm7, 1.0, %v6286_v10  ;;  %vm3765_vm8 = vcmp.gt.f32.partialorder %v3757_v36, 0.05  ;;  %v5363_v37 = vpop.f32.mrb[90].mxu0  ;;  %v3735_v38 = vpop.permute.xlu0 %3734  ;;  %vm310_vm1 = vcmp.lt.s32.totalorder %v302_v4, %v6660_v55 }
0x1731   : > { %v4291_v41 = vsel %vm3765_vm8, 1.0, %v6286_v10  ;;  %v3760_v42 = vmul.f32 %v5363_v37, %v3735_v38  ;;  %v3688_v44 = vpop.f32.mrb[91].mxu0 }
0x1732   : > { %v5860_v56 = vpack.i.bf16 %v4292_v7, %v4291_v41  ;;  %v301_v7 = vadd.s32 16, %v6645_v0 }
0x1733   : > { %vm3768_vm9 = vcmp.gt.f32.partialorder %v3760_v42, 0.05 }
0x1734   : > { %v5366_v17 = vpop.f32.mrb[92].mxu0  ;;  %5861 = vperm.xlu1 %5858, %v5860_v56   ;;  %v3730_v47 = vpop.permute.xlu0 %3729  ;;  %v4294_v43 = vsel %vm3768_vm9, 1.0, %v6286_v10  ;;  %vm309_vm2 = vcmp.lt.s32.totalorder %v301_v7, %v6660_v55 }
0x1735   : > { %v3759_v15 = vmul.f32 %v3730_v47, %v3688_v44  ;;  %v3698_v49 = vpop.f32.mrb[93].mxu0 }
0x1737   : > { %vm3767_vm10 = vcmp.gt.f32.partialorder %v3759_v15, 0.05 }
0x1738   : > { %v4293_v26 = vsel %vm3767_vm10, 1.0, %v6286_v10  ;;  %v5369_v48 = vpop.f32.mrb[94].mxu0  ;;  %v3745_v52 = vpop.permute.xlu0 %3744 }
0x1739   : > { %v3762_v54 = vmul.f32 %v5366_v17, %v3745_v52  ;;  %v3708_v21 = vpop.f32.mrb[95].mxu0  ;;  %v5866_v30 = vpack.i.bf16 %v4294_v43, %v4293_v26  ;;  %v4076_v17 = vsel %vm309_vm2, 1.0, %v6286_v10  ;;  %v4078_v52 = vsel %vm311_vm4, 1.0, %v6286_v10 }
0x173b   : > { %5867 = vperm.xlu0 %5865, %v5866_v30   ;;  %vm3770_vm11 = vcmp.gt.f32.partialorder %v3762_v54, 0.05 }
0x173c   : > { %v3740_v61 = vpop.permute.xlu0 %3739  ;;  %v4296_v1 = vsel %vm3770_vm11, 1.0, %v6286_v10 }
0x173d   : > { %v3761_v27 = vmul.f32 %v3740_v61, %v3698_v49  ;;  %v305_v61 = vadd.s32 48, %v6645_v0 }
0x173f   : > { %vm3769_vm12 = vcmp.gt.f32.partialorder %v3761_v27, 0.05  ;;  %vm313_vm6 = vcmp.lt.s32.totalorder %v305_v61, %v6660_v55 }
0x1740   : > { %v4295_v20 = vsel %vm3769_vm12, 1.0, %v6286_v10  ;;  %v3750_v53 = vpop.permute.xlu0 %3749 }
0x1741   : > { %v3763_v11 = vmul.f32 %v3750_v53, %v3708_v21  ;;  %v5871_v35 = vpack.i.bf16 %v4296_v1, %v4295_v20  ;;  %v306_v21 = vadd.s32 56, %v6645_v0 }
0x1743   : > { %5872 = vperm.xlu0 %5865, %v5871_v35   ;;  %vm3771_vm13 = vcmp.gt.f32.partialorder %v3763_v11, 0.05  ;;  %vm314_vm5 = vcmp.lt.s32.totalorder %v306_v21, %v6660_v55  ;;  %v4080_v35 = vsel %vm313_vm6, 1.0, %v6286_v10 }
0x1744   : > { %v3755_v34 = vpop.permute.xlu0 %3754  ;;  %v4297_v39 = vsel %vm3771_vm13, 1.0, %v6286_v10  ;;  %v4081_v20 = vsel %vm314_vm5, 1.0, %v6286_v10 }
0x1745   : > { %v3764_v40 = vmul.f32 %v5369_v48, %v3755_v34 }
0x1747   : > { %vm3772_vm14 = vcmp.gt.f32.partialorder %v3764_v40, 0.05 }
0x1748   : > { %v4298_v2 = vsel %vm3772_vm14, 1.0, %v6286_v10 }
0x1749   : > { %v5876_v5 = vpack.i.bf16 %v4298_v2, %v4297_v39 }
0x174b   : > { %5877 = vperm.xlu0 %5865, %v5876_v5  }
0x17b3   : > { %v5862_v8 = vpop.permute.xlu1 %5861 }
0x17b4   : > { %v5864_v9 = vunpack.i.h.bf16 %v5862_v8  ;;  %v5863_v45 = vunpack.i.l.bf16 %v5862_v8 }
0x17b6   : > { %v3830_v18 = vmul.f32 %v5864_v9, %v3758_v6  ;;  %v3829_v50 = vmul.f32 %v5863_v45, %v3757_v36 }
0x17b8   : > { %5402 = vmatprep.mubr.f32.mxu1 %v3829_v50 }
0x17b9   : > { %5403 = vmatmul.mubr.f32.vlgmr.msra.gmra.mrb[90].mxu1 %v3830_v18 }
0x17ba   : > { %v5868_v12 = vpop.permute.xlu0 %5867 }
0x17bb   : > { %v5870_v51 = vunpack.i.h.bf16 %v5868_v12  ;;  %v5869_v46 = vunpack.i.l.bf16 %v5868_v12 }
0x17bd   : > { %v3832_v13 = vmul.f32 %v5870_v51, %v3760_v42  ;;  %v3831_v63 = vmul.f32 %v5869_v46, %v3759_v15  ;;  %v4077_v42 = vsel %vm310_vm1, 1.0, %v6286_v10  ;;  %v304_v15 = vadd.s32 40, %v6645_v0 }
0x17bf   : > { %5405 = vmatprep.mubr.f32.mxu1 %v3831_v63  ;;  %vm312_vm3 = vcmp.lt.s32.totalorder %v304_v15, %v6660_v55 }
0x17c0   : > { %5406 = vmatmul.mubr.f32.gmra.mrb[92].mxu1 %v3832_v13  ;;  %v4079_v43 = vsel %vm312_vm3, 1.0, %v6286_v10 }
0x17c2   : > { %v5873_v3 = vpop.permute.xlu0 %5872 }
0x17c3   : > { %v5875_v22 = vunpack.i.h.bf16 %v5873_v3  ;;  %v5874_v16 = vunpack.i.l.bf16 %v5873_v3 }
0x17c5   : > { %v3834_v25 = vmul.f32 %v5875_v22, %v3762_v54  ;;  %v3833_v19 = vmul.f32 %v5874_v16, %v3761_v27 }
0x17c7   : > { %5408 = vmatprep.mubr.f32.mxu1 %v3833_v19 }
0x17c8   : > { %5409 = vmatmul.mubr.f32.gmra.mrb[94].mxu1 %v3834_v25 }
0x17ca   : > { %v5878_v24 = vpop.permute.xlu0 %5877 }
0x17cb   : > { %v5880_v28 = vunpack.i.h.bf16 %v5878_v24  ;;  %v5879_v29 = vunpack.i.l.bf16 %v5878_v24 }
0x17cd   : > { %v3836_v31 = vmul.f32 %v5880_v28, %v3764_v40  ;;  %v3835_v60 = vmul.f32 %v5879_v29, %v3763_v11 }
0x17cf   : > { %5411 = vmatprep.mubr.f32.mxu1 %v3835_v60 }
0x17d0   : > { %5412 = vmatmul.mubr.f32.gmra.mrb[96].mxu1 %v3836_v31 }
0x188c   : > { %v5404_v62 = vpop.f32.mrb[90].mxu1 }
0x188d   : > { %v3932_v6 = vadd.f32 %v5404_v62, %v4299_v23  ;;  %v3926_v36 = vpop.f32.mrb[91].mxu1 }
0x188e   : > { %v3927_v37 = vadd.f32 %v4299_v23, %v3926_v36 }
0x188f   : > { %v3966_v38 = vmul.f32 %v4075_v59, %v3932_v6 }
0x1890   : > { %v3965_v41 = vmul.f32 %v4074_v57, %v3927_v37 }
0x1891   : > { %3974 = vst [vmem:[%s7265_s28 + $0x8] sm:$0xff] %v3966_v38 }
0x1892   : > { %3973 = vst [vmem:[%s7265_s28] sm:$0xff] %v3965_v41 }
0x1893   : > { %v5407_v44 = vpop.f32.mrb[92].mxu1 }
0x1894   : > { %v3942_v56 = vadd.f32 %v5407_v44, %v4299_v23  ;;  %v3936_v47 = vpop.f32.mrb[93].mxu1 }
0x1895   : > { %v3937_v49 = vadd.f32 %v4299_v23, %v3936_v47 }
0x1896   : > { %v3968_v14 = vmul.f32 %v4077_v42, %v3942_v56 }
0x1897   : > { %v3967_v58 = vmul.f32 %v4076_v17, %v3937_v49 }
0x1898   : > { %3976 = vst [vmem:[%s7265_s28 + $0x18] sm:$0xff] %v3968_v14 }
0x1899   : > { %3975 = vst [vmem:[%s7265_s28 + $0x10] sm:$0xff] %v3967_v58 }
0x189b   : > { %v5410_v26 = vpop.f32.mrb[94].mxu1 }
0x189c   : > { %v3952_v48 = vadd.f32 %v5410_v26, %v4299_v23  ;;  %v3946_v54 = vpop.f32.mrb[95].mxu1 }
0x189d   : > { %v3947_v30 = vadd.f32 %v4299_v23, %v3946_v54 }
0x189e   : > { %v3970_v27 = vmul.f32 %v4079_v43, %v3952_v48 }
0x189f   : > { %v3969_v1 = vmul.f32 %v4078_v52, %v3947_v30 }
0x18a0   : > { %3978 = vst [vmem:[%s7265_s28 + $0x28] sm:$0xff] %v3970_v27 }
0x18a1   : > { %3977 = vst [vmem:[%s7265_s28 + $0x20] sm:$0xff] %v3969_v1 }
0x18a3   : > { %v5413_v53 = vpop.f32.mrb[96].mxu1 }
0x18a4   : > { %v3962_v11 = vadd.f32 %v5413_v53, %v4299_v23  ;;  %v3956_v34 = vpop.f32.mrb[97].mxu1 }
0x18a5   : > { %v3957_v40 = vadd.f32 %v4299_v23, %v3956_v34 }
0x18a6   : > { %v3972_v39 = vmul.f32 %v4081_v20, %v3962_v11 }
0x18a7   : > { %v3971_v2 = vmul.f32 %v4080_v35, %v3957_v40 }
0x18a8   : > { %3980 = vst [vmem:[%s7265_s28 + $0x38] sm:$0xff] %v3972_v39 }
0x18a9   : > { %3979 = vst [vmem:[%s7265_s28 + $0x30] sm:$0xff] %v3971_v2 }
0x18aa PF: > { %s17_s23 = sadd.s32 1, %s6281_s23  }
0x18ab   : > { %p14_p4 = scmp.ge.s32.totalorder %s17_s23, 4  }
0x18ad   :  { %16 = sbr.rel (!%p14_p4) target bundleno = 2 (0x2), region = 76 }

</bundles_post_ra>
